<compile_context>
chip_gen: v7x
topology: tpu7x:2x2x1
jax: 0.10.0
libtpu: 0.0.40
codegen_flags: <defaults>
</compile_context>

<pallas_src>
import jax
import jax.numpy as jnp
from jax.experimental import pallas as pl
from jax.experimental.pallas import tpu as pltpu

INPUT_SIZE = 10
IN_PAD = 16                 # zero-padded K of the first layer (bf16 alignment)
OUT_PIX = 28 * 28           # 784
W5_PAD = 896                # 7 * 128 lane-dense padding of the last layer
LEAKY_SLOPE = 0.01          # nn.LeakyReLU() default
BN_EPS = 0.75               # nn.BatchNorm1d(out, 0.75) -> eps = 0.75

# Rows of the packed auxiliary array (8, 1024), all f32:
#   0: b1 (128)   1: g2 (256)   2: bt2 (256)  3: g3 (512)
#   4: bt3 (512)  5: g4 (1024)  6: bt4 (1024) 7: b5 (896, zero-padded)


def _generator_kernel(x_ref, w1_ref, w2_ref, w3_ref, w4_hbm, w5_hbm, aux_ref,
                      o_ref, w4_buf, w5_buf, dma_sems):
    # Kick off the HBM->VMEM copies of the two big weights immediately (w4
    # first) so they overlap with layers 1-3; small weights use BlockSpec
    # auto-DMA.  (A DMA priority hint on w4 would be the next refinement if
    # its completion ever becomes exposed at large B.)
    cp4 = pltpu.make_async_copy(w4_hbm, w4_buf, dma_sems.at[0])
    cp5 = pltpu.make_async_copy(w5_hbm, w5_buf, dma_sems.at[1])
    cp4.start()
    cp5.start()

    def leaky(h):
        return jnp.where(h >= 0, h, LEAKY_SLOPE * h)

    def batchnorm(h, g, bt):
        # training-mode BatchNorm1d: batch mean, biased batch variance (f32)
        mu = jnp.mean(h, axis=0, keepdims=True)
        var = jnp.mean((h - mu) * (h - mu), axis=0, keepdims=True)
        return (h - mu) * jax.lax.rsqrt(var + BN_EPS) * g + bt

    def matmul(h, w_bf16):
        # Native bf16 x bf16 MXU path, f32 accumulation.  The small (B, N)
        # activation is cast to bf16; the weight is consumed as stored.
        return jnp.dot(h.astype(jnp.bfloat16), w_bf16,
                       preferred_element_type=jnp.float32)

    b1 = aux_ref[0:1, 0:128]
    g2 = aux_ref[1:2, 0:256]
    bt2 = aux_ref[2:3, 0:256]
    g3 = aux_ref[3:4, 0:512]
    bt3 = aux_ref[4:5, 0:512]
    g4 = aux_ref[5:6, 0:1024]
    bt4 = aux_ref[6:7, 0:1024]
    b5 = aux_ref[7:8, 0:W5_PAD]

    h = leaky(matmul(x_ref[...], w1_ref[...]) + b1)              # (B, 128) f32
    # b2/b3/b4 omitted: they cancel exactly under training-mode BatchNorm.
    h = leaky(batchnorm(matmul(h, w2_ref[...]), g2, bt2))        # (B, 256)
    h = leaky(batchnorm(matmul(h, w3_ref[...]), g3, bt3))        # (B, 512)

    cp4.wait()
    h = leaky(batchnorm(matmul(h, w4_buf[...]), g4, bt4))        # (B, 1024)

    cp5.wait()
    y = jnp.tanh(matmul(h, w5_buf[...]) + b5)                    # (B, 896) f32
    o_ref[...] = y.astype(o_ref.dtype)                           # bf16 store


def init_params(key, input_size=INPUT_SIZE):
    """PyTorch-style init: U(-1/sqrt(fan_in), 1/sqrt(fan_in)); weights (in, out)."""
    dims = [(input_size, 128), (128, 256), (256, 512), (512, 1024),
            (1024, OUT_PIX)]
    params = {}
    keys = jax.random.split(key, 2 * len(dims))
    for i, (fin, fout) in enumerate(dims):
        bound = 1.0 / jnp.sqrt(jnp.float32(fin))
        params[f"w{i+1}"] = jax.random.uniform(
            keys[2 * i], (fin, fout), jnp.float32, -bound, bound)
        params[f"b{i+1}"] = jax.random.uniform(
            keys[2 * i + 1], (1, fout), jnp.float32, -bound, bound)
    for i, (_, fout) in zip((2, 3, 4), dims[1:4]):
        params[f"g{i}"] = jnp.ones((1, fout), jnp.float32)
        params[f"bt{i}"] = jnp.zeros((1, fout), jnp.float32)
    return params


def pack_params(params):
    """One-time packing: bf16 weights, padded w1/w5, packed (8,1024) aux rows."""
    aux = jnp.zeros((8, 1024), jnp.float32)
    aux = aux.at[0, :128].set(params["b1"].reshape(-1))
    aux = aux.at[1, :256].set(params["g2"].reshape(-1))
    aux = aux.at[2, :256].set(params["bt2"].reshape(-1))
    aux = aux.at[3, :512].set(params["g3"].reshape(-1))
    aux = aux.at[4, :512].set(params["bt3"].reshape(-1))
    aux = aux.at[5, :1024].set(params["g4"].reshape(-1))
    aux = aux.at[6, :1024].set(params["bt4"].reshape(-1))
    aux = aux.at[7, :OUT_PIX].set(params["b5"].reshape(-1))

    w1p = jnp.zeros((IN_PAD, 128), jnp.float32).at[:INPUT_SIZE, :].set(params["w1"])
    w5p = jnp.zeros((1024, W5_PAD), jnp.float32).at[:, :OUT_PIX].set(params["w5"])
    return {
        "w1": w1p.astype(jnp.bfloat16),
        "w2": params["w2"].astype(jnp.bfloat16),
        "w3": params["w3"].astype(jnp.bfloat16),
        "w4": params["w4"].astype(jnp.bfloat16),
        "w5": w5p.astype(jnp.bfloat16),
        "aux": aux,
    }


@jax.jit
def generator_forward(x, packed):
    B = x.shape[0]
    # Pad the latent to IN_PAD columns (zeros) and round to bf16 (MXU input).
    x_pad = jnp.zeros((B, IN_PAD), jnp.bfloat16).at[:, :INPUT_SIZE].set(
        x.astype(jnp.bfloat16))
    vmem = pl.BlockSpec(memory_space=pltpu.MemorySpace.VMEM)
    hbm = pl.BlockSpec(memory_space=pl.ANY)   # manual DMA inside the kernel
    y = pl.pallas_call(
        _generator_kernel,
        out_shape=jax.ShapeDtypeStruct((B, W5_PAD), jnp.bfloat16),
        in_specs=[vmem, vmem, vmem, vmem, hbm, hbm, vmem],
        out_specs=vmem,
        scratch_shapes=[
            pltpu.VMEM((512, 1024), jnp.bfloat16),     # w4 landing buffer
            pltpu.VMEM((1024, W5_PAD), jnp.bfloat16),  # w5 landing buffer
            pltpu.SemaphoreType.DMA((2,)),
        ],
        compiler_params=pltpu.CompilerParams(
            vmem_limit_bytes=32 * 1024 * 1024),
    )(x_pad, packed["w1"], packed["w2"], packed["w3"], packed["w4"],
      packed["w5"], packed["aux"])
    # Slice off the lane padding and view as images; stays bf16 (upcast only
    # if a downstream consumer needs f32).
    return y[:, :OUT_PIX].reshape(B, 28, 28)


def _reference_forward(x, params):
    """Pure-JAX reference for the PyTorch module (training-mode BN).

    Mirrors the kernel's MXU numerics: weights and matmul inputs rounded to
    bf16, accumulation / BN / activations in f32.  It keeps the Linear biases
    b2/b3/b4 that the kernel drops, validating that they cancel under
    training-mode BatchNorm.
    """
    def dot_bf16(h, w):
        return jnp.dot(h.astype(jnp.bfloat16), w.astype(jnp.bfloat16),
                       preferred_element_type=jnp.float32)

    def leaky(h):
        return jnp.where(h >= 0, h, LEAKY_SLOPE * h)

    def bn(h, g, bt):
        mu = jnp.mean(h, axis=0, keepdims=True)
        var = jnp.mean((h - mu) ** 2, axis=0, keepdims=True)
        return (h - mu) / jnp.sqrt(var + BN_EPS) * g + bt

    h = leaky(dot_bf16(x, params["w1"]) + params["b1"])
    h = leaky(bn(dot_bf16(h, params["w2"]) + params["b2"],
                 params["g2"], params["bt2"]))
    h = leaky(bn(dot_bf16(h, params["w3"]) + params["b3"],
                 params["g3"], params["bt3"]))
    h = leaky(bn(dot_bf16(h, params["w4"]) + params["b4"],
                 params["g4"], params["bt4"]))
    y = jnp.tanh(dot_bf16(h, params["w5"]) + params["b5"])
    return y.reshape(x.shape[0], 28, 28)


if __name__ == "__main__":
    key = jax.random.PRNGKey(0)
    k_params, k_x = jax.random.split(key)

    B = 8  # small batch for the smoke test
    params = init_params(k_params)
    packed = pack_params(params)
    x = jax.random.normal(k_x, (B, INPUT_SIZE), jnp.float32)  # latent noise z

    out = jax.block_until_ready(generator_forward(x, packed))
    assert out.shape == (B, 28, 28), out.shape
    assert out.dtype == jnp.bfloat16, out.dtype

    ref = _reference_forward(x, params)
    ref_bf = ref.astype(jnp.bfloat16).astype(jnp.float32)
    err = float(jnp.max(jnp.abs(out.astype(jnp.float32) - ref_bf)))
    # bf16 output => differences are at most one bf16 ULP (~3.9e-3 for |y|<1).
    assert err < 5e-3, err

    print("KERNEL_OK")
</pallas_src>

<mosaic_0001>
module attributes {stable_mosaic.version = 11 : i64} {
  func.func @_generator_kernel(%arg0: memref<8x16xbf16, #tpu.memory_space<vmem>>, %arg1: memref<16x128xbf16, #tpu.memory_space<vmem>>, %arg2: memref<128x256xbf16, #tpu.memory_space<vmem>>, %arg3: memref<256x512xbf16, #tpu.memory_space<vmem>>, %arg4: memref<512x1024xbf16, #tpu.memory_space<any>>, %arg5: memref<1024x896xbf16, #tpu.memory_space<any>>, %arg6: memref<8x1024xf32, #tpu.memory_space<vmem>>, %arg7: memref<8x896xbf16, #tpu.memory_space<vmem>>, %arg8: memref<512x1024xbf16, #tpu.memory_space<vmem>>, %arg9: memref<1024x896xbf16, #tpu.memory_space<vmem>>, %arg10: memref<2x!tpu.dma_semaphore, #tpu.memory_space<semaphore_mem>>) attributes {dimension_semantics = [], scalar_prefetch = 0 : i64, scratch_operands = 3 : i64, tpu.core_type = #tpu.core_type<tc>} {
    %c0_i32 = arith.constant 0 : i32
    %0 = tpu.memref_slice %arg10[%c0_i32] : memref<2x!tpu.dma_semaphore, #tpu.memory_space<semaphore_mem>> -> memref<1x!tpu.dma_semaphore, #tpu.memory_space<semaphore_mem>>
    %1 = tpu.memref_squeeze %0 : memref<1x!tpu.dma_semaphore, #tpu.memory_space<semaphore_mem>> -> memref<!tpu.dma_semaphore, #tpu.memory_space<semaphore_mem>>
    tpu.enqueue_dma source(%arg4 : memref<512x1024xbf16, #tpu.memory_space<any>>) target(%arg8 : memref<512x1024xbf16, #tpu.memory_space<vmem>>) target_semaphore(%1 : memref<!tpu.dma_semaphore, #tpu.memory_space<semaphore_mem>>)
    %c1_i32 = arith.constant 1 : i32
    %2 = tpu.memref_slice %arg10[%c1_i32] : memref<2x!tpu.dma_semaphore, #tpu.memory_space<semaphore_mem>> -> memref<1x!tpu.dma_semaphore, #tpu.memory_space<semaphore_mem>>
    %3 = tpu.memref_squeeze %2 : memref<1x!tpu.dma_semaphore, #tpu.memory_space<semaphore_mem>> -> memref<!tpu.dma_semaphore, #tpu.memory_space<semaphore_mem>>
    tpu.enqueue_dma source(%arg5 : memref<1024x896xbf16, #tpu.memory_space<any>>) target(%arg9 : memref<1024x896xbf16, #tpu.memory_space<vmem>>) target_semaphore(%3 : memref<!tpu.dma_semaphore, #tpu.memory_space<semaphore_mem>>)
    %c0 = arith.constant 0 : index
    %c0_0 = arith.constant 0 : index
    %4 = vector.load %arg6[%c0, %c0_0] : memref<8x1024xf32, #tpu.memory_space<vmem>>, vector<1x128xf32>
    %c1 = arith.constant 1 : index
    %c0_1 = arith.constant 0 : index
    %5 = vector.load %arg6[%c1, %c0_1] : memref<8x1024xf32, #tpu.memory_space<vmem>>, vector<1x256xf32>
    %c2 = arith.constant 2 : index
    %c0_2 = arith.constant 0 : index
    %6 = vector.load %arg6[%c2, %c0_2] : memref<8x1024xf32, #tpu.memory_space<vmem>>, vector<1x256xf32>
    %c3 = arith.constant 3 : index
    %c0_3 = arith.constant 0 : index
    %7 = vector.load %arg6[%c3, %c0_3] : memref<8x1024xf32, #tpu.memory_space<vmem>>, vector<1x512xf32>
    %c4 = arith.constant 4 : index
    %c0_4 = arith.constant 0 : index
    %8 = vector.load %arg6[%c4, %c0_4] : memref<8x1024xf32, #tpu.memory_space<vmem>>, vector<1x512xf32>
    %c5 = arith.constant 5 : index
    %c0_5 = arith.constant 0 : index
    %9 = vector.load %arg6[%c5, %c0_5] : memref<8x1024xf32, #tpu.memory_space<vmem>>, vector<1x1024xf32>
    %c6 = arith.constant 6 : index
    %c0_6 = arith.constant 0 : index
    %10 = vector.load %arg6[%c6, %c0_6] : memref<8x1024xf32, #tpu.memory_space<vmem>>, vector<1x1024xf32>
    %c7 = arith.constant 7 : index
    %c0_7 = arith.constant 0 : index
    %11 = vector.load %arg6[%c7, %c0_7] : memref<8x1024xf32, #tpu.memory_space<vmem>>, vector<1x896xf32>
    %c0_8 = arith.constant 0 : index
    %c0_9 = arith.constant 0 : index
    %12 = vector.load %arg0[%c0_8, %c0_9] : memref<8x16xbf16, #tpu.memory_space<vmem>>, vector<8x16xbf16>
    %c0_10 = arith.constant 0 : index
    %c0_11 = arith.constant 0 : index
    %13 = vector.load %arg1[%c0_10, %c0_11] : memref<16x128xbf16, #tpu.memory_space<vmem>>, vector<16x128xbf16>
    %cst = arith.constant dense<0.000000e+00> : vector<8x128xf32>
    %14 = tpu.matmul %12, %13, %cst {dimension_numbers = #tpu.dot_dimension_numbers<[1], [0], [0], [1], [0, 0, 1, 1], [], []>} : vector<8x16xbf16>, vector<16x128xbf16>, vector<8x128xf32> -> vector<8x128xf32>
    %15 = vector.broadcast %4 : vector<1x128xf32> to vector<8x128xf32>
    %16 = arith.addf %14, %15 : vector<8x128xf32>
    %cst_12 = arith.constant 0.000000e+00 : f32
    %17 = vector.broadcast %cst_12 : f32 to vector<8x128xf32>
    %18 = arith.cmpf oge, %16, %17 : vector<8x128xf32>
    %cst_13 = arith.constant 0.00999999977 : f32
    %19 = vector.broadcast %cst_13 : f32 to vector<8x128xf32>
    %20 = arith.mulf %19, %16 : vector<8x128xf32>
    %21 = arith.select %18, %16, %20 : vector<8x128xi1>, vector<8x128xf32>
    %c0_14 = arith.constant 0 : index
    %c0_15 = arith.constant 0 : index
    %22 = vector.load %arg2[%c0_14, %c0_15] : memref<128x256xbf16, #tpu.memory_space<vmem>>, vector<128x256xbf16>
    %23 = arith.truncf %21 : vector<8x128xf32> to vector<8x128xbf16>
    %cst_16 = arith.constant dense<0.000000e+00> : vector<8x256xf32>
    %24 = tpu.matmul %23, %22, %cst_16 {dimension_numbers = #tpu.dot_dimension_numbers<[1], [0], [0], [1], [0, 0, 1, 1], [], []>} : vector<8x128xbf16>, vector<128x256xbf16>, vector<8x256xf32> -> vector<8x256xf32>
    %cst_17 = arith.constant dense<0.000000e+00> : vector<256xf32>
    %25 = vector.multi_reduction <add>, %24, %cst_17 [0] : vector<8x256xf32> to vector<256xf32>
    %26 = vector.shape_cast %25 : vector<256xf32> to vector<1x256xf32>
    %cst_18 = arith.constant 8.000000e+00 : f32
    %27 = vector.broadcast %cst_18 : f32 to vector<1x256xf32>
    %28 = arith.divf %26, %27 : vector<1x256xf32>
    %29 = vector.broadcast %28 : vector<1x256xf32> to vector<8x256xf32>
    %30 = arith.subf %24, %29 : vector<8x256xf32>
    %31 = vector.broadcast %28 : vector<1x256xf32> to vector<8x256xf32>
    %32 = arith.subf %24, %31 : vector<8x256xf32>
    %33 = arith.mulf %30, %32 : vector<8x256xf32>
    %cst_19 = arith.constant dense<0.000000e+00> : vector<256xf32>
    %34 = vector.multi_reduction <add>, %33, %cst_19 [0] : vector<8x256xf32> to vector<256xf32>
    %35 = vector.shape_cast %34 : vector<256xf32> to vector<1x256xf32>
    %cst_20 = arith.constant 8.000000e+00 : f32
    %36 = vector.broadcast %cst_20 : f32 to vector<1x256xf32>
    %37 = arith.divf %35, %36 : vector<1x256xf32>
    %38 = vector.broadcast %28 : vector<1x256xf32> to vector<8x256xf32>
    %39 = arith.subf %24, %38 : vector<8x256xf32>
    %cst_21 = arith.constant 7.500000e-01 : f32
    %40 = vector.broadcast %cst_21 : f32 to vector<1x256xf32>
    %41 = arith.addf %37, %40 : vector<1x256xf32>
    %42 = math.rsqrt %41 : vector<1x256xf32>
    %43 = vector.broadcast %42 : vector<1x256xf32> to vector<8x256xf32>
    %44 = arith.mulf %39, %43 : vector<8x256xf32>
    %45 = vector.broadcast %5 : vector<1x256xf32> to vector<8x256xf32>
    %46 = arith.mulf %44, %45 : vector<8x256xf32>
    %47 = vector.broadcast %6 : vector<1x256xf32> to vector<8x256xf32>
    %48 = arith.addf %46, %47 : vector<8x256xf32>
    %cst_22 = arith.constant 0.000000e+00 : f32
    %49 = vector.broadcast %cst_22 : f32 to vector<8x256xf32>
    %50 = arith.cmpf oge, %48, %49 : vector<8x256xf32>
    %cst_23 = arith.constant 0.00999999977 : f32
    %51 = vector.broadcast %cst_23 : f32 to vector<8x256xf32>
    %52 = arith.mulf %51, %48 : vector<8x256xf32>
    %53 = arith.select %50, %48, %52 : vector<8x256xi1>, vector<8x256xf32>
    %c0_24 = arith.constant 0 : index
    %c0_25 = arith.constant 0 : index
    %54 = vector.load %arg3[%c0_24, %c0_25] : memref<256x512xbf16, #tpu.memory_space<vmem>>, vector<256x512xbf16>
    %55 = arith.truncf %53 : vector<8x256xf32> to vector<8x256xbf16>
    %cst_26 = arith.constant dense<0.000000e+00> : vector<8x512xf32>
    %56 = tpu.matmul %55, %54, %cst_26 {dimension_numbers = #tpu.dot_dimension_numbers<[1], [0], [0], [1], [0, 0, 1, 1], [], []>} : vector<8x256xbf16>, vector<256x512xbf16>, vector<8x512xf32> -> vector<8x512xf32>
    %cst_27 = arith.constant dense<0.000000e+00> : vector<512xf32>
    %57 = vector.multi_reduction <add>, %56, %cst_27 [0] : vector<8x512xf32> to vector<512xf32>
    %58 = vector.shape_cast %57 : vector<512xf32> to vector<1x512xf32>
    %cst_28 = arith.constant 8.000000e+00 : f32
    %59 = vector.broadcast %cst_28 : f32 to vector<1x512xf32>
    %60 = arith.divf %58, %59 : vector<1x512xf32>
    %61 = vector.broadcast %60 : vector<1x512xf32> to vector<8x512xf32>
    %62 = arith.subf %56, %61 : vector<8x512xf32>
    %63 = vector.broadcast %60 : vector<1x512xf32> to vector<8x512xf32>
    %64 = arith.subf %56, %63 : vector<8x512xf32>
    %65 = arith.mulf %62, %64 : vector<8x512xf32>
    %cst_29 = arith.constant dense<0.000000e+00> : vector<512xf32>
    %66 = vector.multi_reduction <add>, %65, %cst_29 [0] : vector<8x512xf32> to vector<512xf32>
    %67 = vector.shape_cast %66 : vector<512xf32> to vector<1x512xf32>
    %cst_30 = arith.constant 8.000000e+00 : f32
    %68 = vector.broadcast %cst_30 : f32 to vector<1x512xf32>
    %69 = arith.divf %67, %68 : vector<1x512xf32>
    %70 = vector.broadcast %60 : vector<1x512xf32> to vector<8x512xf32>
    %71 = arith.subf %56, %70 : vector<8x512xf32>
    %cst_31 = arith.constant 7.500000e-01 : f32
    %72 = vector.broadcast %cst_31 : f32 to vector<1x512xf32>
    %73 = arith.addf %69, %72 : vector<1x512xf32>
    %74 = math.rsqrt %73 : vector<1x512xf32>
    %75 = vector.broadcast %74 : vector<1x512xf32> to vector<8x512xf32>
    %76 = arith.mulf %71, %75 : vector<8x512xf32>
    %77 = vector.broadcast %7 : vector<1x512xf32> to vector<8x512xf32>
    %78 = arith.mulf %76, %77 : vector<8x512xf32>
    %79 = vector.broadcast %8 : vector<1x512xf32> to vector<8x512xf32>
    %80 = arith.addf %78, %79 : vector<8x512xf32>
    %cst_32 = arith.constant 0.000000e+00 : f32
    %81 = vector.broadcast %cst_32 : f32 to vector<8x512xf32>
    %82 = arith.cmpf oge, %80, %81 : vector<8x512xf32>
    %cst_33 = arith.constant 0.00999999977 : f32
    %83 = vector.broadcast %cst_33 : f32 to vector<8x512xf32>
    %84 = arith.mulf %83, %80 : vector<8x512xf32>
    %85 = arith.select %82, %80, %84 : vector<8x512xi1>, vector<8x512xf32>
    %c0_i32_34 = arith.constant 0 : i32
    %86 = tpu.memref_slice %arg10[%c0_i32_34] : memref<2x!tpu.dma_semaphore, #tpu.memory_space<semaphore_mem>> -> memref<1x!tpu.dma_semaphore, #tpu.memory_space<semaphore_mem>>
    %87 = tpu.memref_squeeze %86 : memref<1x!tpu.dma_semaphore, #tpu.memory_space<semaphore_mem>> -> memref<!tpu.dma_semaphore, #tpu.memory_space<semaphore_mem>>
    tpu.wait_dma2 semaphore(%87 : memref<!tpu.dma_semaphore, #tpu.memory_space<semaphore_mem>>) src(%arg4 : memref<512x1024xbf16, #tpu.memory_space<any>>) dst(%arg8 : memref<512x1024xbf16, #tpu.memory_space<vmem>>)
    %c0_35 = arith.constant 0 : index
    %c0_36 = arith.constant 0 : index
    %88 = vector.load %arg8[%c0_35, %c0_36] : memref<512x1024xbf16, #tpu.memory_space<vmem>>, vector<512x1024xbf16>
    %89 = arith.truncf %85 : vector<8x512xf32> to vector<8x512xbf16>
    %cst_37 = arith.constant dense<0.000000e+00> : vector<8x1024xf32>
    %90 = tpu.matmul %89, %88, %cst_37 {dimension_numbers = #tpu.dot_dimension_numbers<[1], [0], [0], [1], [0, 0, 1, 1], [], []>} : vector<8x512xbf16>, vector<512x1024xbf16>, vector<8x1024xf32> -> vector<8x1024xf32>
    %cst_38 = arith.constant dense<0.000000e+00> : vector<1024xf32>
    %91 = vector.multi_reduction <add>, %90, %cst_38 [0] : vector<8x1024xf32> to vector<1024xf32>
    %92 = vector.shape_cast %91 : vector<1024xf32> to vector<1x1024xf32>
    %cst_39 = arith.constant 8.000000e+00 : f32
    %93 = vector.broadcast %cst_39 : f32 to vector<1x1024xf32>
    %94 = arith.divf %92, %93 : vector<1x1024xf32>
    %95 = vector.broadcast %94 : vector<1x1024xf32> to vector<8x1024xf32>
    %96 = arith.subf %90, %95 : vector<8x1024xf32>
    %97 = vector.broadcast %94 : vector<1x1024xf32> to vector<8x1024xf32>
    %98 = arith.subf %90, %97 : vector<8x1024xf32>
    %99 = arith.mulf %96, %98 : vector<8x1024xf32>
    %cst_40 = arith.constant dense<0.000000e+00> : vector<1024xf32>
    %100 = vector.multi_reduction <add>, %99, %cst_40 [0] : vector<8x1024xf32> to vector<1024xf32>
    %101 = vector.shape_cast %100 : vector<1024xf32> to vector<1x1024xf32>
    %cst_41 = arith.constant 8.000000e+00 : f32
    %102 = vector.broadcast %cst_41 : f32 to vector<1x1024xf32>
    %103 = arith.divf %101, %102 : vector<1x1024xf32>
    %104 = vector.broadcast %94 : vector<1x1024xf32> to vector<8x1024xf32>
    %105 = arith.subf %90, %104 : vector<8x1024xf32>
    %cst_42 = arith.constant 7.500000e-01 : f32
    %106 = vector.broadcast %cst_42 : f32 to vector<1x1024xf32>
    %107 = arith.addf %103, %106 : vector<1x1024xf32>
    %108 = math.rsqrt %107 : vector<1x1024xf32>
    %109 = vector.broadcast %108 : vector<1x1024xf32> to vector<8x1024xf32>
    %110 = arith.mulf %105, %109 : vector<8x1024xf32>
    %111 = vector.broadcast %9 : vector<1x1024xf32> to vector<8x1024xf32>
    %112 = arith.mulf %110, %111 : vector<8x1024xf32>
    %113 = vector.broadcast %10 : vector<1x1024xf32> to vector<8x1024xf32>
    %114 = arith.addf %112, %113 : vector<8x1024xf32>
    %cst_43 = arith.constant 0.000000e+00 : f32
    %115 = vector.broadcast %cst_43 : f32 to vector<8x1024xf32>
    %116 = arith.cmpf oge, %114, %115 : vector<8x1024xf32>
    %cst_44 = arith.constant 0.00999999977 : f32
    %117 = vector.broadcast %cst_44 : f32 to vector<8x1024xf32>
    %118 = arith.mulf %117, %114 : vector<8x1024xf32>
    %119 = arith.select %116, %114, %118 : vector<8x1024xi1>, vector<8x1024xf32>
    %c1_i32_45 = arith.constant 1 : i32
    %120 = tpu.memref_slice %arg10[%c1_i32_45] : memref<2x!tpu.dma_semaphore, #tpu.memory_space<semaphore_mem>> -> memref<1x!tpu.dma_semaphore, #tpu.memory_space<semaphore_mem>>
    %121 = tpu.memref_squeeze %120 : memref<1x!tpu.dma_semaphore, #tpu.memory_space<semaphore_mem>> -> memref<!tpu.dma_semaphore, #tpu.memory_space<semaphore_mem>>
    tpu.wait_dma2 semaphore(%121 : memref<!tpu.dma_semaphore, #tpu.memory_space<semaphore_mem>>) src(%arg5 : memref<1024x896xbf16, #tpu.memory_space<any>>) dst(%arg9 : memref<1024x896xbf16, #tpu.memory_space<vmem>>)
    %c0_46 = arith.constant 0 : index
    %c0_47 = arith.constant 0 : index
    %122 = vector.load %arg9[%c0_46, %c0_47] : memref<1024x896xbf16, #tpu.memory_space<vmem>>, vector<1024x896xbf16>
    %123 = arith.truncf %119 : vector<8x1024xf32> to vector<8x1024xbf16>
    %cst_48 = arith.constant dense<0.000000e+00> : vector<8x896xf32>
    %124 = tpu.matmul %123, %122, %cst_48 {dimension_numbers = #tpu.dot_dimension_numbers<[1], [0], [0], [1], [0, 0, 1, 1], [], []>} : vector<8x1024xbf16>, vector<1024x896xbf16>, vector<8x896xf32> -> vector<8x896xf32>
    %125 = vector.broadcast %11 : vector<1x896xf32> to vector<8x896xf32>
    %126 = arith.addf %124, %125 : vector<8x896xf32>
    %127 = math.tanh %126 : vector<8x896xf32>
    %128 = arith.truncf %127 : vector<8x896xf32> to vector<8x896xbf16>
    %c0_49 = arith.constant 0 : index
    %c0_50 = arith.constant 0 : index
    %129 = vector.load %arg7[%c0_49, %c0_50] : memref<8x896xbf16, #tpu.memory_space<vmem>>, vector<8x896xbf16>
    tpu.vector_store %arg7[%c0_49, %c0_50], %128 {strides = array<i32>} : memref<8x896xbf16, #tpu.memory_space<vmem>>, vector<8x896xbf16>,
    return
  }
}

</mosaic_0001>

<bundles_post_ra>
// kernel: generator_forward.1
= control target key start
LH: loop header
LB: loop body
LE: loop exit
PB: predicated region body
PF: predicated region fallthrough
CT: control target
= control target key end

     0   :  { %12 = vsyncpa [#allocation6], 0  ;;  %s4015_s0 = inlined_call_operand.vmem [shape: bf16[8,16], index: 0, kind: input, shape index: {}]   ;;  %s4016_s1 = inlined_call_operand.hbm [shape: bf16[16,128], index: 1, kind: input, shape index: {}]   ;;  %s4017_s2 = inlined_call_operand.hbm [shape: bf16[128,256], index: 2, kind: input, shape index: {}]   ;;  %s4018_s3 = inlined_call_operand.hbm [shape: bf16[256,512], index: 3, kind: input, shape index: {}]   ;;  %s4019_s4 = inlined_call_operand.hbm [shape: bf16[512,1024], index: 4, kind: input, shape index: {}]   ;;  %s4020_s5 = inlined_call_operand.hbm [shape: bf16[1024,896], index: 5, kind: input, shape index: {}]   ;;  %s4021_s6 = inlined_call_operand.hbm [shape: f32[8,1024], index: 6, kind: input, shape index: {}]   ;;  %s4022_s7 = inlined_call_operand.vmem [shape: bf16[8,896], index: 7, kind: output, shape index: {}]  }
   0x1   :  { %13 = vsyncpa [#allocation8], 0 }
   0x2   :  { %14 = vsyncpa [#allocation11], 0  ;;  %s3648_s24 = smov [#allocation7]   ;;  %s3550_s28 = scalar_lea.hbm %s4017_s2, 2048 }
   0x3   :  { %s34_s25 = sshll.u32 %s3648_s24, 4  ;;  %p3551_p0 = scmp.ne.s32.totalorder %s4017_s2, %s3550_s28  ;;  %s35_s25 = int_to_ptr.vmem [resolvable:$true] %s34_s25 }
   0x4   :  { %p3554_p1 = scmp.lt.u32.totalorder %s3550_s28, %s4017_s2 }
   0x6   :  { %p3556_p2 = pnand %p3554_p1, %p3551_p0 }
   0x8   :  { %3559 = shalt.err (!%p3556_p2)
}
   0x9   :  { %s3560_s10 = scalar_lea.vmem %s35_s25, 2048  ;;  %p3565_p4 = scmp.lt.s32.totalorder %s35_s25, %s35_s25 }
   0xa   :  { %p3561_p3 = scmp.ne.s32.totalorder %s35_s25, %s3560_s10  ;;  %p3566_p5 = scmp.lt.s32.totalorder %s3560_s10, %s3560_s10 }
   0xc   :  { %p3567_p6 = por %p3566_p5, %p3565_p4 }
   0xe   :  { %p3568_p7 = pnand %p3567_p6, %p3561_p3 }
  0x10   :  { %3571 = shalt.err (!%p3568_p7)
}
  0x11   :  { %s3649_s11 = smov 128   ;;  %s3650_s12 = smov 8  }
  0x12   :  { %40 = dma.hbm_to_vmem [thread:$0]  %s4017_s2, 2048, %s35_s25, [#allocation8], %s3649_s11, %s3649_s11, %s3650_s12  }
  0x13   :  { %s3651_s15 = smov [#allocation5]   ;;  %s3572_s19 = scalar_lea.hbm %s4016_s1, 128 }
  0x14   :  { %s22_s16 = sshll.u32 %s3651_s15, 4  ;;  %p3573_p8 = scmp.ne.s32.totalorder %s4016_s1, %s3572_s19  ;;  %s23_s16 = int_to_ptr.vmem [resolvable:$true] %s22_s16 }
  0x15   :  { %p3576_p9 = scmp.lt.u32.totalorder %s3572_s19, %s4016_s1 }
  0x17   :  { %p3578_p10 = pnand %p3576_p9, %p3573_p8 }
  0x19   :  { %3581 = shalt.err (!%p3578_p10)
}
  0x1a   :  { %s3582_s24 = scalar_lea.vmem %s23_s16, 128  ;;  %p3587_p12 = scmp.lt.s32.totalorder %s23_s16, %s23_s16 }
  0x1b   :  { %p3583_p11 = scmp.ne.s32.totalorder %s23_s16, %s3582_s24  ;;  %p3588_p13 = scmp.lt.s32.totalorder %s3582_s24, %s3582_s24 }
  0x1d   :  { %p3589_p0 = por %p3588_p13, %p3587_p12 }
  0x1f   :  { %p3590_p1 = pnand %p3589_p0, %p3583_p11 }
  0x21   :  { %3593 = shalt.err (!%p3590_p1)
}
  0x22   :  { %s3652_s2 = smov 64   ;;  %s3653_s25 = smov 4  }
  0x23   :  { %28 = dma.hbm_to_vmem [thread:$0]  %s4016_s1, 128, %s23_s16, [#allocation6], %s3652_s2, %s3652_s2, %s3653_s25  }
  0x24   :  { %s3654_s28 = smov [#allocation9]   ;;  %s3594_s9 = scalar_lea.hbm %s4018_s3, 8192 }
  0x25   :  { %s46_s29 = sshll.u32 %s3654_s28, 4  ;;  %p3595_p2 = scmp.ne.s32.totalorder %s4018_s3, %s3594_s9  ;;  %s47_s29 = int_to_ptr.vmem [resolvable:$true] %s46_s29 }
  0x26   :  { %p3598_p3 = scmp.lt.u32.totalorder %s3594_s9, %s4018_s3 }
  0x28   :  { %p3600_p4 = pnand %p3598_p3, %p3595_p2 }
  0x2a   :  { %3603 = shalt.err (!%p3600_p4)
}
  0x2b   :  { %s3604_s17 = scalar_lea.vmem %s47_s29, 8192  ;;  %p3609_p6 = scmp.lt.s32.totalorder %s47_s29, %s47_s29 }
  0x2c   :  { %p3605_p5 = scmp.ne.s32.totalorder %s47_s29, %s3604_s17  ;;  %p3610_p7 = scmp.lt.s32.totalorder %s3604_s17, %s3604_s17 }
  0x2e   :  { %p3611_p8 = por %p3610_p7, %p3609_p6 }
  0x30   :  { %p3612_p9 = pnand %p3611_p8, %p3605_p5 }
  0x32   :  { %3615 = shalt.err (!%p3612_p9)
}
  0x33   :  { %s3655_s1 = smov 256   ;;  %s3656_s16 = smov 16  }
  0x34   :  { %52 = dma.hbm_to_vmem [thread:$0]  %s4018_s3, 8192, %s47_s29, [#allocation8], %s3655_s1, %s3655_s1, %s3656_s16  }
  0x35   :  { %s3657_s20 = smov [#allocation10]   ;;  %s3616_s24 = scalar_lea.hbm %s4021_s6, 1024 }
  0x36   :  { %s59_s21 = sshll.u32 %s3657_s20, 4  ;;  %p3617_p10 = scmp.ne.s32.totalorder %s4021_s6, %s3616_s24  ;;  %s60_s21 = int_to_ptr.vmem [resolvable:$true] %s59_s21 }
  0x37   :  { %p3620_p11 = scmp.lt.u32.totalorder %s3616_s24, %s4021_s6 }
  0x39   :  { %p3622_p12 = pnand %p3620_p11, %p3617_p10 }
  0x3b   :  { %3625 = shalt.err (!%p3622_p12)
}
  0x3c   :  { %s3626_s8 = scalar_lea.vmem %s60_s21, 1024  ;;  %p3631_p0 = scmp.lt.s32.totalorder %s60_s21, %s60_s21 }
  0x3d   :  { %p3627_p13 = scmp.ne.s32.totalorder %s60_s21, %s3626_s8  ;;  %p3632_p1 = scmp.lt.s32.totalorder %s3626_s8, %s3626_s8 }
  0x3f   :  { %p3633_p2 = por %p3632_p1, %p3631_p0 }
  0x41   :  { %p3634_p3 = pnand %p3633_p2, %p3627_p13 }
  0x43   :  { %3637 = shalt.err (!%p3634_p3)
}
  0x44   :  { %62 = dma.hbm_to_vmem [thread:$0]  %s4021_s6, 1024, %s60_s21, [#allocation11]  }
  0x45   :  { %3638 = dma.done.wait [#allocation6], 128  }
  0x46   :  { %3639 = vsyncadd [#allocation6], 4294967168 }
  0x47   :  { %3640 = dma.done.wait [#allocation8], 10240  }
  0x48   :  { %3641 = vsyncadd [#allocation8], 4294957056 }
  0x49   :  { %3642 = dma.done.wait [#allocation11], 1024  }
  0x4a   :  { %3643 = vsyncadd [#allocation11], 4294966272  ;;  %s80_s9 = sld [smem:[#allocation0]]   ;;  %s3658_s10 = smov 1024   ;;  %v3659_v0 = vmov 0.0   ;;  %vm3660_vm0 = vmmov 0  }
  0x4b   :  { %92 = sst [smem:[#allocation13]] %s3658_s10  ;;  %3298 = vmatprep.subr.bf16.mxu0 %v3659_v0  ;;  %3300 = vmatprep.mubr.msk.bf16.mxu0 %vm3660_vm0, %v3659_v0  ;;  %s3661_s13 = smov [#allocation2]   ;;  %vm176_vm1 = vcmask 130048   ;;  %v3672_v28 = vmov 0  }
  0x4c   :  { %94 = sst [smem:[#allocation13 + $0x1]] %s3658_s10  ;;  %s88_s14 = sshll.u32 %s3661_s13, 4  ;;  %352 = vmatprep.mubr.bf16.mxu1 %v3672_v28  ;;  %s89_s14 = int_to_ptr.vmem [resolvable:$true] %s88_s14 }
  0x4d   :  { %96 = sst [smem:[#allocation13 + $0x2]] %s3650_s12  ;;  %s3662_s6 = smov 512  }
  0x4e   :  { %98 = sst [smem:[#allocation13 + $0x3]] %s3652_s2  ;;  %s3663_s1 = smov 2  }
  0x4f   :  { %100 = sst [smem:[#allocation13 + $0x4]] %s3649_s11  ;;  %s3664_s16 = smov [#allocation4]  }
  0x50   :  { %104 = sst [smem:[#allocation13 + $0x6]] %s3662_s6  ;;  %s3112_s15 = sshll.u32 %s80_s9, 26 }
  0x51   :  { %106 = sst [smem:[#allocation13 + $0x7]] %s3652_s2  ;;  %s3113_s17 = sadd.s32 134217728, %s3112_s15 }
  0x52   :  { %108 = sst [smem:[#allocation13 + $0x8]] %s3653_s25  ;;  %s3665_s18 = smov [#allocation12]  }
  0x53   :  { %102 = sst [smem:[#allocation13 + $0x5]] %s3663_s1  ;;  %s3666_s20 = smov 896  }
  0x54   :  { %110 = dma.general %s4019_s4, 32768, %s89_s14, %s3664_s16, %s3665_s18, [#allocation13], %s3113_s17, 0  }
  0x55   :  { %127 = sst [smem:[#allocation15]] %s3666_s20  ;;  %s3667_s21 = smov 7  }
  0x56   :  { %129 = sst [smem:[#allocation15 + $0x1]] %s3666_s20  ;;  %s3668_s22 = smov [#allocation3]  }
  0x57   :  { %131 = sst [smem:[#allocation15 + $0x2]] %s3667_s21  ;;  %s123_s23 = sshll.u32 %s3668_s22, 4  ;;  %s124_s23 = int_to_ptr.vmem [resolvable:$true] %s123_s23 }
  0x58   :  { %133 = sst [smem:[#allocation15 + $0x3]] %s3652_s2  ;;  %s3669_s24 = smov 448  }
  0x59   :  { %135 = sst [smem:[#allocation15 + $0x4]] %s3649_s11  ;;  %s3670_s4 = smov [#allocation4 + $0x1]  }
  0x5a   :  { %137 = sst [smem:[#allocation15 + $0x5]] %s3663_s1  ;;  %s3671_s26 = smov [#allocation14]  }
  0x5b   :  { %139 = sst [smem:[#allocation15 + $0x6]] %s3669_s24 }
  0x5c   :  { %141 = sst [smem:[#allocation15 + $0x7]] %s3652_s2 }
  0x5d   :  { %143 = sst [smem:[#allocation15 + $0x8]] %s3653_s25 }
  0x5e   :  { %145 = dma.general %s4020_s5, 57344, %s124_s23, %s3670_s4, %s3671_s26, [#allocation15], %s3113_s17, 0  }
  0x5f   :  { %v156_v1 = vld [vmem:[#allocation10 + $0x5] ss:$8 sm:$0xf]  ;;  %v160_v4 = vld [vmem:[#allocation10 + $0x6] ss:$8 sm:$0xf] }
  0x60   :  { %v157_v2 = vld [vmem:[#allocation10 + $0x5] ss:$8 sm:$0xf0]  ;;  %v161_v5 = vld [vmem:[#allocation10 + $0x6] ss:$8 sm:$0xf0] }
  0x61   :  { %v3782_v3 = vor.u32 %v157_v2, %v156_v1  ;;  %v3784_v6 = vor.u32 %v161_v5, %v160_v4  ;;  %v164_v7 = vld [vmem:[#allocation10 + $0x7] ss:$8 sm:$0xf]  ;;  %v167_v11 = vld [vmem:[%s4015_s0] sm:$0xf] }
  0x62   :  { %v165_v8 = vld [vmem:[#allocation10 + $0x7] ss:$8 sm:$0xf0]  ;;  %v3390_v13 = vld [vmem:[#allocation7] ss:$8 sps:$4 sm:$0xff]  }
  0x63   :  { %v3786_v9 = vor.u32 %v165_v8, %v164_v7  ;;  %v3387_v10 = vld [vmem:[#allocation5] sm:$0xff]   ;;  %v3388_v12 = vld [vmem:[#allocation7 + $0x4] ss:$8 sps:$4 sm:$0xff]   ;;  %v3396_v17 = vld [vmem:[#allocation7 + $0x20] ss:$8 sps:$4 sm:$0xff]  }
  0x64   :  { %3299 = vmatpush3.bf16.msra.mxu0 %v3387_v10  ;;  %v3391_v14 = vld [vmem:[#allocation7 + $0x14] ss:$8 sps:$4 sm:$0xff]   ;;  %320 = vmatprep.subr.bf16.mxu1 %v3388_v12  ;;  %v3393_v15 = vld [vmem:[#allocation7 + $0x10] ss:$8 sps:$4 sm:$0xff]   ;;  %v3394_v16 = vld [vmem:[#allocation7 + $0x24] ss:$8 sps:$4 sm:$0xff]  }
  0x65   :  { %321 = vmatpush1.bf16.msra.mxu1 %v3390_v13  ;;  %v3397_v18 = vld [vmem:[#allocation7 + $0x34] ss:$8 sps:$4 sm:$0xff]   ;;  %v3399_v19 = vld [vmem:[#allocation7 + $0x30] ss:$8 sps:$4 sm:$0xff]   ;;  %v3400_v20 = vld [vmem:[#allocation7 + $0x44] ss:$8 sps:$4 sm:$0xff]  }
  0x66   :  { %322 = vmatprep.subr.bf16.mxu1 %v3391_v14  ;;  %v3402_v21 = vld [vmem:[#allocation7 + $0x40] ss:$8 sps:$4 sm:$0xff]   ;;  %v3403_v22 = vld [vmem:[#allocation7 + $0x54] ss:$8 sps:$4 sm:$0xff]   ;;  %v3405_v23 = vld [vmem:[#allocation7 + $0x50] ss:$8 sps:$4 sm:$0xff]  }
  0x67   :  { %3301 = vmatmul.mubr.msk.bf16.vlgmr.msra.gmra.mrb[0].mxu0 %vm176_vm1, %v167_v11  ;;  %v3406_v24 = vld [vmem:[#allocation7 + $0x64] ss:$8 sps:$4 sm:$0xff]   ;;  %v3408_v25 = vld [vmem:[#allocation7 + $0x60] ss:$8 sps:$4 sm:$0xff]   ;;  %v3409_v26 = vld [vmem:[#allocation7 + $0x74] ss:$8 sps:$4 sm:$0xff]  }
  0x68   :  { %v3411_v27 = vld [vmem:[#allocation7 + $0x70] ss:$8 sps:$4 sm:$0xff]   ;;  %v3414_v29 = vld [vmem:[#allocation9 + $0x4] ss:$16 sps:$4 sm:$0xff]   ;;  %v146_v30 = vld [vmem:[#allocation10] ss:$0 sm:$0xff] }
  0x69   :  { %323 = vmatpush1.bf16.msra.mxu1 %v3393_v15  ;;  %v3412_v38 = vld [vmem:[#allocation9] ss:$16 sps:$4 sm:$0xff]   ;;  %v3417_v40 = vld [vmem:[#allocation9 + $0x24] ss:$16 sps:$4 sm:$0xff]   ;;  %v3462_v8 = vld [vmem:[#allocation9 + $0xc] ss:$16 sps:$4 sm:$0xff]  }
  0x6a   :  { %324 = vmatprep.subr.bf16.mxu1 %v3394_v16  ;;  %v3415_v41 = vld [vmem:[#allocation9 + $0x20] ss:$16 sps:$4 sm:$0xff]   ;;  %v3420_v42 = vld [vmem:[#allocation9 + $0x44] ss:$16 sps:$4 sm:$0xff]  }
  0x6b   :  { %v3418_v43 = vld [vmem:[#allocation9 + $0x40] ss:$16 sps:$4 sm:$0xff]   ;;  %v3423_v44 = vld [vmem:[#allocation9 + $0x64] ss:$16 sps:$4 sm:$0xff]  }
  0x6c   :  { %v3421_v45 = vld [vmem:[#allocation9 + $0x60] ss:$16 sps:$4 sm:$0xff]   ;;  %v3426_v46 = vld [vmem:[#allocation9 + $0x84] ss:$16 sps:$4 sm:$0xff]  }
  0x6d   :  { %325 = vmatpush1.bf16.msra.mxu1 %v3396_v17  ;;  %v3424_v47 = vld [vmem:[#allocation9 + $0x80] ss:$16 sps:$4 sm:$0xff]   ;;  %v3429_v48 = vld [vmem:[#allocation9 + $0xa4] ss:$16 sps:$4 sm:$0xff]  }
  0x6e   :  { %326 = vmatprep.subr.bf16.mxu1 %v3397_v18  ;;  %v3427_v49 = vld [vmem:[#allocation9 + $0xa0] ss:$16 sps:$4 sm:$0xff]   ;;  %v3432_v50 = vld [vmem:[#allocation9 + $0xc4] ss:$16 sps:$4 sm:$0xff]  }
  0x6f   :  { %v3430_v51 = vld [vmem:[#allocation9 + $0xc0] ss:$16 sps:$4 sm:$0xff]   ;;  %v3435_v52 = vld [vmem:[#allocation9 + $0xe4] ss:$16 sps:$4 sm:$0xff]  }
  0x70   :  { %v3433_v53 = vld [vmem:[#allocation9 + $0xe0] ss:$16 sps:$4 sm:$0xff]   ;;  %v3438_v54 = vld [vmem:[#allocation9 + $0x104] ss:$16 sps:$4 sm:$0xff]  }
  0x71   :  { %327 = vmatpush1.bf16.msra.mxu1 %v3399_v19  ;;  %v3436_v55 = vld [vmem:[#allocation9 + $0x100] ss:$16 sps:$4 sm:$0xff]   ;;  %v3441_v56 = vld [vmem:[#allocation9 + $0x124] ss:$16 sps:$4 sm:$0xff]  }
  0x72   :  { %328 = vmatprep.subr.bf16.mxu1 %v3400_v20  ;;  %v3439_v57 = vld [vmem:[#allocation9 + $0x120] ss:$16 sps:$4 sm:$0xff]   ;;  %v3444_v58 = vld [vmem:[#allocation9 + $0x144] ss:$16 sps:$4 sm:$0xff]  }
  0x73   :  { %v3442_v59 = vld [vmem:[#allocation9 + $0x140] ss:$16 sps:$4 sm:$0xff]   ;;  %v3447_v60 = vld [vmem:[#allocation9 + $0x164] ss:$16 sps:$4 sm:$0xff]  }
  0x74   :  { %v3445_v61 = vld [vmem:[#allocation9 + $0x160] ss:$16 sps:$4 sm:$0xff]   ;;  %v3450_v62 = vld [vmem:[#allocation9 + $0x184] ss:$16 sps:$4 sm:$0xff]  }
  0x75   :  { %329 = vmatpush1.bf16.msra.mxu1 %v3402_v21  ;;  %v3448_v63 = vld [vmem:[#allocation9 + $0x180] ss:$16 sps:$4 sm:$0xff]   ;;  %v3453_v0 = vld [vmem:[#allocation9 + $0x1a4] ss:$16 sps:$4 sm:$0xff]  }
  0x76   :  { %330 = vmatprep.subr.bf16.mxu1 %v3403_v22  ;;  %v3451_v1 = vld [vmem:[#allocation9 + $0x1a0] ss:$16 sps:$4 sm:$0xff]   ;;  %v3456_v2 = vld [vmem:[#allocation9 + $0x1c4] ss:$16 sps:$4 sm:$0xff]  }
  0x77   :  { %v3454_v4 = vld [vmem:[#allocation9 + $0x1c0] ss:$16 sps:$4 sm:$0xff]   ;;  %v3459_v5 = vld [vmem:[#allocation9 + $0x1e4] ss:$16 sps:$4 sm:$0xff]  }
  0x78   :  { %v3457_v7 = vld [vmem:[#allocation9 + $0x1e0] ss:$16 sps:$4 sm:$0xff]  }
  0x79   :  { %331 = vmatpush1.bf16.msra.mxu1 %v3405_v23 }
  0x7a   :  { %332 = vmatprep.subr.bf16.mxu1 %v3406_v24 }
  0x7d   :  { %333 = vmatpush1.bf16.msra.mxu1 %v3408_v25 }
  0x7e   :  { %334 = vmatprep.subr.bf16.mxu1 %v3409_v26 }
  0x81   :  { %335 = vmatpush1.bf16.msra.mxu1 %v3411_v27 }
  0x82   :  { %818 = vmatprep.subr.bf16.mxu1 %v3414_v29 }
 0x13a   :  { %v214_v31 = vpop.f32.mrb[0].mxu0 }
 0x13b   :  { %v215_v32 = vadd.f32 %v214_v31, %v146_v30  ;;  %v3302_v33 = vpop.f32.mrb[1].mxu0 }
 0x13c   :  { %v217_v34 = vpop.f32.mrb[2].mxu0 }
 0x13d   :  { %vm220_vm2 = vcmp.ge.f32.partialorder %v215_v32, 0.0  ;;  %v221_v35 = vmul.f32 0.01, %v215_v32  ;;  %v3303_v36 = vpop.f32.mrb[3].mxu0 }
 0x13f   :  { %v222_v37 = vsel %vm220_vm2, %v215_v32, %v221_v35 }
 0x140   :  { %v239_v39 = vpack.c.bf16 %v222_v37, %v222_v37 }
 0x142   :  { %353 = vmatmul.mubr.bf16.vlgmr.msra.gmra.mrb[0].mxu1 %v239_v39 }
 0x143   :  { %819 = vmatpush1.bf16.msra.mxu1 %v3412_v38 }
 0x144   :  { %820 = vmatprep.subr.bf16.mxu1 %v3417_v40 }
 0x147   :  { %821 = vmatpush1.bf16.msra.mxu1 %v3415_v41 }
 0x148   :  { %822 = vmatprep.subr.bf16.mxu1 %v3420_v42 }
 0x14b   :  { %823 = vmatpush1.bf16.msra.mxu1 %v3418_v43 }
 0x14c   :  { %824 = vmatprep.subr.bf16.mxu1 %v3423_v44 }
 0x14f   :  { %825 = vmatpush1.bf16.msra.mxu1 %v3421_v45  ;;  %v401_v45 = vlaneseq }
 0x150   :  { %826 = vmatprep.subr.bf16.mxu1 %v3426_v46 }
 0x153   :  { %827 = vmatpush1.bf16.msra.mxu1 %v3424_v47 }
 0x154   :  { %828 = vmatprep.subr.bf16.mxu1 %v3429_v48 }
 0x157   :  { %829 = vmatpush1.bf16.msra.mxu1 %v3427_v49  ;;  %v3791_v49 = vshrl.u32 %v401_v45, 7 }
 0x158   :  { %830 = vmatprep.subr.bf16.mxu1 %v3432_v50 }
 0x159   :  { %v3794_v50 = vsub.s32 0, %v3791_v49 }
 0x15b   :  { %831 = vmatpush1.bf16.msra.mxu1 %v3430_v51  ;;  %v148_v51 = vld [vmem:[#allocation10 + $0x1] ss:$8 sm:$0x3] }
 0x15c   :  { %832 = vmatprep.subr.bf16.mxu1 %v3435_v52  ;;  %v3797_v52 = vsub.s32 1, %v3791_v49 }
 0x15f   :  { %833 = vmatpush1.bf16.msra.mxu1 %v3433_v53  ;;  %v150_v53 = vld [vmem:[#allocation10 + $0x2] ss:$8 sm:$0x3] }
 0x160   :  { %834 = vmatprep.subr.bf16.mxu1 %v3438_v54  ;;  %v404_v54 = vrot.slane %v148_v51, %v3794_v50 }
 0x163   :  { %835 = vmatpush1.bf16.msra.mxu1 %v3436_v55 }
 0x164   :  { %836 = vmatprep.subr.bf16.mxu1 %v3441_v56  ;;  %v408_v56 = vrot.slane %v148_v51, %v3797_v52 }
 0x167   :  { %837 = vmatpush1.bf16.msra.mxu1 %v3439_v57 }
 0x168   :  { %838 = vmatprep.subr.bf16.mxu1 %v3444_v58 }
 0x16b   :  { %839 = vmatpush1.bf16.msra.mxu1 %v3442_v59  ;;  %v417_v59 = vrot.slane %v150_v53, %v3794_v50 }
 0x16c   :  { %840 = vmatprep.subr.bf16.mxu1 %v3447_v60 }
 0x16f   :  { %841 = vmatpush1.bf16.msra.mxu1 %v3445_v61  ;;  %v421_v61 = vrot.slane %v150_v53, %v3797_v52 }
 0x170   :  { %842 = vmatprep.subr.bf16.mxu1 %v3450_v62 }
 0x173   :  { %843 = vmatpush1.bf16.msra.mxu1 %v3448_v63 }
 0x174   :  { %844 = vmatprep.subr.bf16.mxu1 %v3453_v0 }
 0x177   :  { %845 = vmatpush1.bf16.msra.mxu1 %v3451_v1 }
 0x178   :  { %846 = vmatprep.subr.bf16.mxu1 %v3456_v2 }
 0x17b   :  { %847 = vmatpush1.bf16.msra.mxu1 %v3454_v4 }
 0x17c   :  { %848 = vmatprep.subr.bf16.mxu1 %v3459_v5 }
 0x17f   :  { %849 = vmatpush1.bf16.msra.mxu1 %v3457_v7 }
 0x180   :  { %859 = vmatprep.subr.bf16.mxu1 %v3462_v8 }
 0x215   :  { %v354_v10 = vpop.f32.mrb[0].mxu1 }
 0x216   :  { %v361_v11 = vrot.slane %v354_v10, 4  ;;  %v356_v12 = vpop.f32.mrb[1].mxu1 }
 0x217   :  { %v367_v13 = vrot.slane %v356_v12, 4  ;;  %v358_v14 = vpop.f32.mrb[2].mxu1 }
 0x218   :  { %v362_v15 = vadd.f32 %v361_v11, %v354_v10  ;;  %v359_v16 = vpop.f32.mrb[3].mxu1  ;;  %v3468_v14 = vld [vmem:[#allocation9 + $0x4c] ss:$16 sps:$4 sm:$0xff]  }
 0x219   :  { %v368_v17 = vadd.f32 %v367_v13, %v356_v12  ;;  %v3463_v13 = vld [vmem:[#allocation9 + $0x28] ss:$16 sps:$4 sm:$0xff]   ;;  %v3471_v16 = vld [vmem:[#allocation9 + $0x6c] ss:$16 sps:$4 sm:$0xff]  }
 0x21a   :  { %v363_v18 = vrot.slane %v362_v15, 2 }
 0x21b   :  { %v369_v19 = vrot.slane %v368_v17, 2 }
 0x21c   :  { %v364_v20 = vadd.f32 %v363_v18, %v362_v15  ;;  %v3466_v15 = vld [vmem:[#allocation9 + $0x48] ss:$16 sps:$4 sm:$0xff]   ;;  %v3474_v18 = vld [vmem:[#allocation9 + $0x8c] ss:$16 sps:$4 sm:$0xff]  }
 0x21d   :  { %v370_v21 = vadd.f32 %v369_v19, %v368_v17  ;;  %v3469_v17 = vld [vmem:[#allocation9 + $0x68] ss:$16 sps:$4 sm:$0xff]  }
 0x21e   :  { %v365_v22 = vrot.slane %v364_v20, 1  ;;  %v3472_v19 = vld [vmem:[#allocation9 + $0x88] ss:$16 sps:$4 sm:$0xff]  }
 0x21f   :  { %v371_v23 = vrot.slane %v370_v21, 1 }
 0x220   :  { %v366_v24 = vadd.f32 %v365_v22, %v364_v20  ;;  %v3477_v20 = vld [vmem:[#allocation9 + $0xac] ss:$16 sps:$4 sm:$0xff]  }
 0x221   :  { %v372_v25 = vadd.f32 %v371_v23, %v370_v21  ;;  %v3475_v21 = vld [vmem:[#allocation9 + $0xa8] ss:$16 sps:$4 sm:$0xff]   ;;  %v3480_v22 = vld [vmem:[#allocation9 + $0xcc] ss:$16 sps:$4 sm:$0xff]  }
 0x222   :  { %v374_v26 = vmul.f32 0.125, %v366_v24  ;;  %v3478_v23 = vld [vmem:[#allocation9 + $0xc8] ss:$16 sps:$4 sm:$0xff]   ;;  %v3483_v24 = vld [vmem:[#allocation9 + $0xec] ss:$16 sps:$4 sm:$0xff]  }
 0x223   :  { %v375_v27 = vmul.f32 0.125, %v372_v25  ;;  %v3481_v25 = vld [vmem:[#allocation9 + $0xe8] ss:$16 sps:$4 sm:$0xff]  }
 0x224   :  { %v376_v28 = vsub.f32 %v354_v10, %v374_v26  ;;  %v3460_v10 = vld [vmem:[#allocation9 + $0x8] ss:$16 sps:$4 sm:$0xff]   ;;  %v3486_v26 = vld [vmem:[#allocation9 + $0x10c] ss:$16 sps:$4 sm:$0xff]  }
 0x225   :  { %v377_v29 = vsub.f32 %v356_v12, %v375_v27  ;;  %v3465_v12 = vld [vmem:[#allocation9 + $0x2c] ss:$16 sps:$4 sm:$0xff]   ;;  %v3484_v27 = vld [vmem:[#allocation9 + $0x108] ss:$16 sps:$4 sm:$0xff]  }
 0x226   :  { %v378_v30 = vmul.f32 %v376_v28, %v376_v28 }
 0x227   :  { %v379_v31 = vmul.f32 %v377_v29, %v377_v29 }
 0x228   :  { %v380_v32 = vrot.slane %v378_v30, 4 }
 0x229   :  { %v386_v33 = vrot.slane %v379_v31, 4 }
 0x22a   :  { %v381_v34 = vadd.f32 %v380_v32, %v378_v30  ;;  %v3492_v30 = vld [vmem:[#allocation9 + $0x14c] ss:$16 sps:$4 sm:$0xff]  }
 0x22b   :  { %v387_v35 = vadd.f32 %v386_v33, %v379_v31  ;;  %v3490_v31 = vld [vmem:[#allocation9 + $0x148] ss:$16 sps:$4 sm:$0xff]   ;;  %v3495_v32 = vld [vmem:[#allocation9 + $0x16c] ss:$16 sps:$4 sm:$0xff]  }
 0x22c   :  { %v382_v36 = vrot.slane %v381_v34, 2  ;;  %v3493_v33 = vld [vmem:[#allocation9 + $0x168] ss:$16 sps:$4 sm:$0xff]  }
 0x22d   :  { %v388_v37 = vrot.slane %v387_v35, 2 }
 0x22e   :  { %v383_v38 = vadd.f32 %v382_v36, %v381_v34  ;;  %v3498_v34 = vld [vmem:[#allocation9 + $0x18c] ss:$16 sps:$4 sm:$0xff]  }
 0x22f   :  { %v389_v39 = vadd.f32 %v388_v37, %v387_v35  ;;  %v3496_v35 = vld [vmem:[#allocation9 + $0x188] ss:$16 sps:$4 sm:$0xff]   ;;  %v3501_v36 = vld [vmem:[#allocation9 + $0x1ac] ss:$16 sps:$4 sm:$0xff]  }
 0x230   :  { %v384_v40 = vrot.slane %v383_v38, 1  ;;  %v3499_v37 = vld [vmem:[#allocation9 + $0x1a8] ss:$16 sps:$4 sm:$0xff]  }
 0x231   :  { %v390_v41 = vrot.slane %v389_v39, 1 }
 0x232   :  { %v385_v42 = vadd.f32 %v384_v40, %v383_v38  ;;  %v3504_v38 = vld [vmem:[#allocation9 + $0x1cc] ss:$16 sps:$4 sm:$0xff]  }
 0x233   :  { %v391_v43 = vadd.f32 %v390_v41, %v389_v39  ;;  %v3502_v39 = vld [vmem:[#allocation9 + $0x1c8] ss:$16 sps:$4 sm:$0xff]   ;;  %v3507_v40 = vld [vmem:[#allocation9 + $0x1ec] ss:$16 sps:$4 sm:$0xff]  }
 0x234   :  { %v392_v44 = vmul.f32 0.125, %v385_v42  ;;  %v3505_v41 = vld [vmem:[#allocation9 + $0x1e8] ss:$16 sps:$4 sm:$0xff]  }
 0x235   :  { %v393_v46 = vmul.f32 0.125, %v391_v43 }
 0x236   :  { %v394_v47 = vadd.f32 0.75, %v392_v44 }
 0x237   :  { %v395_v48 = vadd.f32 0.75, %v393_v46 }
 0x238   :  { %3508 = vrsqrt.f32 %v394_v47 }
 0x239   :  { %3510 = vrsqrt.f32 %v395_v48 }
 0x242   :  { %v3509_v55 = vpop.eup %3508 }
 0x243   :  { %v3511_v57 = vpop.eup %3510  ;;  %v398_v58 = vmul.f32 %v3509_v55, %v376_v28  ;;  %v3489_v28 = vld [vmem:[#allocation9 + $0x12c] ss:$16 sps:$4 sm:$0xff]  }
 0x244   :  { %v399_v60 = vmul.f32 %v3511_v57, %v377_v29  ;;  %v3487_v29 = vld [vmem:[#allocation9 + $0x128] ss:$16 sps:$4 sm:$0xff]  }
 0x245   :  { %v411_v62 = vmul.f32 %v404_v54, %v398_v58 }
 0x246   :  { %v412_v63 = vmul.f32 %v408_v56, %v399_v60 }
 0x247   :  { %v424_v0 = vadd.f32 %v417_v59, %v411_v62 }
 0x248   :  { %v425_v1 = vadd.f32 %v421_v61, %v412_v63 }
 0x249   :  { %vm426_vm3 = vcmp.ge.f32.partialorder %v424_v0, 0.0  ;;  %v428_v2 = vmul.f32 0.01, %v424_v0 }
 0x24a   :  { %vm427_vm4 = vcmp.ge.f32.partialorder %v425_v1, 0.0  ;;  %v429_v4 = vmul.f32 0.01, %v425_v1 }
 0x24b   :  { %v430_v5 = vsel %vm426_vm3, %v424_v0, %v428_v2 }
 0x24c   :  { %v431_v7 = vsel %vm427_vm4, %v425_v1, %v429_v4  ;;  %v3803_v11 = vpack.c.bf16 %v430_v5, %v430_v5 }
 0x24d   :  { %v497_v8 = vpack.c.bf16 %v431_v7, %v431_v7 }
 0x24f   :  { %850 = vmatprep.mubr.bf16.mxu1 %v497_v8 }
 0x250   :  { %851 = vmatmul.mubr.bf16.vlgmr.msra.gmra.mrb[4].mxu1 %v3803_v11 }
 0x251   :  { %860 = vmatpush1.bf16.msra.mxu1 %v3460_v10  ;;  %891 = vmatprep.mubr.bf16.mxu1 %v497_v8 }
 0x252   :  { %861 = vmatprep.subr.bf16.mxu1 %v3465_v12 }
 0x255   :  { %862 = vmatpush1.bf16.msra.mxu1 %v3463_v13 }
 0x256   :  { %863 = vmatprep.subr.bf16.mxu1 %v3468_v14 }
 0x259   :  { %864 = vmatpush1.bf16.msra.mxu1 %v3466_v15 }
 0x25a   :  { %865 = vmatprep.subr.bf16.mxu1 %v3471_v16 }
 0x25d   :  { %866 = vmatpush1.bf16.msra.mxu1 %v3469_v17 }
 0x25e   :  { %867 = vmatprep.subr.bf16.mxu1 %v3474_v18 }
 0x261   :  { %868 = vmatpush1.bf16.msra.mxu1 %v3472_v19 }
 0x262   :  { %869 = vmatprep.subr.bf16.mxu1 %v3477_v20 }
 0x265   :  { %870 = vmatpush1.bf16.msra.mxu1 %v3475_v21 }
 0x266   :  { %871 = vmatprep.subr.bf16.mxu1 %v3480_v22  ;;  %v3807_v22 = vld [vmem:[#allocation10 + $0x3] ss:$8 sm:$0xf] }
 0x269   :  { %872 = vmatpush1.bf16.msra.mxu1 %v3478_v23  ;;  %v3809_v23 = vld [vmem:[#allocation10 + $0x4] ss:$8 sm:$0xf] }
 0x26a   :  { %873 = vmatprep.subr.bf16.mxu1 %v3483_v24  ;;  %v980_v24 = vrot.slane %v3807_v22, %v3794_v50 }
 0x26d   :  { %874 = vmatpush1.bf16.msra.mxu1 %v3481_v25 }
 0x26e   :  { %875 = vmatprep.subr.bf16.mxu1 %v3486_v26  ;;  %v984_v26 = vrot.slane %v3807_v22, %v3797_v52 }
 0x271   :  { %876 = vmatpush1.bf16.msra.mxu1 %v3484_v27 }
 0x272   :  { %877 = vmatprep.subr.bf16.mxu1 %v3489_v28 }
 0x275   :  { %878 = vmatpush1.bf16.msra.mxu1 %v3487_v29  ;;  %v1005_v29 = vrot.slane %v3809_v23, %v3794_v50 }
 0x276   :  { %879 = vmatprep.subr.bf16.mxu1 %v3492_v30 }
 0x279   :  { %880 = vmatpush1.bf16.msra.mxu1 %v3490_v31  ;;  %v1009_v31 = vrot.slane %v3809_v23, %v3797_v52 }
 0x27a   :  { %881 = vmatprep.subr.bf16.mxu1 %v3495_v32 }
 0x27d   :  { %882 = vmatpush1.bf16.msra.mxu1 %v3493_v33 }
 0x27e   :  { %883 = vmatprep.subr.bf16.mxu1 %v3498_v34 }
 0x281   :  { %884 = vmatpush1.bf16.msra.mxu1 %v3496_v35 }
 0x282   :  { %885 = vmatprep.subr.bf16.mxu1 %v3501_v36 }
 0x285   :  { %886 = vmatpush1.bf16.msra.mxu1 %v3499_v37 }
 0x286   :  { %887 = vmatprep.subr.bf16.mxu1 %v3504_v38 }
 0x289   :  { %888 = vmatpush1.bf16.msra.mxu1 %v3502_v39 }
 0x28a   :  { %889 = vmatprep.subr.bf16.mxu1 %v3507_v40 }
 0x28d   :  { %890 = vmatpush1.bf16.msra.mxu1 %v3505_v41 }
 0x290   :  { %892 = vmatmul.mubr.bf16.vlgmr.msra.gmra.mrb[8].mxu1 %v3803_v11 }
 0x323   :  { %v852_v42 = vpop.f32.mrb[4].mxu1 }
 0x324   :  { %v900_v43 = vrot.slane %v852_v42, 4  ;;  %v854_v44 = vpop.f32.mrb[5].mxu1 }
 0x325   :  { %v906_v45 = vrot.slane %v854_v44, 4  ;;  %v856_v46 = vpop.f32.mrb[6].mxu1 }
 0x326   :  { %v901_v47 = vadd.f32 %v900_v43, %v852_v42  ;;  %v857_v48 = vpop.f32.mrb[7].mxu1 }
 0x327   :  { %v907_v51 = vadd.f32 %v906_v45, %v854_v44 }
 0x328   :  { %v902_v53 = vrot.slane %v901_v47, 2 }
 0x329   :  { %v908_v54 = vrot.slane %v907_v51, 2 }
 0x32a   :  { %v903_v55 = vadd.f32 %v902_v53, %v901_v47 }
 0x32b   :  { %v909_v56 = vadd.f32 %v908_v54, %v907_v51 }
 0x32c   :  { %v904_v57 = vrot.slane %v903_v55, 1 }
 0x32d   :  { %v910_v58 = vrot.slane %v909_v56, 1 }
 0x32e   :  { %v905_v59 = vadd.f32 %v904_v57, %v903_v55 }
 0x32f   :  { %v911_v60 = vadd.f32 %v910_v58, %v909_v56 }
 0x330   :  { %v924_v61 = vmul.f32 0.125, %v905_v59 }
 0x331   :  { %v925_v62 = vmul.f32 0.125, %v911_v60 }
 0x332   :  { %v928_v63 = vsub.f32 %v852_v42, %v924_v61 }
 0x333   :  { %v929_v0 = vsub.f32 %v854_v44, %v925_v62 }
 0x334   :  { %v932_v1 = vmul.f32 %v928_v63, %v928_v63 }
 0x335   :  { %v933_v2 = vmul.f32 %v929_v0, %v929_v0 }
 0x336   :  { %v936_v4 = vrot.slane %v932_v1, 4 }
 0x337   :  { %v942_v5 = vrot.slane %v933_v2, 4 }
 0x338   :  { %v937_v7 = vadd.f32 %v936_v4, %v932_v1 }
 0x339   :  { %v943_v8 = vadd.f32 %v942_v5, %v933_v2 }
 0x33a   :  { %v938_v10 = vrot.slane %v937_v7, 2 }
 0x33b   :  { %v944_v11 = vrot.slane %v943_v8, 2 }
 0x33c   :  { %v939_v12 = vadd.f32 %v938_v10, %v937_v7 }
 0x33d   :  { %v945_v13 = vadd.f32 %v944_v11, %v943_v8 }
 0x33e   :  { %v940_v14 = vrot.slane %v939_v12, 1 }
 0x33f   :  { %v946_v15 = vrot.slane %v945_v13, 1 }
 0x340   :  { %v941_v16 = vadd.f32 %v940_v14, %v939_v12 }
 0x341   :  { %v947_v17 = vadd.f32 %v946_v15, %v945_v13 }
 0x342   :  { %v960_v18 = vmul.f32 0.125, %v941_v16 }
 0x343   :  { %v961_v19 = vmul.f32 0.125, %v947_v17 }
 0x344   :  { %v964_v20 = vadd.f32 0.75, %v960_v18 }
 0x345   :  { %v965_v21 = vadd.f32 0.75, %v961_v19 }
 0x346   :  { %3512 = vrsqrt.f32 %v964_v20  ;;  %v3822_v20 = vsub.s32 2, %v3791_v49 }
 0x347   :  { %3514 = vrsqrt.f32 %v965_v21  ;;  %v3825_v21 = vsub.s32 3, %v3791_v49 }
 0x350   :  { %v3513_v25 = vpop.eup %3512 }
 0x351   :  { %v3515_v27 = vpop.eup %3514  ;;  %v972_v28 = vmul.f32 %v3513_v25, %v928_v63 }
 0x352   :  { %v973_v30 = vmul.f32 %v3515_v27, %v929_v0 }
 0x353   :  { %v997_v32 = vmul.f32 %v980_v24, %v972_v28  ;;  %v988_v24 = vrot.slane %v3807_v22, %v3822_v20 }
 0x354   :  { %v998_v33 = vmul.f32 %v984_v26, %v973_v30  ;;  %v992_v26 = vrot.slane %v3807_v22, %v3825_v21 }
 0x355   :  { %v1022_v34 = vadd.f32 %v1005_v29, %v997_v32  ;;  %v1013_v29 = vrot.slane %v3809_v23, %v3822_v20 }
 0x356   :  { %v1023_v35 = vadd.f32 %v1009_v31, %v998_v33  ;;  %v1017_v31 = vrot.slane %v3809_v23, %v3825_v21 }
 0x357   :  { %vm1026_vm5 = vcmp.ge.f32.partialorder %v1022_v34, 0.0  ;;  %v1030_v36 = vmul.f32 0.01, %v1022_v34 }
 0x358   :  { %vm1027_vm6 = vcmp.ge.f32.partialorder %v1023_v35, 0.0  ;;  %v1031_v37 = vmul.f32 0.01, %v1023_v35 }
 0x359   :  { %v3819_v38 = vsel %vm1026_vm5, %v1022_v34, %v1030_v36 }
 0x35a   :  { %v1035_v39 = vsel %vm1027_vm6, %v1023_v35, %v1031_v37 }
 0x363   :  { %v893_v40 = vpop.f32.mrb[8].mxu1 }
 0x364   :  { %v912_v41 = vrot.slane %v893_v40, 4  ;;  %v895_v42 = vpop.f32.mrb[9].mxu1 }
 0x365   :  { %v918_v43 = vrot.slane %v895_v42, 4  ;;  %v897_v44 = vpop.f32.mrb[10].mxu1 }
 0x366   :  { %v913_v45 = vadd.f32 %v912_v41, %v893_v40  ;;  %v898_v46 = vpop.f32.mrb[11].mxu1 }
 0x367   :  { %v919_v47 = vadd.f32 %v918_v43, %v895_v42 }
 0x368   :  { %v914_v48 = vrot.slane %v913_v45, 2 }
 0x369   :  { %v920_v51 = vrot.slane %v919_v47, 2 }
 0x36a   :  { %v915_v53 = vadd.f32 %v914_v48, %v913_v45 }
 0x36b   :  { %v921_v54 = vadd.f32 %v920_v51, %v919_v47 }
 0x36c   :  { %v916_v55 = vrot.slane %v915_v53, 1 }
 0x36d   :  { %v922_v56 = vrot.slane %v921_v54, 1 }
 0x36e   :  { %v917_v57 = vadd.f32 %v916_v55, %v915_v53 }
 0x36f   :  { %v923_v58 = vadd.f32 %v922_v56, %v921_v54 }
 0x370   :  { %v926_v59 = vmul.f32 0.125, %v917_v57 }
 0x371   :  { %v927_v60 = vmul.f32 0.125, %v923_v58 }
 0x372   :  { %v930_v61 = vsub.f32 %v893_v40, %v926_v59 }
 0x373   :  { %v931_v62 = vsub.f32 %v895_v42, %v927_v60 }
 0x374   :  { %v934_v63 = vmul.f32 %v930_v61, %v930_v61 }
 0x375   :  { %v935_v0 = vmul.f32 %v931_v62, %v931_v62 }
 0x376   :  { %v948_v1 = vrot.slane %v934_v63, 4 }
 0x377   :  { %v954_v2 = vrot.slane %v935_v0, 4 }
 0x378   :  { %v949_v4 = vadd.f32 %v948_v1, %v934_v63 }
 0x379   :  { %v955_v5 = vadd.f32 %v954_v2, %v935_v0 }
 0x37a   :  { %v950_v7 = vrot.slane %v949_v4, 2 }
 0x37b   :  { %v956_v8 = vrot.slane %v955_v5, 2 }
 0x37c   :  { %v951_v10 = vadd.f32 %v950_v7, %v949_v4 }
 0x37d   :  { %v957_v11 = vadd.f32 %v956_v8, %v955_v5 }
 0x37e   :  { %v952_v12 = vrot.slane %v951_v10, 1 }
 0x37f   :  { %v958_v13 = vrot.slane %v957_v11, 1 }
 0x380   :  { %v953_v14 = vadd.f32 %v952_v12, %v951_v10 }
 0x381   :  { %v959_v15 = vadd.f32 %v958_v13, %v957_v11 }
 0x382   :  { %v962_v16 = vmul.f32 0.125, %v953_v14 }
 0x383   :  { %v963_v17 = vmul.f32 0.125, %v959_v15 }
 0x384   :  { %v966_v18 = vadd.f32 0.75, %v962_v16 }
 0x385   :  { %v967_v19 = vadd.f32 0.75, %v963_v17 }
 0x386   :  { %3516 = vrsqrt.f32 %v966_v18 }
 0x387   :  { %3518 = vrsqrt.f32 %v967_v19 }
 0x390   :  { %v3517_v25 = vpop.eup %3516 }
 0x391   :  { %v3519_v27 = vpop.eup %3518  ;;  %v974_v28 = vmul.f32 %v3517_v25, %v930_v61 }
 0x392   :  { %v975_v30 = vmul.f32 %v3519_v27, %v931_v62 }
 0x393   :  { %v999_v32 = vmul.f32 %v988_v24, %v974_v28 }
 0x394   :  { %v1000_v33 = vmul.f32 %v992_v26, %v975_v30 }
 0x395   :  { %v1024_v34 = vadd.f32 %v1013_v29, %v999_v32 }
 0x396   :  { %v1025_v35 = vadd.f32 %v1017_v31, %v1000_v33 }
 0x397   :  { %vm1028_vm7 = vcmp.ge.f32.partialorder %v1024_v34, 0.0  ;;  %v1032_v36 = vmul.f32 0.01, %v1024_v34 }
 0x398   :  { %vm1029_vm8 = vcmp.ge.f32.partialorder %v1025_v35, 0.0  ;;  %v1033_v37 = vmul.f32 0.01, %v1025_v35 }
 0x399   :  { %v3835_v40 = vsel %vm1028_vm7, %v1024_v34, %v1032_v36 }
 0x39a   :  { %v3837_v22 = vsel %vm1029_vm8, %v1025_v35, %v1033_v37 }
 0x39b   :  { %3644 = dma.done.wait [#allocation4], 32768 }
 0x39c   :  { %3645 = vsyncadd [#allocation4], 4294934528  ;;  %v3839_v41 = vpack.c.bf16 %v1035_v39, %v1035_v39  ;;  %v1043_v23 = vld [vmem:[#allocation2 + $0x8] sm:$0xff]  ;;  %v1045_v42 = vld [vmem:[#allocation2 + $0x18] sm:$0xff] }
 0x39d   :  { %v1042_v43 = vld [vmem:[#allocation2] sm:$0xff]  ;;  %1302 = vmatprep.subr.bf16.mxu0 %v1043_v23  ;;  %1384 = vmatprep.subr.bf16.mxu1 %v1045_v42  ;;  %v1044_v44 = vld [vmem:[#allocation2 + $0x10] sm:$0xff]  ;;  %v1051_v45 = vld [vmem:[#allocation2 + $0x48] sm:$0xff] }
 0x39e   :  { %1334 = vmatprep.mubr.bf16.mxu0 %v3839_v41  ;;  %1416 = vmatprep.mubr.bf16.mxu1 %v3839_v41  ;;  %v1053_v46 = vld [vmem:[#allocation2 + $0x58] sm:$0xff]  ;;  %v1050_v47 = vld [vmem:[#allocation2 + $0x40] sm:$0xff]  ;;  %v1052_v48 = vld [vmem:[#allocation2 + $0x50] sm:$0xff] }
 0x39f   :  { %1303 = vmatpush1.bf16.msra.mxu0 %v1042_v43  ;;  %1385 = vmatpush1.bf16.msra.mxu1 %v1044_v44  ;;  %v1059_v39 = vld [vmem:[#allocation2 + $0x88] sm:$0xff]  ;;  %v1061_v51 = vld [vmem:[#allocation2 + $0x98] sm:$0xff]  ;;  %v1058_v53 = vld [vmem:[#allocation2 + $0x80] sm:$0xff] }
 0x3a0   :  { %1304 = vmatprep.subr.bf16.mxu0 %v1051_v45  ;;  %1386 = vmatprep.subr.bf16.mxu1 %v1053_v46  ;;  %v1060_v54 = vld [vmem:[#allocation2 + $0x90] sm:$0xff]  ;;  %v1067_v55 = vld [vmem:[#allocation2 + $0xc8] sm:$0xff]  ;;  %v1069_v56 = vld [vmem:[#allocation2 + $0xd8] sm:$0xff] }
 0x3a1   :  { %v1066_v57 = vld [vmem:[#allocation2 + $0xc0] sm:$0xff]  ;;  %v1068_v58 = vld [vmem:[#allocation2 + $0xd0] sm:$0xff]  ;;  %v1075_v59 = vld [vmem:[#allocation2 + $0x108] sm:$0xff] }
 0x3a2   :  { %v1077_v60 = vld [vmem:[#allocation2 + $0x118] sm:$0xff]  ;;  %v1074_v61 = vld [vmem:[#allocation2 + $0x100] sm:$0xff]  ;;  %v1076_v62 = vld [vmem:[#allocation2 + $0x110] sm:$0xff] }
 0x3a3   :  { %1305 = vmatpush1.bf16.msra.mxu0 %v1050_v47  ;;  %1387 = vmatpush1.bf16.msra.mxu1 %v1052_v48  ;;  %v1083_v63 = vld [vmem:[#allocation2 + $0x148] sm:$0xff]  ;;  %v1085_v0 = vld [vmem:[#allocation2 + $0x158] sm:$0xff]  ;;  %v1082_v1 = vld [vmem:[#allocation2 + $0x140] sm:$0xff] }
 0x3a4   :  { %1306 = vmatprep.subr.bf16.mxu0 %v1059_v39  ;;  %1388 = vmatprep.subr.bf16.mxu1 %v1061_v51  ;;  %v1084_v2 = vld [vmem:[#allocation2 + $0x150] sm:$0xff]  ;;  %v1091_v4 = vld [vmem:[#allocation2 + $0x188] sm:$0xff]  ;;  %v1093_v5 = vld [vmem:[#allocation2 + $0x198] sm:$0xff] }
 0x3a5   :  { %v1090_v7 = vld [vmem:[#allocation2 + $0x180] sm:$0xff]  ;;  %v1092_v8 = vld [vmem:[#allocation2 + $0x190] sm:$0xff]  ;;  %v1099_v10 = vld [vmem:[#allocation2 + $0x1c8] sm:$0xff] }
 0x3a6   :  { %v1101_v11 = vld [vmem:[#allocation2 + $0x1d8] sm:$0xff]  ;;  %v1098_v12 = vld [vmem:[#allocation2 + $0x1c0] sm:$0xff]  ;;  %v1100_v13 = vld [vmem:[#allocation2 + $0x1d0] sm:$0xff] }
 0x3a7   :  { %1307 = vmatpush1.bf16.msra.mxu0 %v1058_v53  ;;  %1389 = vmatpush1.bf16.msra.mxu1 %v1060_v54  ;;  %v1107_v14 = vld [vmem:[#allocation2 + $0x208] sm:$0xff]  ;;  %v1109_v15 = vld [vmem:[#allocation2 + $0x218] sm:$0xff]  ;;  %v1106_v16 = vld [vmem:[#allocation2 + $0x200] sm:$0xff] }
 0x3a8   :  { %1308 = vmatprep.subr.bf16.mxu0 %v1067_v55  ;;  %1390 = vmatprep.subr.bf16.mxu1 %v1069_v56  ;;  %v1108_v17 = vld [vmem:[#allocation2 + $0x210] sm:$0xff]  ;;  %v1115_v18 = vld [vmem:[#allocation2 + $0x248] sm:$0xff]  ;;  %v1117_v19 = vld [vmem:[#allocation2 + $0x258] sm:$0xff] }
 0x3a9   :  { %v1114_v24 = vld [vmem:[#allocation2 + $0x240] sm:$0xff]  ;;  %v1116_v25 = vld [vmem:[#allocation2 + $0x250] sm:$0xff]  ;;  %v1123_v26 = vld [vmem:[#allocation2 + $0x288] sm:$0xff] }
 0x3aa   :  { %v1125_v27 = vld [vmem:[#allocation2 + $0x298] sm:$0xff]  ;;  %v1122_v28 = vld [vmem:[#allocation2 + $0x280] sm:$0xff]  ;;  %v1124_v29 = vld [vmem:[#allocation2 + $0x290] sm:$0xff] }
 0x3ab   :  { %1309 = vmatpush1.bf16.msra.mxu0 %v1066_v57  ;;  %1391 = vmatpush1.bf16.msra.mxu1 %v1068_v58  ;;  %v1131_v30 = vld [vmem:[#allocation2 + $0x2c8] sm:$0xff]  ;;  %v1133_v31 = vld [vmem:[#allocation2 + $0x2d8] sm:$0xff]  ;;  %v1130_v32 = vld [vmem:[#allocation2 + $0x2c0] sm:$0xff]  ;;  %v3845_v57 = vpack.c.bf16 %v3819_v38, %v3819_v38 }
 0x3ac   :  { %1310 = vmatprep.subr.bf16.mxu0 %v1075_v59  ;;  %1392 = vmatprep.subr.bf16.mxu1 %v1077_v60  ;;  %v1132_v33 = vld [vmem:[#allocation2 + $0x2d0] sm:$0xff]  ;;  %v1139_v34 = vld [vmem:[#allocation2 + $0x308] sm:$0xff]  ;;  %v1141_v35 = vld [vmem:[#allocation2 + $0x318] sm:$0xff] }
 0x3ad   :  { %v1138_v36 = vld [vmem:[#allocation2 + $0x300] sm:$0xff]  ;;  %v1140_v37 = vld [vmem:[#allocation2 + $0x310] sm:$0xff]  ;;  %v1147_v23 = vld [vmem:[#allocation2 + $0x348] sm:$0xff] }
 0x3ae   :  { %v1149_v42 = vld [vmem:[#allocation2 + $0x358] sm:$0xff]  ;;  %v1146_v43 = vld [vmem:[#allocation2 + $0x340] sm:$0xff]  ;;  %v1148_v44 = vld [vmem:[#allocation2 + $0x350] sm:$0xff] }
 0x3af   :  { %1311 = vmatpush1.bf16.msra.mxu0 %v1074_v61  ;;  %1393 = vmatpush1.bf16.msra.mxu1 %v1076_v62  ;;  %v1155_v45 = vld [vmem:[#allocation2 + $0x388] sm:$0xff]  ;;  %v1157_v46 = vld [vmem:[#allocation2 + $0x398] sm:$0xff]  ;;  %v1154_v47 = vld [vmem:[#allocation2 + $0x380] sm:$0xff]  ;;  %v3849_v62 = vpack.c.bf16 %v3837_v22, %v3837_v22 }
 0x3b0   :  { %1312 = vmatprep.subr.bf16.mxu0 %v1083_v63  ;;  %1394 = vmatprep.subr.bf16.mxu1 %v1085_v0  ;;  %v1156_v48 = vld [vmem:[#allocation2 + $0x390] sm:$0xff]  ;;  %v1163_v39 = vld [vmem:[#allocation2 + $0x3c8] sm:$0xff]  ;;  %v1165_v51 = vld [vmem:[#allocation2 + $0x3d8] sm:$0xff] }
 0x3b1   :  { %v1162_v53 = vld [vmem:[#allocation2 + $0x3c0] sm:$0xff]  ;;  %v1164_v54 = vld [vmem:[#allocation2 + $0x3d0] sm:$0xff]  ;;  %v1171_v55 = vld [vmem:[#allocation2 + $0x408] sm:$0xff] }
 0x3b2   :  { %v1173_v56 = vld [vmem:[#allocation2 + $0x418] sm:$0xff]  ;;  %v1170_v58 = vld [vmem:[#allocation2 + $0x400] sm:$0xff]  ;;  %v1172_v59 = vld [vmem:[#allocation2 + $0x410] sm:$0xff] }
 0x3b3   :  { %1313 = vmatpush1.bf16.msra.mxu0 %v1082_v1  ;;  %1395 = vmatpush1.bf16.msra.mxu1 %v1084_v2  ;;  %v1179_v60 = vld [vmem:[#allocation2 + $0x448] sm:$0xff]  ;;  %v1181_v61 = vld [vmem:[#allocation2 + $0x458] sm:$0xff]  ;;  %v1178_v38 = vld [vmem:[#allocation2 + $0x440] sm:$0xff] }
 0x3b4   :  { %1314 = vmatprep.subr.bf16.mxu0 %v1091_v4  ;;  %1396 = vmatprep.subr.bf16.mxu1 %v1093_v5  ;;  %v1180_v63 = vld [vmem:[#allocation2 + $0x450] sm:$0xff]  ;;  %v1187_v0 = vld [vmem:[#allocation2 + $0x488] sm:$0xff]  ;;  %v1189_v1 = vld [vmem:[#allocation2 + $0x498] sm:$0xff] }
 0x3b5   :  { %v1186_v22 = vld [vmem:[#allocation2 + $0x480] sm:$0xff]  ;;  %v1188_v2 = vld [vmem:[#allocation2 + $0x490] sm:$0xff]  ;;  %v1195_v4 = vld [vmem:[#allocation2 + $0x4c8] sm:$0xff] }
 0x3b6   :  { %v1197_v5 = vld [vmem:[#allocation2 + $0x4d8] sm:$0xff] }
 0x3b7   :  { %1315 = vmatpush1.bf16.msra.mxu0 %v1090_v7  ;;  %1397 = vmatpush1.bf16.msra.mxu1 %v1092_v8  ;;  %v1194_v7 = vld [vmem:[#allocation2 + $0x4c0] sm:$0xff]  ;;  %v1196_v8 = vld [vmem:[#allocation2 + $0x4d0] sm:$0xff] }
 0x3b8   :  { %1316 = vmatprep.subr.bf16.mxu0 %v1099_v10  ;;  %1398 = vmatprep.subr.bf16.mxu1 %v1101_v11  ;;  %v1203_v10 = vld [vmem:[#allocation2 + $0x508] sm:$0xff]  ;;  %v1205_v11 = vld [vmem:[#allocation2 + $0x518] sm:$0xff] }
 0x3bb   :  { %1317 = vmatpush1.bf16.msra.mxu0 %v1098_v12  ;;  %1399 = vmatpush1.bf16.msra.mxu1 %v1100_v13  ;;  %v1202_v12 = vld [vmem:[#allocation2 + $0x500] sm:$0xff]  ;;  %v1204_v13 = vld [vmem:[#allocation2 + $0x510] sm:$0xff] }
 0x3bc   :  { %1318 = vmatprep.subr.bf16.mxu0 %v1107_v14  ;;  %1400 = vmatprep.subr.bf16.mxu1 %v1109_v15  ;;  %v1211_v14 = vld [vmem:[#allocation2 + $0x548] sm:$0xff]  ;;  %v1213_v15 = vld [vmem:[#allocation2 + $0x558] sm:$0xff] }
 0x3bf   :  { %1319 = vmatpush1.bf16.msra.mxu0 %v1106_v16  ;;  %1401 = vmatpush1.bf16.msra.mxu1 %v1108_v17  ;;  %v1210_v16 = vld [vmem:[#allocation2 + $0x540] sm:$0xff]  ;;  %v1212_v17 = vld [vmem:[#allocation2 + $0x550] sm:$0xff] }
 0x3c0   :  { %1320 = vmatprep.subr.bf16.mxu0 %v1115_v18  ;;  %1402 = vmatprep.subr.bf16.mxu1 %v1117_v19  ;;  %v1219_v18 = vld [vmem:[#allocation2 + $0x588] sm:$0xff]  ;;  %v1221_v19 = vld [vmem:[#allocation2 + $0x598] sm:$0xff] }
 0x3c3   :  { %1321 = vmatpush1.bf16.msra.mxu0 %v1114_v24  ;;  %1403 = vmatpush1.bf16.msra.mxu1 %v1116_v25  ;;  %v1218_v24 = vld [vmem:[#allocation2 + $0x580] sm:$0xff]  ;;  %v1220_v25 = vld [vmem:[#allocation2 + $0x590] sm:$0xff] }
 0x3c4   :  { %1322 = vmatprep.subr.bf16.mxu0 %v1123_v26  ;;  %1404 = vmatprep.subr.bf16.mxu1 %v1125_v27  ;;  %v1227_v26 = vld [vmem:[#allocation2 + $0x5c8] sm:$0xff]  ;;  %v1229_v27 = vld [vmem:[#allocation2 + $0x5d8] sm:$0xff] }
 0x3c7   :  { %1323 = vmatpush1.bf16.msra.mxu0 %v1122_v28  ;;  %1405 = vmatpush1.bf16.msra.mxu1 %v1124_v29  ;;  %v1226_v28 = vld [vmem:[#allocation2 + $0x5c0] sm:$0xff]  ;;  %v1228_v29 = vld [vmem:[#allocation2 + $0x5d0] sm:$0xff] }
 0x3c8   :  { %1324 = vmatprep.subr.bf16.mxu0 %v1131_v30  ;;  %1406 = vmatprep.subr.bf16.mxu1 %v1133_v31  ;;  %v1235_v30 = vld [vmem:[#allocation2 + $0x608] sm:$0xff]  ;;  %v1237_v31 = vld [vmem:[#allocation2 + $0x618] sm:$0xff] }
 0x3cb   :  { %1325 = vmatpush1.bf16.msra.mxu0 %v1130_v32  ;;  %1407 = vmatpush1.bf16.msra.mxu1 %v1132_v33  ;;  %v1234_v32 = vld [vmem:[#allocation2 + $0x600] sm:$0xff]  ;;  %v1236_v33 = vld [vmem:[#allocation2 + $0x610] sm:$0xff] }
 0x3cc   :  { %1326 = vmatprep.subr.bf16.mxu0 %v1139_v34  ;;  %1408 = vmatprep.subr.bf16.mxu1 %v1141_v35  ;;  %v1243_v34 = vld [vmem:[#allocation2 + $0x648] sm:$0xff]  ;;  %v1245_v35 = vld [vmem:[#allocation2 + $0x658] sm:$0xff] }
 0x3cf   :  { %1327 = vmatpush1.bf16.msra.mxu0 %v1138_v36  ;;  %1409 = vmatpush1.bf16.msra.mxu1 %v1140_v37  ;;  %v1242_v36 = vld [vmem:[#allocation2 + $0x640] sm:$0xff]  ;;  %v1244_v37 = vld [vmem:[#allocation2 + $0x650] sm:$0xff] }
 0x3d0   :  { %1328 = vmatprep.subr.bf16.mxu0 %v1147_v23  ;;  %1410 = vmatprep.subr.bf16.mxu1 %v1149_v42  ;;  %v1251_v23 = vld [vmem:[#allocation2 + $0x688] sm:$0xff]  ;;  %v1253_v42 = vld [vmem:[#allocation2 + $0x698] sm:$0xff] }
 0x3d3   :  { %1329 = vmatpush1.bf16.msra.mxu0 %v1146_v43  ;;  %1411 = vmatpush1.bf16.msra.mxu1 %v1148_v44  ;;  %v1250_v43 = vld [vmem:[#allocation2 + $0x680] sm:$0xff]  ;;  %v1252_v44 = vld [vmem:[#allocation2 + $0x690] sm:$0xff] }
 0x3d4   :  { %1330 = vmatprep.subr.bf16.mxu0 %v1155_v45  ;;  %1412 = vmatprep.subr.bf16.mxu1 %v1157_v46  ;;  %v1259_v45 = vld [vmem:[#allocation2 + $0x6c8] sm:$0xff]  ;;  %v1261_v46 = vld [vmem:[#allocation2 + $0x6d8] sm:$0xff] }
 0x3d7   :  { %1331 = vmatpush1.bf16.msra.mxu0 %v1154_v47  ;;  %1413 = vmatpush1.bf16.msra.mxu1 %v1156_v48  ;;  %v1258_v47 = vld [vmem:[#allocation2 + $0x6c0] sm:$0xff]  ;;  %v1260_v48 = vld [vmem:[#allocation2 + $0x6d0] sm:$0xff] }
 0x3d8   :  { %1332 = vmatprep.subr.bf16.mxu0 %v1163_v39  ;;  %1414 = vmatprep.subr.bf16.mxu1 %v1165_v51  ;;  %v1267_v39 = vld [vmem:[#allocation2 + $0x708] sm:$0xff]  ;;  %v1269_v51 = vld [vmem:[#allocation2 + $0x718] sm:$0xff] }
 0x3db   :  { %1333 = vmatpush1.bf16.msra.mxu0 %v1162_v53  ;;  %1415 = vmatpush1.bf16.msra.mxu1 %v1164_v54  ;;  %v1266_v53 = vld [vmem:[#allocation2 + $0x700] sm:$0xff]  ;;  %v1268_v54 = vld [vmem:[#allocation2 + $0x710] sm:$0xff] }
 0x3dc   :  { %1343 = vmatprep.subr.bf16.mxu0 %v1171_v55  ;;  %1425 = vmatprep.subr.bf16.mxu1 %v1173_v56  ;;  %v1275_v55 = vld [vmem:[#allocation2 + $0x748] sm:$0xff]  ;;  %v1277_v56 = vld [vmem:[#allocation2 + $0x758] sm:$0xff] }
 0x3de   :  { %1335 = vmatmul.mubr.bf16.vlgmr.msra.gmra.mrb[4].mxu0 %v3845_v57  ;;  %1417 = vmatmul.mubr.bf16.vlgmr.msra.gmra.mrb[12].mxu1 %v3845_v57 }
 0x3df   :  { %1344 = vmatpush1.bf16.msra.mxu0 %v1170_v58  ;;  %1426 = vmatpush1.bf16.msra.mxu1 %v1172_v59  ;;  %v1274_v58 = vld [vmem:[#allocation2 + $0x740] sm:$0xff]  ;;  %v1276_v59 = vld [vmem:[#allocation2 + $0x750] sm:$0xff] }
 0x3e0   :  { %1345 = vmatprep.subr.bf16.mxu0 %v1179_v60  ;;  %1427 = vmatprep.subr.bf16.mxu1 %v1181_v61  ;;  %v1283_v60 = vld [vmem:[#allocation2 + $0x788] sm:$0xff]  ;;  %v1285_v61 = vld [vmem:[#allocation2 + $0x798] sm:$0xff] }
 0x3e1   :  { %1375 = vmatprep.mubr.bf16.mxu0 %v3849_v62  ;;  %1457 = vmatprep.mubr.bf16.mxu1 %v3849_v62 }
 0x3e3   :  { %1346 = vmatpush1.bf16.msra.mxu0 %v1178_v38  ;;  %1428 = vmatpush1.bf16.msra.mxu1 %v1180_v63  ;;  %v1282_v38 = vld [vmem:[#allocation2 + $0x780] sm:$0xff]  ;;  %v1284_v63 = vld [vmem:[#allocation2 + $0x790] sm:$0xff] }
 0x3e4   :  { %1347 = vmatprep.subr.bf16.mxu0 %v1187_v0  ;;  %1429 = vmatprep.subr.bf16.mxu1 %v1189_v1  ;;  %v1291_v0 = vld [vmem:[#allocation2 + $0x7c8] sm:$0xff]  ;;  %v1293_v1 = vld [vmem:[#allocation2 + $0x7d8] sm:$0xff] }
 0x3e7   :  { %1348 = vmatpush1.bf16.msra.mxu0 %v1186_v22  ;;  %1430 = vmatpush1.bf16.msra.mxu1 %v1188_v2  ;;  %v1290_v22 = vld [vmem:[#allocation2 + $0x7c0] sm:$0xff]  ;;  %v1292_v2 = vld [vmem:[#allocation2 + $0x7d0] sm:$0xff] }
 0x3e8   :  { %1349 = vmatprep.subr.bf16.mxu0 %v1195_v4  ;;  %1431 = vmatprep.subr.bf16.mxu1 %v1197_v5  ;;  %v1047_v4 = vld [vmem:[#allocation2 + $0x28] sm:$0xff]  ;;  %v1049_v5 = vld [vmem:[#allocation2 + $0x38] sm:$0xff] }
 0x3eb   :  { %1350 = vmatpush1.bf16.msra.mxu0 %v1194_v7  ;;  %1432 = vmatpush1.bf16.msra.mxu1 %v1196_v8  ;;  %v3857_v7 = vpack.c.bf16 %v3835_v40, %v3835_v40  ;;  %v1046_v8 = vld [vmem:[#allocation2 + $0x20] sm:$0xff]  ;;  %v1063_v40 = vld [vmem:[#allocation2 + $0xa8] sm:$0xff] }
 0x3ec   :  { %1351 = vmatprep.subr.bf16.mxu0 %v1203_v10  ;;  %1433 = vmatprep.subr.bf16.mxu1 %v1205_v11  ;;  %v1048_v10 = vld [vmem:[#allocation2 + $0x30] sm:$0xff]  ;;  %v1055_v11 = vld [vmem:[#allocation2 + $0x68] sm:$0xff] }
 0x3ef   :  { %1352 = vmatpush1.bf16.msra.mxu0 %v1202_v12  ;;  %1434 = vmatpush1.bf16.msra.mxu1 %v1204_v13  ;;  %v1057_v12 = vld [vmem:[#allocation2 + $0x78] sm:$0xff]  ;;  %v1054_v13 = vld [vmem:[#allocation2 + $0x60] sm:$0xff] }
 0x3f0   :  { %1353 = vmatprep.subr.bf16.mxu0 %v1211_v14  ;;  %1435 = vmatprep.subr.bf16.mxu1 %v1213_v15  ;;  %v1056_v14 = vld [vmem:[#allocation2 + $0x70] sm:$0xff]  ;;  %v1065_v15 = vld [vmem:[#allocation2 + $0xb8] sm:$0xff] }
 0x3f3   :  { %1354 = vmatpush1.bf16.msra.mxu0 %v1210_v16  ;;  %1436 = vmatpush1.bf16.msra.mxu1 %v1212_v17  ;;  %v1062_v16 = vld [vmem:[#allocation2 + $0xa0] sm:$0xff]  ;;  %v1064_v17 = vld [vmem:[#allocation2 + $0xb0] sm:$0xff] }
 0x3f4   :  { %1355 = vmatprep.subr.bf16.mxu0 %v1219_v18  ;;  %1437 = vmatprep.subr.bf16.mxu1 %v1221_v19  ;;  %v1071_v18 = vld [vmem:[#allocation2 + $0xe8] sm:$0xff]  ;;  %v1073_v19 = vld [vmem:[#allocation2 + $0xf8] sm:$0xff] }
 0x3f7   :  { %1356 = vmatpush1.bf16.msra.mxu0 %v1218_v24  ;;  %1438 = vmatpush1.bf16.msra.mxu1 %v1220_v25  ;;  %v1070_v24 = vld [vmem:[#allocation2 + $0xe0] sm:$0xff]  ;;  %v1072_v25 = vld [vmem:[#allocation2 + $0xf0] sm:$0xff] }
 0x3f8   :  { %1357 = vmatprep.subr.bf16.mxu0 %v1227_v26  ;;  %1439 = vmatprep.subr.bf16.mxu1 %v1229_v27  ;;  %v1079_v26 = vld [vmem:[#allocation2 + $0x128] sm:$0xff]  ;;  %v1081_v27 = vld [vmem:[#allocation2 + $0x138] sm:$0xff] }
 0x3fb   :  { %1358 = vmatpush1.bf16.msra.mxu0 %v1226_v28  ;;  %1440 = vmatpush1.bf16.msra.mxu1 %v1228_v29  ;;  %v1080_v28 = vld [vmem:[#allocation2 + $0x130] sm:$0xff]  ;;  %v1087_v29 = vld [vmem:[#allocation2 + $0x168] sm:$0xff] }
 0x3fc   :  { %1359 = vmatprep.subr.bf16.mxu0 %v1235_v30  ;;  %1441 = vmatprep.subr.bf16.mxu1 %v1237_v31  ;;  %v1089_v30 = vld [vmem:[#allocation2 + $0x178] sm:$0xff]  ;;  %v1086_v31 = vld [vmem:[#allocation2 + $0x160] sm:$0xff] }
 0x3ff   :  { %1360 = vmatpush1.bf16.msra.mxu0 %v1234_v32  ;;  %1442 = vmatpush1.bf16.msra.mxu1 %v1236_v33  ;;  %v1088_v32 = vld [vmem:[#allocation2 + $0x170] sm:$0xff]  ;;  %v1095_v33 = vld [vmem:[#allocation2 + $0x1a8] sm:$0xff] }
 0x400   :  { %1361 = vmatprep.subr.bf16.mxu0 %v1243_v34  ;;  %1443 = vmatprep.subr.bf16.mxu1 %v1245_v35  ;;  %v1097_v34 = vld [vmem:[#allocation2 + $0x1b8] sm:$0xff]  ;;  %v1094_v35 = vld [vmem:[#allocation2 + $0x1a0] sm:$0xff] }
 0x403   :  { %1362 = vmatpush1.bf16.msra.mxu0 %v1242_v36  ;;  %1444 = vmatpush1.bf16.msra.mxu1 %v1244_v37  ;;  %v1096_v36 = vld [vmem:[#allocation2 + $0x1b0] sm:$0xff]  ;;  %v1103_v37 = vld [vmem:[#allocation2 + $0x1e8] sm:$0xff] }
 0x404   :  { %1363 = vmatprep.subr.bf16.mxu0 %v1251_v23  ;;  %1445 = vmatprep.subr.bf16.mxu1 %v1253_v42  ;;  %v1105_v23 = vld [vmem:[#allocation2 + $0x1f8] sm:$0xff]  ;;  %v1102_v42 = vld [vmem:[#allocation2 + $0x1e0] sm:$0xff] }
 0x407   :  { %1364 = vmatpush1.bf16.msra.mxu0 %v1250_v43  ;;  %1446 = vmatpush1.bf16.msra.mxu1 %v1252_v44  ;;  %v1104_v43 = vld [vmem:[#allocation2 + $0x1f0] sm:$0xff]  ;;  %v1111_v44 = vld [vmem:[#allocation2 + $0x228] sm:$0xff] }
 0x408   :  { %1365 = vmatprep.subr.bf16.mxu0 %v1259_v45  ;;  %1447 = vmatprep.subr.bf16.mxu1 %v1261_v46  ;;  %v1113_v45 = vld [vmem:[#allocation2 + $0x238] sm:$0xff]  ;;  %v1110_v46 = vld [vmem:[#allocation2 + $0x220] sm:$0xff] }
 0x40b   :  { %1366 = vmatpush1.bf16.msra.mxu0 %v1258_v47  ;;  %1448 = vmatpush1.bf16.msra.mxu1 %v1260_v48  ;;  %v1112_v47 = vld [vmem:[#allocation2 + $0x230] sm:$0xff]  ;;  %v1119_v48 = vld [vmem:[#allocation2 + $0x268] sm:$0xff] }
 0x40c   :  { %1367 = vmatprep.subr.bf16.mxu0 %v1267_v39  ;;  %1449 = vmatprep.subr.bf16.mxu1 %v1269_v51  ;;  %v1121_v39 = vld [vmem:[#allocation2 + $0x278] sm:$0xff]  ;;  %v1118_v51 = vld [vmem:[#allocation2 + $0x260] sm:$0xff] }
 0x40f   :  { %1368 = vmatpush1.bf16.msra.mxu0 %v1266_v53  ;;  %1450 = vmatpush1.bf16.msra.mxu1 %v1268_v54  ;;  %v1120_v53 = vld [vmem:[#allocation2 + $0x270] sm:$0xff]  ;;  %v1127_v54 = vld [vmem:[#allocation2 + $0x2a8] sm:$0xff] }
 0x410   :  { %1369 = vmatprep.subr.bf16.mxu0 %v1275_v55  ;;  %1451 = vmatprep.subr.bf16.mxu1 %v1277_v56  ;;  %v1129_v55 = vld [vmem:[#allocation2 + $0x2b8] sm:$0xff]  ;;  %v1126_v56 = vld [vmem:[#allocation2 + $0x2a0] sm:$0xff] }
 0x413   :  { %1370 = vmatpush1.bf16.msra.mxu0 %v1274_v58  ;;  %1452 = vmatpush1.bf16.msra.mxu1 %v1276_v59  ;;  %v1128_v58 = vld [vmem:[#allocation2 + $0x2b0] sm:$0xff]  ;;  %v1135_v59 = vld [vmem:[#allocation2 + $0x2e8] sm:$0xff] }
 0x414   :  { %1371 = vmatprep.subr.bf16.mxu0 %v1283_v60  ;;  %1453 = vmatprep.subr.bf16.mxu1 %v1285_v61  ;;  %v1137_v60 = vld [vmem:[#allocation2 + $0x2f8] sm:$0xff]  ;;  %v1134_v61 = vld [vmem:[#allocation2 + $0x2e0] sm:$0xff] }
 0x417   :  { %1372 = vmatpush1.bf16.msra.mxu0 %v1282_v38  ;;  %1454 = vmatpush1.bf16.msra.mxu1 %v1284_v63  ;;  %v1136_v38 = vld [vmem:[#allocation2 + $0x2f0] sm:$0xff]  ;;  %v1143_v63 = vld [vmem:[#allocation2 + $0x328] sm:$0xff] }
 0x418   :  { %1373 = vmatprep.subr.bf16.mxu0 %v1291_v0  ;;  %1455 = vmatprep.subr.bf16.mxu1 %v1293_v1  ;;  %v1145_v0 = vld [vmem:[#allocation2 + $0x338] sm:$0xff]  ;;  %v1142_v1 = vld [vmem:[#allocation2 + $0x320] sm:$0xff] }
 0x41b   :  { %1374 = vmatpush1.bf16.msra.mxu0 %v1290_v22  ;;  %1456 = vmatpush1.bf16.msra.mxu1 %v1292_v2  ;;  %v1144_v22 = vld [vmem:[#allocation2 + $0x330] sm:$0xff]  ;;  %v1151_v2 = vld [vmem:[#allocation2 + $0x368] sm:$0xff] }
 0x41c   :  { %1466 = vmatprep.subr.bf16.mxu0 %v1047_v4  ;;  %1548 = vmatprep.subr.bf16.mxu1 %v1049_v5  ;;  %v1153_v4 = vld [vmem:[#allocation2 + $0x378] sm:$0xff]  ;;  %v1150_v5 = vld [vmem:[#allocation2 + $0x360] sm:$0xff] }
 0x41e   :  { %1376 = vmatmul.mubr.bf16.vlgmr.msra.gmra.mrb[4].mxu0 %v3857_v7  ;;  %1458 = vmatmul.mubr.bf16.vlgmr.msra.gmra.mrb[12].mxu1 %v3857_v7 }
 0x41f   :  { %1467 = vmatpush1.bf16.msra.mxu0 %v1046_v8  ;;  %1549 = vmatpush1.bf16.msra.mxu1 %v1048_v10  ;;  %v1152_v8 = vld [vmem:[#allocation2 + $0x370] sm:$0xff]  ;;  %v1159_v10 = vld [vmem:[#allocation2 + $0x3a8] sm:$0xff] }
 0x420   :  { %1468 = vmatprep.subr.bf16.mxu0 %v1055_v11  ;;  %1550 = vmatprep.subr.bf16.mxu1 %v1057_v12  ;;  %v1161_v11 = vld [vmem:[#allocation2 + $0x3b8] sm:$0xff]  ;;  %v1158_v12 = vld [vmem:[#allocation2 + $0x3a0] sm:$0xff] }
 0x421   :  { %1498 = vmatprep.mubr.bf16.mxu0 %v3839_v41  ;;  %1580 = vmatprep.mubr.bf16.mxu1 %v3839_v41  ;;  %v1078_v41 = vld [vmem:[#allocation2 + $0x120] sm:$0xff] }
 0x423   :  { %1469 = vmatpush1.bf16.msra.mxu0 %v1054_v13  ;;  %1551 = vmatpush1.bf16.msra.mxu1 %v1056_v14  ;;  %v1160_v13 = vld [vmem:[#allocation2 + $0x3b0] sm:$0xff]  ;;  %v1167_v14 = vld [vmem:[#allocation2 + $0x3e8] sm:$0xff] }
 0x424   :  { %1470 = vmatprep.subr.bf16.mxu0 %v1063_v40  ;;  %1552 = vmatprep.subr.bf16.mxu1 %v1065_v15  ;;  %v1169_v40 = vld [vmem:[#allocation2 + $0x3f8] sm:$0xff]  ;;  %v1166_v15 = vld [vmem:[#allocation2 + $0x3e0] sm:$0xff] }
 0x427   :  { %1471 = vmatpush1.bf16.msra.mxu0 %v1062_v16  ;;  %1553 = vmatpush1.bf16.msra.mxu1 %v1064_v17  ;;  %v1168_v16 = vld [vmem:[#allocation2 + $0x3f0] sm:$0xff]  ;;  %v1175_v17 = vld [vmem:[#allocation2 + $0x428] sm:$0xff] }
 0x428   :  { %1472 = vmatprep.subr.bf16.mxu0 %v1071_v18  ;;  %1554 = vmatprep.subr.bf16.mxu1 %v1073_v19  ;;  %v1177_v18 = vld [vmem:[#allocation2 + $0x438] sm:$0xff]  ;;  %v1174_v19 = vld [vmem:[#allocation2 + $0x420] sm:$0xff] }
 0x42b   :  { %1473 = vmatpush1.bf16.msra.mxu0 %v1070_v24  ;;  %1555 = vmatpush1.bf16.msra.mxu1 %v1072_v25  ;;  %v1176_v24 = vld [vmem:[#allocation2 + $0x430] sm:$0xff]  ;;  %v1183_v25 = vld [vmem:[#allocation2 + $0x468] sm:$0xff] }
 0x42c   :  { %1474 = vmatprep.subr.bf16.mxu0 %v1079_v26  ;;  %1556 = vmatprep.subr.bf16.mxu1 %v1081_v27  ;;  %v1185_v26 = vld [vmem:[#allocation2 + $0x478] sm:$0xff]  ;;  %v1182_v27 = vld [vmem:[#allocation2 + $0x460] sm:$0xff] }
 0x42f   :  { %1475 = vmatpush1.bf16.msra.mxu0 %v1078_v41  ;;  %1557 = vmatpush1.bf16.msra.mxu1 %v1080_v28  ;;  %v1184_v41 = vld [vmem:[#allocation2 + $0x470] sm:$0xff]  ;;  %v1191_v28 = vld [vmem:[#allocation2 + $0x4a8] sm:$0xff] }
 0x430   :  { %1476 = vmatprep.subr.bf16.mxu0 %v1087_v29  ;;  %1558 = vmatprep.subr.bf16.mxu1 %v1089_v30  ;;  %v1193_v29 = vld [vmem:[#allocation2 + $0x4b8] sm:$0xff]  ;;  %v1190_v30 = vld [vmem:[#allocation2 + $0x4a0] sm:$0xff] }
 0x433   :  { %1477 = vmatpush1.bf16.msra.mxu0 %v1086_v31  ;;  %1559 = vmatpush1.bf16.msra.mxu1 %v1088_v32  ;;  %v1192_v31 = vld [vmem:[#allocation2 + $0x4b0] sm:$0xff]  ;;  %v1199_v32 = vld [vmem:[#allocation2 + $0x4e8] sm:$0xff] }
 0x434   :  { %1478 = vmatprep.subr.bf16.mxu0 %v1095_v33  ;;  %1560 = vmatprep.subr.bf16.mxu1 %v1097_v34  ;;  %v1198_v33 = vld [vmem:[#allocation2 + $0x4e0] sm:$0xff]  ;;  %v1200_v34 = vld [vmem:[#allocation2 + $0x4f0] sm:$0xff] }
 0x437   :  { %1479 = vmatpush1.bf16.msra.mxu0 %v1094_v35  ;;  %1561 = vmatpush1.bf16.msra.mxu1 %v1096_v36  ;;  %v1207_v35 = vld [vmem:[#allocation2 + $0x528] sm:$0xff]  ;;  %v1209_v36 = vld [vmem:[#allocation2 + $0x538] sm:$0xff] }
 0x438   :  { %1480 = vmatprep.subr.bf16.mxu0 %v1103_v37  ;;  %1562 = vmatprep.subr.bf16.mxu1 %v1105_v23  ;;  %v1208_v37 = vld [vmem:[#allocation2 + $0x530] sm:$0xff]  ;;  %v1215_v23 = vld [vmem:[#allocation2 + $0x568] sm:$0xff] }
 0x43b   :  { %1481 = vmatpush1.bf16.msra.mxu0 %v1102_v42  ;;  %1563 = vmatpush1.bf16.msra.mxu1 %v1104_v43  ;;  %v1217_v42 = vld [vmem:[#allocation2 + $0x578] sm:$0xff]  ;;  %v1214_v43 = vld [vmem:[#allocation2 + $0x560] sm:$0xff] }
 0x43c   :  { %1482 = vmatprep.subr.bf16.mxu0 %v1111_v44  ;;  %1564 = vmatprep.subr.bf16.mxu1 %v1113_v45  ;;  %v1216_v44 = vld [vmem:[#allocation2 + $0x570] sm:$0xff]  ;;  %v1223_v45 = vld [vmem:[#allocation2 + $0x5a8] sm:$0xff] }
 0x43f   :  { %1483 = vmatpush1.bf16.msra.mxu0 %v1110_v46  ;;  %1565 = vmatpush1.bf16.msra.mxu1 %v1112_v47  ;;  %v1225_v46 = vld [vmem:[#allocation2 + $0x5b8] sm:$0xff]  ;;  %v1222_v47 = vld [vmem:[#allocation2 + $0x5a0] sm:$0xff] }
 0x440   :  { %1484 = vmatprep.subr.bf16.mxu0 %v1119_v48  ;;  %1566 = vmatprep.subr.bf16.mxu1 %v1121_v39  ;;  %v1224_v48 = vld [vmem:[#allocation2 + $0x5b0] sm:$0xff]  ;;  %v1231_v39 = vld [vmem:[#allocation2 + $0x5e8] sm:$0xff] }
 0x443   :  { %1485 = vmatpush1.bf16.msra.mxu0 %v1118_v51  ;;  %1567 = vmatpush1.bf16.msra.mxu1 %v1120_v53  ;;  %v1233_v51 = vld [vmem:[#allocation2 + $0x5f8] sm:$0xff]  ;;  %v1230_v53 = vld [vmem:[#allocation2 + $0x5e0] sm:$0xff] }
 0x444   :  { %1486 = vmatprep.subr.bf16.mxu0 %v1127_v54  ;;  %1568 = vmatprep.subr.bf16.mxu1 %v1129_v55  ;;  %v1232_v54 = vld [vmem:[#allocation2 + $0x5f0] sm:$0xff]  ;;  %v1239_v55 = vld [vmem:[#allocation2 + $0x628] sm:$0xff] }
 0x447   :  { %1487 = vmatpush1.bf16.msra.mxu0 %v1126_v56  ;;  %1569 = vmatpush1.bf16.msra.mxu1 %v1128_v58  ;;  %v1241_v56 = vld [vmem:[#allocation2 + $0x638] sm:$0xff]  ;;  %v1238_v58 = vld [vmem:[#allocation2 + $0x620] sm:$0xff] }
 0x448   :  { %1488 = vmatprep.subr.bf16.mxu0 %v1135_v59  ;;  %1570 = vmatprep.subr.bf16.mxu1 %v1137_v60  ;;  %v1240_v59 = vld [vmem:[#allocation2 + $0x630] sm:$0xff]  ;;  %v1247_v60 = vld [vmem:[#allocation2 + $0x668] sm:$0xff] }
 0x44b   :  { %1489 = vmatpush1.bf16.msra.mxu0 %v1134_v61  ;;  %1571 = vmatpush1.bf16.msra.mxu1 %v1136_v38  ;;  %v1249_v61 = vld [vmem:[#allocation2 + $0x678] sm:$0xff]  ;;  %v1246_v38 = vld [vmem:[#allocation2 + $0x660] sm:$0xff] }
 0x44c   :  { %1490 = vmatprep.subr.bf16.mxu0 %v1143_v63  ;;  %1572 = vmatprep.subr.bf16.mxu1 %v1145_v0  ;;  %v1248_v63 = vld [vmem:[#allocation2 + $0x670] sm:$0xff]  ;;  %v1255_v0 = vld [vmem:[#allocation2 + $0x6a8] sm:$0xff] }
 0x44f   :  { %1491 = vmatpush1.bf16.msra.mxu0 %v1142_v1  ;;  %1573 = vmatpush1.bf16.msra.mxu1 %v1144_v22  ;;  %v1257_v1 = vld [vmem:[#allocation2 + $0x6b8] sm:$0xff]  ;;  %v1254_v22 = vld [vmem:[#allocation2 + $0x6a0] sm:$0xff] }
 0x450   :  { %1492 = vmatprep.subr.bf16.mxu0 %v1151_v2  ;;  %1574 = vmatprep.subr.bf16.mxu1 %v1153_v4  ;;  %v1256_v2 = vld [vmem:[#allocation2 + $0x6b0] sm:$0xff]  ;;  %v1263_v4 = vld [vmem:[#allocation2 + $0x6e8] sm:$0xff] }
 0x453   :  { %1493 = vmatpush1.bf16.msra.mxu0 %v1150_v5  ;;  %1575 = vmatpush1.bf16.msra.mxu1 %v1152_v8  ;;  %v1265_v5 = vld [vmem:[#allocation2 + $0x6f8] sm:$0xff]  ;;  %v1262_v8 = vld [vmem:[#allocation2 + $0x6e0] sm:$0xff] }
 0x454   :  { %1494 = vmatprep.subr.bf16.mxu0 %v1159_v10  ;;  %1576 = vmatprep.subr.bf16.mxu1 %v1161_v11  ;;  %v1264_v10 = vld [vmem:[#allocation2 + $0x6f0] sm:$0xff]  ;;  %v1271_v11 = vld [vmem:[#allocation2 + $0x728] sm:$0xff] }
 0x457   :  { %1495 = vmatpush1.bf16.msra.mxu0 %v1158_v12  ;;  %1577 = vmatpush1.bf16.msra.mxu1 %v1160_v13  ;;  %v1273_v12 = vld [vmem:[#allocation2 + $0x738] sm:$0xff]  ;;  %v1270_v13 = vld [vmem:[#allocation2 + $0x720] sm:$0xff] }
 0x458   :  { %1496 = vmatprep.subr.bf16.mxu0 %v1167_v14  ;;  %1578 = vmatprep.subr.bf16.mxu1 %v1169_v40  ;;  %v1272_v14 = vld [vmem:[#allocation2 + $0x730] sm:$0xff]  ;;  %v1279_v40 = vld [vmem:[#allocation2 + $0x768] sm:$0xff] }
 0x45b   :  { %1497 = vmatpush1.bf16.msra.mxu0 %v1166_v15  ;;  %1579 = vmatpush1.bf16.msra.mxu1 %v1168_v16  ;;  %v1281_v15 = vld [vmem:[#allocation2 + $0x778] sm:$0xff]  ;;  %v1278_v16 = vld [vmem:[#allocation2 + $0x760] sm:$0xff] }
 0x45c   :  { %1507 = vmatprep.subr.bf16.mxu0 %v1175_v17  ;;  %1589 = vmatprep.subr.bf16.mxu1 %v1177_v18  ;;  %v1280_v17 = vld [vmem:[#allocation2 + $0x770] sm:$0xff]  ;;  %v1287_v18 = vld [vmem:[#allocation2 + $0x7a8] sm:$0xff] }
 0x45e   :  { %1499 = vmatmul.mubr.bf16.vlgmr.msra.gmra.mrb[8].mxu0 %v3845_v57  ;;  %1581 = vmatmul.mubr.bf16.vlgmr.msra.gmra.mrb[16].mxu1 %v3845_v57  ;;  %v1201_v57 = vld [vmem:[#allocation2 + $0x4f8] sm:$0xff] }
 0x45f   :  { %1508 = vmatpush1.bf16.msra.mxu0 %v1174_v19  ;;  %1590 = vmatpush1.bf16.msra.mxu1 %v1176_v24  ;;  %v1289_v19 = vld [vmem:[#allocation2 + $0x7b8] sm:$0xff]  ;;  %v1286_v24 = vld [vmem:[#allocation2 + $0x7a0] sm:$0xff] }
 0x460   :  { %1509 = vmatprep.subr.bf16.mxu0 %v1183_v25  ;;  %1591 = vmatprep.subr.bf16.mxu1 %v1185_v26  ;;  %v1288_v25 = vld [vmem:[#allocation2 + $0x7b0] sm:$0xff]  ;;  %v1295_v26 = vld [vmem:[#allocation2 + $0x7e8] sm:$0xff] }
 0x461   :  { %1539 = vmatprep.mubr.bf16.mxu0 %v3849_v62  ;;  %1621 = vmatprep.mubr.bf16.mxu1 %v3849_v62  ;;  %v1206_v62 = vld [vmem:[#allocation2 + $0x520] sm:$0xff] }
 0x463   :  { %1510 = vmatpush1.bf16.msra.mxu0 %v1182_v27  ;;  %1592 = vmatpush1.bf16.msra.mxu1 %v1184_v41  ;;  %v1297_v27 = vld [vmem:[#allocation2 + $0x7f8] sm:$0xff]  ;;  %v1294_v41 = vld [vmem:[#allocation2 + $0x7e0] sm:$0xff] }
 0x464   :  { %1511 = vmatprep.subr.bf16.mxu0 %v1191_v28  ;;  %1593 = vmatprep.subr.bf16.mxu1 %v1193_v29  ;;  %v1296_v28 = vld [vmem:[#allocation2 + $0x7f0] sm:$0xff] }
 0x467   :  { %1512 = vmatpush1.bf16.msra.mxu0 %v1190_v30  ;;  %1594 = vmatpush1.bf16.msra.mxu1 %v1192_v31 }
 0x468   :  { %1513 = vmatprep.subr.bf16.mxu0 %v1199_v32  ;;  %1595 = vmatprep.subr.bf16.mxu1 %v1201_v57 }
 0x46b   :  { %1514 = vmatpush1.bf16.msra.mxu0 %v1198_v33  ;;  %1596 = vmatpush1.bf16.msra.mxu1 %v1200_v34 }
 0x46c   :  { %1515 = vmatprep.subr.bf16.mxu0 %v1207_v35  ;;  %1597 = vmatprep.subr.bf16.mxu1 %v1209_v36 }
 0x46f   :  { %1516 = vmatpush1.bf16.msra.mxu0 %v1206_v62  ;;  %1598 = vmatpush1.bf16.msra.mxu1 %v1208_v37 }
 0x470   :  { %1517 = vmatprep.subr.bf16.mxu0 %v1215_v23  ;;  %1599 = vmatprep.subr.bf16.mxu1 %v1217_v42 }
 0x473   :  { %1518 = vmatpush1.bf16.msra.mxu0 %v1214_v43  ;;  %1600 = vmatpush1.bf16.msra.mxu1 %v1216_v44 }
 0x474   :  { %1519 = vmatprep.subr.bf16.mxu0 %v1223_v45  ;;  %1601 = vmatprep.subr.bf16.mxu1 %v1225_v46 }
 0x477   :  { %1520 = vmatpush1.bf16.msra.mxu0 %v1222_v47  ;;  %1602 = vmatpush1.bf16.msra.mxu1 %v1224_v48 }
 0x478   :  { %1521 = vmatprep.subr.bf16.mxu0 %v1231_v39  ;;  %1603 = vmatprep.subr.bf16.mxu1 %v1233_v51 }
 0x47b   :  { %1522 = vmatpush1.bf16.msra.mxu0 %v1230_v53  ;;  %1604 = vmatpush1.bf16.msra.mxu1 %v1232_v54 }
 0x47c   :  { %1523 = vmatprep.subr.bf16.mxu0 %v1239_v55  ;;  %1605 = vmatprep.subr.bf16.mxu1 %v1241_v56 }
 0x47f   :  { %1524 = vmatpush1.bf16.msra.mxu0 %v1238_v58  ;;  %1606 = vmatpush1.bf16.msra.mxu1 %v1240_v59 }
 0x480   :  { %1525 = vmatprep.subr.bf16.mxu0 %v1247_v60  ;;  %1607 = vmatprep.subr.bf16.mxu1 %v1249_v61 }
 0x483   :  { %1526 = vmatpush1.bf16.msra.mxu0 %v1246_v38  ;;  %1608 = vmatpush1.bf16.msra.mxu1 %v1248_v63 }
 0x484   :  { %1527 = vmatprep.subr.bf16.mxu0 %v1255_v0  ;;  %1609 = vmatprep.subr.bf16.mxu1 %v1257_v1 }
 0x487   :  { %1528 = vmatpush1.bf16.msra.mxu0 %v1254_v22  ;;  %1610 = vmatpush1.bf16.msra.mxu1 %v1256_v2 }
 0x488   :  { %1529 = vmatprep.subr.bf16.mxu0 %v1263_v4  ;;  %1611 = vmatprep.subr.bf16.mxu1 %v1265_v5 }
 0x48b   :  { %1530 = vmatpush1.bf16.msra.mxu0 %v1262_v8  ;;  %1612 = vmatpush1.bf16.msra.mxu1 %v1264_v10 }
 0x48c   :  { %1531 = vmatprep.subr.bf16.mxu0 %v1271_v11  ;;  %1613 = vmatprep.subr.bf16.mxu1 %v1273_v12 }
 0x48f   :  { %1532 = vmatpush1.bf16.msra.mxu0 %v1270_v13  ;;  %1614 = vmatpush1.bf16.msra.mxu1 %v1272_v14 }
 0x490   :  { %1533 = vmatprep.subr.bf16.mxu0 %v1279_v40  ;;  %1615 = vmatprep.subr.bf16.mxu1 %v1281_v15 }
 0x493   :  { %1534 = vmatpush1.bf16.msra.mxu0 %v1278_v16  ;;  %1616 = vmatpush1.bf16.msra.mxu1 %v1280_v17 }
 0x494   :  { %1535 = vmatprep.subr.bf16.mxu0 %v1287_v18  ;;  %1617 = vmatprep.subr.bf16.mxu1 %v1289_v19 }
 0x497   :  { %1536 = vmatpush1.bf16.msra.mxu0 %v1286_v24  ;;  %1618 = vmatpush1.bf16.msra.mxu1 %v1288_v25 }
 0x498   :  { %1537 = vmatprep.subr.bf16.mxu0 %v1295_v26  ;;  %1619 = vmatprep.subr.bf16.mxu1 %v1297_v27 }
 0x49b   :  { %1538 = vmatpush1.bf16.msra.mxu0 %v1294_v41  ;;  %1620 = vmatpush1.bf16.msra.mxu1 %v1296_v28 }
 0x49e   :  { %1540 = vmatmul.mubr.bf16.vlgmr.msra.gmra.mrb[8].mxu0 %v3857_v7  ;;  %1622 = vmatmul.mubr.bf16.vlgmr.msra.gmra.mrb[16].mxu1 %v3857_v7 }
 0x4f1   :  { %v1377_v29 = vpop.f32.mrb[4].mxu0  ;;  %v1459_v30 = vpop.f32.mrb[12].mxu1 }
 0x4f2   :  { %v1630_v31 = vrot.slane %v1377_v29, 4  ;;  %v1642_v32 = vrot.slane %v1459_v30, 4  ;;  %v1379_v57 = vpop.f32.mrb[5].mxu0  ;;  %v1461_v33 = vpop.f32.mrb[13].mxu1 }
 0x4f3   :  { %v1636_v34 = vrot.slane %v1379_v57, 4  ;;  %v1648_v35 = vrot.slane %v1461_v33, 4  ;;  %v1381_v36 = vpop.f32.mrb[6].mxu0  ;;  %v1463_v62 = vpop.f32.mrb[14].mxu1 }
 0x4f4   :  { %v1631_v37 = vadd.f32 %v1630_v31, %v1377_v29  ;;  %v1643_v23 = vadd.f32 %v1642_v32, %v1459_v30  ;;  %v1382_v42 = vpop.f32.mrb[7].mxu0  ;;  %v1464_v43 = vpop.f32.mrb[15].mxu1 }
 0x4f5   :  { %v1637_v44 = vadd.f32 %v1636_v34, %v1379_v57  ;;  %v1649_v45 = vadd.f32 %v1648_v35, %v1461_v33 }
 0x4f6   :  { %v1632_v46 = vrot.slane %v1631_v37, 2  ;;  %v1644_v47 = vrot.slane %v1643_v23, 2 }
 0x4f7   :  { %v1638_v48 = vrot.slane %v1637_v44, 2  ;;  %v1650_v7 = vrot.slane %v1649_v45, 2 }
 0x4f8   :  { %v1633_v39 = vadd.f32 %v1632_v46, %v1631_v37  ;;  %v1645_v51 = vadd.f32 %v1644_v47, %v1643_v23 }
 0x4f9   :  { %v1639_v53 = vadd.f32 %v1638_v48, %v1637_v44  ;;  %v1651_v54 = vadd.f32 %v1650_v7, %v1649_v45 }
 0x4fa   :  { %v1634_v55 = vrot.slane %v1633_v39, 1  ;;  %v1646_v56 = vrot.slane %v1645_v51, 1 }
 0x4fb   :  { %v1640_v58 = vrot.slane %v1639_v53, 1  ;;  %v1652_v59 = vrot.slane %v1651_v54, 1 }
 0x4fc   :  { %v1635_v60 = vadd.f32 %v1634_v55, %v1633_v39  ;;  %v1647_v61 = vadd.f32 %v1646_v56, %v1645_v51  ;;  %v1786_v39 = vrot.slane %v3782_v3, %v3794_v50  ;;  %v1835_v56 = vrot.slane %v3784_v6, %v3794_v50 }
 0x4fd   :  { %v1641_v38 = vadd.f32 %v1640_v58, %v1639_v53  ;;  %v1653_v63 = vadd.f32 %v1652_v59, %v1651_v54  ;;  %v1794_v53 = vrot.slane %v3782_v3, %v3822_v20  ;;  %v1790_v58 = vrot.slane %v3782_v3, %v3797_v52 }
 0x4fe   :  { %v1678_v0 = vmul.f32 0.125, %v1635_v60  ;;  %v1680_v1 = vmul.f32 0.125, %v1647_v61  ;;  %v1843_v61 = vrot.slane %v3784_v6, %v3822_v20 }
 0x4ff   :  { %v1679_v22 = vmul.f32 0.125, %v1641_v38  ;;  %v1681_v2 = vmul.f32 0.125, %v1653_v63  ;;  %v1798_v38 = vrot.slane %v3782_v3, %v3825_v21 }
 0x500   :  { %v1686_v4 = vsub.f32 %v1377_v29, %v1678_v0  ;;  %v1688_v5 = vsub.f32 %v1459_v30, %v1680_v1 }
 0x501   :  { %v1687_v8 = vsub.f32 %v1379_v57, %v1679_v22  ;;  %v1689_v10 = vsub.f32 %v1461_v33, %v1681_v2  ;;  %v1839_v22 = vrot.slane %v3784_v6, %v3797_v52 }
 0x502   :  { %v1694_v11 = vmul.f32 %v1686_v4, %v1686_v4  ;;  %v1696_v12 = vmul.f32 %v1688_v5, %v1688_v5 }
 0x503   :  { %v1695_v13 = vmul.f32 %v1687_v8, %v1687_v8  ;;  %v1697_v14 = vmul.f32 %v1689_v10, %v1689_v10 }
 0x504   :  { %v1702_v40 = vrot.slane %v1694_v11, 4  ;;  %v1714_v15 = vrot.slane %v1696_v12, 4 }
 0x505   :  { %v1708_v16 = vrot.slane %v1695_v13, 4  ;;  %v1720_v17 = vrot.slane %v1697_v14, 4 }
 0x506   :  { %v1703_v18 = vadd.f32 %v1702_v40, %v1694_v11  ;;  %v1715_v19 = vadd.f32 %v1714_v15, %v1696_v12  ;;  %v1847_v11 = vrot.slane %v3784_v6, %v3825_v21 }
 0x507   :  { %v1709_v24 = vadd.f32 %v1708_v16, %v1695_v13  ;;  %v1721_v25 = vadd.f32 %v1720_v17, %v1697_v14 }
 0x508   :  { %v1704_v26 = vrot.slane %v1703_v18, 2  ;;  %v1716_v27 = vrot.slane %v1715_v19, 2 }
 0x509   :  { %v1710_v41 = vrot.slane %v1709_v24, 2  ;;  %v1722_v28 = vrot.slane %v1721_v25, 2 }
 0x50a   :  { %v1705_v29 = vadd.f32 %v1704_v26, %v1703_v18  ;;  %v1717_v30 = vadd.f32 %v1716_v27, %v1715_v19 }
 0x50b   :  { %v1711_v31 = vadd.f32 %v1710_v41, %v1709_v24  ;;  %v1723_v32 = vadd.f32 %v1722_v28, %v1721_v25 }
 0x50c   :  { %v1706_v57 = vrot.slane %v1705_v29, 1  ;;  %v1718_v33 = vrot.slane %v1717_v30, 1 }
 0x50d   :  { %v1712_v34 = vrot.slane %v1711_v31, 1  ;;  %v1724_v35 = vrot.slane %v1723_v32, 1 }
 0x50e   :  { %v1707_v36 = vadd.f32 %v1706_v57, %v1705_v29  ;;  %v1719_v62 = vadd.f32 %v1718_v33, %v1717_v30 }
 0x50f   :  { %v1713_v37 = vadd.f32 %v1712_v34, %v1711_v31  ;;  %v1725_v23 = vadd.f32 %v1724_v35, %v1723_v32 }
 0x510   :  { %v1750_v42 = vmul.f32 0.125, %v1707_v36  ;;  %v1752_v43 = vmul.f32 0.125, %v1719_v62 }
 0x511   :  { %v1751_v44 = vmul.f32 0.125, %v1713_v37  ;;  %v1753_v45 = vmul.f32 0.125, %v1725_v23 }
 0x512   :  { %v1758_v46 = vadd.f32 0.75, %v1750_v42  ;;  %v1760_v47 = vadd.f32 0.75, %v1752_v43 }
 0x513   :  { %v1759_v48 = vadd.f32 0.75, %v1751_v44  ;;  %v1761_v7 = vadd.f32 0.75, %v1753_v45 }
 0x514   :  { %3520 = vrsqrt.f32 %v1758_v46 }
 0x515   :  { %3522 = vrsqrt.f32 %v1760_v47 }
 0x516   :  { %3524 = vrsqrt.f32 %v1759_v48 }
 0x517   :  { %3526 = vrsqrt.f32 %v1761_v7 }
 0x51e   :  { %v3521_v51 = vpop.eup %3520 }
 0x51f   :  { %v3523_v54 = vpop.eup %3522  ;;  %v1774_v55 = vmul.f32 %v3521_v51, %v1686_v4 }
 0x520   :  { %v3525_v59 = vpop.eup %3524  ;;  %v1776_v60 = vmul.f32 %v3523_v54, %v1688_v5 }
 0x521   :  { %v3527_v63 = vpop.eup %3526  ;;  %v1823_v0 = vmul.f32 %v1786_v39, %v1774_v55  ;;  %v1775_v1 = vmul.f32 %v3525_v59, %v1687_v8 }
 0x522   :  { %v1825_v2 = vmul.f32 %v1794_v53, %v1776_v60  ;;  %v1777_v4 = vmul.f32 %v3527_v63, %v1689_v10 }
 0x523   :  { %v1872_v12 = vadd.f32 %v1835_v56, %v1823_v0  ;;  %v1824_v13 = vmul.f32 %v1790_v58, %v1775_v1 }
 0x524   :  { %v1874_v5 = vadd.f32 %v1843_v61, %v1825_v2  ;;  %v1826_v14 = vmul.f32 %v1798_v38, %v1777_v4 }
 0x525   :  { %vm1880_vm9 = vcmp.ge.f32.partialorder %v1872_v12, 0.0  ;;  %v1888_v40 = vmul.f32 0.01, %v1872_v12  ;;  %v1873_v15 = vadd.f32 %v1839_v22, %v1824_v13 }
 0x526   :  { %vm1882_vm10 = vcmp.ge.f32.partialorder %v1874_v5, 0.0  ;;  %v1890_v16 = vmul.f32 0.01, %v1874_v5  ;;  %v1875_v17 = vadd.f32 %v1847_v11, %v1826_v14 }
 0x527   :  { %v3885_v18 = vsel %vm1880_vm9, %v1872_v12, %v1888_v40  ;;  %vm1881_vm11 = vcmp.ge.f32.partialorder %v1873_v15, 0.0  ;;  %v1889_v8 = vmul.f32 0.01, %v1873_v15 }
 0x528   :  { %v3887_v19 = vsel %vm1882_vm10, %v1874_v5, %v1890_v16  ;;  %vm1883_vm12 = vcmp.ge.f32.partialorder %v1875_v17, 0.0  ;;  %v1891_v10 = vmul.f32 0.01, %v1875_v17 }
 0x529   :  { %v3889_v24 = vsel %vm1881_vm11, %v1873_v15, %v1889_v8 }
 0x52a   :  { %v3891_v25 = vsel %vm1883_vm12, %v1875_v17, %v1891_v10 }
 0x571   :  { %v1541_v26 = vpop.f32.mrb[8].mxu0  ;;  %v1623_v27 = vpop.f32.mrb[16].mxu1 }
 0x572   :  { %v1654_v41 = vrot.slane %v1541_v26, 4  ;;  %v1666_v28 = vrot.slane %v1623_v27, 4  ;;  %v1543_v29 = vpop.f32.mrb[9].mxu0  ;;  %v1625_v30 = vpop.f32.mrb[17].mxu1 }
 0x573   :  { %v1660_v31 = vrot.slane %v1543_v29, 4  ;;  %v1672_v32 = vrot.slane %v1625_v30, 4  ;;  %v1545_v57 = vpop.f32.mrb[10].mxu0  ;;  %v1627_v33 = vpop.f32.mrb[18].mxu1 }
 0x574   :  { %v1655_v34 = vadd.f32 %v1654_v41, %v1541_v26  ;;  %v1667_v35 = vadd.f32 %v1666_v28, %v1623_v27  ;;  %v1546_v36 = vpop.f32.mrb[11].mxu0  ;;  %v1628_v62 = vpop.f32.mrb[19].mxu1 }
 0x575   :  { %v1661_v37 = vadd.f32 %v1660_v31, %v1543_v29  ;;  %v1673_v23 = vadd.f32 %v1672_v32, %v1625_v30 }
 0x576   :  { %v1656_v42 = vrot.slane %v1655_v34, 2  ;;  %v1668_v43 = vrot.slane %v1667_v35, 2 }
 0x577   :  { %v1662_v44 = vrot.slane %v1661_v37, 2  ;;  %v1674_v45 = vrot.slane %v1673_v23, 2 }
 0x578   :  { %v1657_v46 = vadd.f32 %v1656_v42, %v1655_v34  ;;  %v1669_v47 = vadd.f32 %v1668_v43, %v1667_v35 }
 0x579   :  { %v1663_v48 = vadd.f32 %v1662_v44, %v1661_v37  ;;  %v1675_v7 = vadd.f32 %v1674_v45, %v1673_v23 }
 0x57a   :  { %v1658_v39 = vrot.slane %v1657_v46, 1  ;;  %v1670_v51 = vrot.slane %v1669_v47, 1 }
 0x57b   :  { %v1664_v53 = vrot.slane %v1663_v48, 1  ;;  %v1676_v54 = vrot.slane %v1675_v7, 1 }
 0x57c   :  { %v1659_v55 = vadd.f32 %v1658_v39, %v1657_v46  ;;  %v1671_v56 = vadd.f32 %v1670_v51, %v1669_v47  ;;  %v3894_v39 = vsub.s32 4, %v3791_v49  ;;  %v3897_v51 = vsub.s32 6, %v3791_v49 }
 0x57d   :  { %v1665_v58 = vadd.f32 %v1664_v53, %v1663_v48  ;;  %v1677_v59 = vadd.f32 %v1676_v54, %v1675_v7  ;;  %v3900_v53 = vsub.s32 5, %v3791_v49  ;;  %v1813_v54 = vsub.s32 7, %v3791_v49 }
 0x57e   :  { %v1682_v60 = vmul.f32 0.125, %v1659_v55  ;;  %v1684_v61 = vmul.f32 0.125, %v1671_v56  ;;  %v1802_v55 = vrot.slane %v3782_v3, %v3894_v39  ;;  %v1859_v49 = vrot.slane %v3784_v6, %v3897_v51 }
 0x57f   :  { %v1683_v38 = vmul.f32 0.125, %v1665_v58  ;;  %v1685_v63 = vmul.f32 0.125, %v1677_v59  ;;  %v1810_v58 = vrot.slane %v3782_v3, %v3897_v51 }
 0x580   :  { %v1690_v0 = vsub.f32 %v1541_v26, %v1682_v60  ;;  %v1692_v1 = vsub.f32 %v1623_v27, %v1684_v61  ;;  %v1851_v61 = vrot.slane %v3784_v6, %v3894_v39 }
 0x581   :  { %v1691_v22 = vsub.f32 %v1543_v29, %v1683_v38  ;;  %v1693_v2 = vsub.f32 %v1625_v30, %v1685_v63  ;;  %v1806_v38 = vrot.slane %v3782_v3, %v3900_v53 }
 0x582   :  { %v1698_v4 = vmul.f32 %v1690_v0, %v1690_v0  ;;  %v1700_v11 = vmul.f32 %v1692_v1, %v1692_v1 }
 0x583   :  { %v1699_v12 = vmul.f32 %v1691_v22, %v1691_v22  ;;  %v1701_v13 = vmul.f32 %v1693_v2, %v1693_v2 }
 0x584   :  { %v1726_v5 = vrot.slane %v1698_v4, 4  ;;  %v1738_v14 = vrot.slane %v1700_v11, 4 }
 0x585   :  { %v1732_v40 = vrot.slane %v1699_v12, 4  ;;  %v1744_v15 = vrot.slane %v1701_v13, 4 }
 0x586   :  { %v1727_v16 = vadd.f32 %v1726_v5, %v1698_v4  ;;  %v1739_v17 = vadd.f32 %v1738_v14, %v1700_v11  ;;  %v1814_v11 = vrot.slane %v3782_v3, %v1813_v54  ;;  %v1855_v14 = vrot.slane %v3784_v6, %v3900_v53 }
 0x587   :  { %v1733_v8 = vadd.f32 %v1732_v40, %v1699_v12  ;;  %v1745_v10 = vadd.f32 %v1744_v15, %v1701_v13  ;;  %v1863_v15 = vrot.slane %v3784_v6, %v1813_v54 }
 0x588   :  { %v1728_v41 = vrot.slane %v1727_v16, 2  ;;  %v1740_v28 = vrot.slane %v1739_v17, 2 }
 0x589   :  { %v1734_v31 = vrot.slane %v1733_v8, 2  ;;  %v1746_v32 = vrot.slane %v1745_v10, 2 }
 0x58a   :  { %v1729_v26 = vadd.f32 %v1728_v41, %v1727_v16  ;;  %v1741_v27 = vadd.f32 %v1740_v28, %v1739_v17 }
 0x58b   :  { %v1735_v29 = vadd.f32 %v1734_v31, %v1733_v8  ;;  %v1747_v30 = vadd.f32 %v1746_v32, %v1745_v10 }
 0x58c   :  { %v1730_v57 = vrot.slane %v1729_v26, 1  ;;  %v1742_v33 = vrot.slane %v1741_v27, 1 }
 0x58d   :  { %v1736_v34 = vrot.slane %v1735_v29, 1  ;;  %v1748_v35 = vrot.slane %v1747_v30, 1 }
 0x58e   :  { %v1731_v36 = vadd.f32 %v1730_v57, %v1729_v26  ;;  %v1743_v62 = vadd.f32 %v1742_v33, %v1741_v27 }
 0x58f   :  { %v1737_v37 = vadd.f32 %v1736_v34, %v1735_v29  ;;  %v1749_v23 = vadd.f32 %v1748_v35, %v1747_v30 }
 0x590   :  { %v1754_v42 = vmul.f32 0.125, %v1731_v36  ;;  %v1756_v43 = vmul.f32 0.125, %v1743_v62 }
 0x591   :  { %v1755_v44 = vmul.f32 0.125, %v1737_v37  ;;  %v1757_v45 = vmul.f32 0.125, %v1749_v23 }
 0x592   :  { %v1762_v46 = vadd.f32 0.75, %v1754_v42  ;;  %v1764_v47 = vadd.f32 0.75, %v1756_v43 }
 0x593   :  { %v1763_v48 = vadd.f32 0.75, %v1755_v44  ;;  %v1765_v7 = vadd.f32 0.75, %v1757_v45 }
 0x594   :  { %3528 = vrsqrt.f32 %v1762_v46 }
 0x595   :  { %3530 = vrsqrt.f32 %v1764_v47 }
 0x596   :  { %3532 = vrsqrt.f32 %v1763_v48 }
 0x597   :  { %3534 = vrsqrt.f32 %v1765_v7 }
 0x59e   :  { %v3529_v56 = vpop.eup %3528 }
 0x59f   :  { %v3531_v59 = vpop.eup %3530  ;;  %v1778_v60 = vmul.f32 %v3529_v56, %v1690_v0 }
 0x5a0   :  { %v3533_v63 = vpop.eup %3532  ;;  %v1780_v4 = vmul.f32 %v3531_v59, %v1692_v1 }
 0x5a1   :  { %v3535_v12 = vpop.eup %3534  ;;  %v1827_v13 = vmul.f32 %v1802_v55, %v1778_v60  ;;  %v1779_v5 = vmul.f32 %v3533_v63, %v1691_v22 }
 0x5a2   :  { %v1829_v0 = vmul.f32 %v1810_v58, %v1780_v4  ;;  %v1781_v40 = vmul.f32 %v3535_v12, %v1693_v2 }
 0x5a3   :  { %v1876_v16 = vadd.f32 %v1851_v61, %v1827_v13  ;;  %v1828_v17 = vmul.f32 %v1806_v38, %v1779_v5 }
 0x5a4   :  { %v1878_v8 = vadd.f32 %v1859_v49, %v1829_v0  ;;  %v1830_v10 = vmul.f32 %v1814_v11, %v1781_v40 }
 0x5a5   :  { %vm1884_vm13 = vcmp.ge.f32.partialorder %v1876_v16, 0.0  ;;  %v1892_v1 = vmul.f32 0.01, %v1876_v16  ;;  %v1877_v41 = vadd.f32 %v1855_v14, %v1828_v17 }
 0x5a6   :  { %vm1886_vm14 = vcmp.ge.f32.partialorder %v1878_v8, 0.0  ;;  %v1894_v28 = vmul.f32 0.01, %v1878_v8  ;;  %v1879_v3 = vadd.f32 %v1863_v15, %v1830_v10 }
 0x5a7   :  { %v3917_v31 = vsel %vm1884_vm13, %v1876_v16, %v1892_v1  ;;  %vm1885_vm15 = vcmp.ge.f32.partialorder %v1877_v41, 0.0  ;;  %v1893_v22 = vmul.f32 0.01, %v1877_v41 }
 0x5a8   :  { %v3919_v32 = vsel %vm1886_vm14, %v1878_v8, %v1894_v28  ;;  %vm1887_vm0 = vcmp.ge.f32.partialorder %v1879_v3, 0.0  ;;  %v1895_v2 = vmul.f32 0.01, %v1879_v3 }
 0x5a9   :  { %v3921_v26 = vsel %vm1885_vm15, %v1877_v41, %v1893_v22 }
 0x5aa   :  { %v3923_v6 = vsel %vm1887_vm0, %v1879_v3, %v1895_v2 }
 0x5ab   :  { %3646 = dma.done.wait [#allocation4 + $0x1], 57344 }
 0x5ac   :  { %3647 = vsyncadd [#allocation4 + $0x1], 4294909952  ;;  %v3927_v27 = vpack.c.bf16 %v3889_v24, %v3889_v24  ;;  %v1909_v29 = vld [vmem:[#allocation3 + $0x8] sm:$0xff]  ;;  %v1911_v30 = vld [vmem:[#allocation3 + $0x18] sm:$0xff] }
 0x5ad   :  { %v1908_v57 = vld [vmem:[#allocation3] sm:$0xff]  ;;  %2400 = vmatprep.subr.bf16.mxu0 %v1909_v29  ;;  %2564 = vmatprep.subr.bf16.mxu1 %v1911_v30  ;;  %v1910_v33 = vld [vmem:[#allocation3 + $0x10] sm:$0xff]  ;;  %v1915_v36 = vld [vmem:[#allocation3 + $0x38] sm:$0xff] }
 0x5ae   :  { %2432 = vmatprep.mubr.bf16.mxu0 %v3927_v27  ;;  %2596 = vmatprep.mubr.bf16.mxu1 %v3927_v27  ;;  %v1916_v34 = vld [vmem:[#allocation3 + $0x40] sm:$0xff]  ;;  %v1918_v35 = vld [vmem:[#allocation3 + $0x50] sm:$0xff]  ;;  %v1917_v62 = vld [vmem:[#allocation3 + $0x48] sm:$0xff] }
 0x5af   :  { %2401 = vmatpush1.bf16.msra.mxu0 %v1908_v57  ;;  %2565 = vmatpush1.bf16.msra.mxu1 %v1910_v33  ;;  %v1923_v24 = vld [vmem:[#allocation3 + $0x78] sm:$0xff]  ;;  %v1925_v37 = vld [vmem:[#allocation3 + $0x88] sm:$0xff]  ;;  %v1922_v23 = vld [vmem:[#allocation3 + $0x70] sm:$0xff] }
 0x5b0   :  { %2402 = vmatprep.subr.bf16.mxu0 %v1916_v34  ;;  %2566 = vmatprep.subr.bf16.mxu1 %v1918_v35  ;;  %v1924_v42 = vld [vmem:[#allocation3 + $0x80] sm:$0xff]  ;;  %v1930_v43 = vld [vmem:[#allocation3 + $0xb0] sm:$0xff]  ;;  %v1929_v45 = vld [vmem:[#allocation3 + $0xa8] sm:$0xff] }
 0x5b1   :  { %v1932_v44 = vld [vmem:[#allocation3 + $0xc0] sm:$0xff]  ;;  %v1931_v46 = vld [vmem:[#allocation3 + $0xb8] sm:$0xff]  ;;  %v1937_v47 = vld [vmem:[#allocation3 + $0xe8] sm:$0xff] }
 0x5b2   :  { %v1939_v48 = vld [vmem:[#allocation3 + $0xf8] sm:$0xff]  ;;  %v1936_v7 = vld [vmem:[#allocation3 + $0xe0] sm:$0xff]  ;;  %v1938_v54 = vld [vmem:[#allocation3 + $0xf0] sm:$0xff] }
 0x5b3   :  { %2403 = vmatpush1.bf16.msra.mxu0 %v1915_v36  ;;  %2567 = vmatpush1.bf16.msra.mxu1 %v1917_v62  ;;  %v1944_v55 = vld [vmem:[#allocation3 + $0x120] sm:$0xff]  ;;  %v1946_v56 = vld [vmem:[#allocation3 + $0x130] sm:$0xff]  ;;  %v1943_v58 = vld [vmem:[#allocation3 + $0x118] sm:$0xff] }
 0x5b4   :  { %2404 = vmatprep.subr.bf16.mxu0 %v1923_v24  ;;  %2568 = vmatprep.subr.bf16.mxu1 %v1925_v37  ;;  %v1945_v59 = vld [vmem:[#allocation3 + $0x128] sm:$0xff]  ;;  %v1951_v60 = vld [vmem:[#allocation3 + $0x158] sm:$0xff]  ;;  %v1950_v38 = vld [vmem:[#allocation3 + $0x150] sm:$0xff] }
 0x5b5   :  { %v1953_v61 = vld [vmem:[#allocation3 + $0x168] sm:$0xff]  ;;  %v1952_v63 = vld [vmem:[#allocation3 + $0x160] sm:$0xff]  ;;  %v1958_v4 = vld [vmem:[#allocation3 + $0x190] sm:$0xff] }
 0x5b6   :  { %v1960_v49 = vld [vmem:[#allocation3 + $0x1a0] sm:$0xff]  ;;  %v1957_v11 = vld [vmem:[#allocation3 + $0x188] sm:$0xff]  ;;  %v1959_v12 = vld [vmem:[#allocation3 + $0x198] sm:$0xff] }
 0x5b7   :  { %2405 = vmatpush1.bf16.msra.mxu0 %v1922_v23  ;;  %2569 = vmatpush1.bf16.msra.mxu1 %v1924_v42  ;;  %v1965_v13 = vld [vmem:[#allocation3 + $0x1c8] sm:$0xff]  ;;  %v1967_v5 = vld [vmem:[#allocation3 + $0x1d8] sm:$0xff]  ;;  %v1964_v14 = vld [vmem:[#allocation3 + $0x1c0] sm:$0xff] }
 0x5b8   :  { %2406 = vmatprep.subr.bf16.mxu0 %v1930_v43  ;;  %2570 = vmatprep.subr.bf16.mxu1 %v1932_v44  ;;  %v1966_v0 = vld [vmem:[#allocation3 + $0x1d0] sm:$0xff]  ;;  %v1972_v40 = vld [vmem:[#allocation3 + $0x200] sm:$0xff]  ;;  %v1971_v16 = vld [vmem:[#allocation3 + $0x1f8] sm:$0xff] }
 0x5b9   :  { %v1974_v15 = vld [vmem:[#allocation3 + $0x210] sm:$0xff]  ;;  %v1973_v17 = vld [vmem:[#allocation3 + $0x208] sm:$0xff]  ;;  %v1979_v8 = vld [vmem:[#allocation3 + $0x238] sm:$0xff] }
 0x5ba   :  { %v1981_v10 = vld [vmem:[#allocation3 + $0x248] sm:$0xff]  ;;  %v1978_v1 = vld [vmem:[#allocation3 + $0x230] sm:$0xff]  ;;  %v1980_v41 = vld [vmem:[#allocation3 + $0x240] sm:$0xff] }
 0x5bb   :  { %2407 = vmatpush1.bf16.msra.mxu0 %v1929_v45  ;;  %2571 = vmatpush1.bf16.msra.mxu1 %v1931_v46  ;;  %v1986_v28 = vld [vmem:[#allocation3 + $0x270] sm:$0xff]  ;;  %v1988_v3 = vld [vmem:[#allocation3 + $0x280] sm:$0xff]  ;;  %v1985_v22 = vld [vmem:[#allocation3 + $0x268] sm:$0xff] }
 0x5bc   :  { %2408 = vmatprep.subr.bf16.mxu0 %v1937_v47  ;;  %2572 = vmatprep.subr.bf16.mxu1 %v1939_v48  ;;  %v1987_v2 = vld [vmem:[#allocation3 + $0x278] sm:$0xff]  ;;  %v1993_v29 = vld [vmem:[#allocation3 + $0x2a8] sm:$0xff]  ;;  %v1992_v57 = vld [vmem:[#allocation3 + $0x2a0] sm:$0xff] }
 0x5bd   :  { %v1995_v30 = vld [vmem:[#allocation3 + $0x2b8] sm:$0xff]  ;;  %v1994_v33 = vld [vmem:[#allocation3 + $0x2b0] sm:$0xff]  ;;  %v2000_v34 = vld [vmem:[#allocation3 + $0x2e0] sm:$0xff] }
 0x5be   :  { %v2002_v35 = vld [vmem:[#allocation3 + $0x2f0] sm:$0xff]  ;;  %v1999_v36 = vld [vmem:[#allocation3 + $0x2d8] sm:$0xff]  ;;  %v2001_v62 = vld [vmem:[#allocation3 + $0x2e8] sm:$0xff] }
 0x5bf   :  { %2409 = vmatpush1.bf16.msra.mxu0 %v1936_v7  ;;  %2573 = vmatpush1.bf16.msra.mxu1 %v1938_v54  ;;  %v2007_v24 = vld [vmem:[#allocation3 + $0x318] sm:$0xff]  ;;  %v2009_v37 = vld [vmem:[#allocation3 + $0x328] sm:$0xff]  ;;  %v2006_v23 = vld [vmem:[#allocation3 + $0x310] sm:$0xff]  ;;  %v3933_v7 = vpack.c.bf16 %v3885_v18, %v3885_v18 }
 0x5c0   :  { %2410 = vmatprep.subr.bf16.mxu0 %v1944_v55  ;;  %2574 = vmatprep.subr.bf16.mxu1 %v1946_v56  ;;  %v2008_v42 = vld [vmem:[#allocation3 + $0x320] sm:$0xff]  ;;  %v2014_v43 = vld [vmem:[#allocation3 + $0x350] sm:$0xff]  ;;  %v2013_v45 = vld [vmem:[#allocation3 + $0x348] sm:$0xff] }
 0x5c1   :  { %v2016_v44 = vld [vmem:[#allocation3 + $0x360] sm:$0xff]  ;;  %v2015_v46 = vld [vmem:[#allocation3 + $0x358] sm:$0xff]  ;;  %v2021_v47 = vld [vmem:[#allocation3 + $0x388] sm:$0xff] }
 0x5c2   :  { %v2023_v48 = vld [vmem:[#allocation3 + $0x398] sm:$0xff]  ;;  %v2020_v54 = vld [vmem:[#allocation3 + $0x380] sm:$0xff]  ;;  %v2022_v55 = vld [vmem:[#allocation3 + $0x390] sm:$0xff] }
 0x5c3   :  { %2411 = vmatpush1.bf16.msra.mxu0 %v1943_v58  ;;  %2575 = vmatpush1.bf16.msra.mxu1 %v1945_v59  ;;  %v2028_v56 = vld [vmem:[#allocation3 + $0x3c0] sm:$0xff]  ;;  %v2030_v58 = vld [vmem:[#allocation3 + $0x3d0] sm:$0xff]  ;;  %v3937_v59 = vpack.c.bf16 %v3891_v25, %v3891_v25  ;;  %v2027_v18 = vld [vmem:[#allocation3 + $0x3b8] sm:$0xff] }
 0x5c4   :  { %2412 = vmatprep.subr.bf16.mxu0 %v1951_v60  ;;  %2576 = vmatprep.subr.bf16.mxu1 %v1953_v61  ;;  %v2029_v60 = vld [vmem:[#allocation3 + $0x3c8] sm:$0xff]  ;;  %v2035_v61 = vld [vmem:[#allocation3 + $0x3f8] sm:$0xff]  ;;  %v2034_v25 = vld [vmem:[#allocation3 + $0x3f0] sm:$0xff] }
 0x5c7   :  { %2413 = vmatpush1.bf16.msra.mxu0 %v1950_v38  ;;  %2577 = vmatpush1.bf16.msra.mxu1 %v1952_v63  ;;  %v2037_v38 = vld [vmem:[#allocation3 + $0x408] sm:$0xff]  ;;  %v2036_v63 = vld [vmem:[#allocation3 + $0x400] sm:$0xff] }
 0x5c8   :  { %2414 = vmatprep.subr.bf16.mxu0 %v1958_v4  ;;  %2578 = vmatprep.subr.bf16.mxu1 %v1960_v49  ;;  %v2042_v4 = vld [vmem:[#allocation3 + $0x430] sm:$0xff]  ;;  %v2044_v49 = vld [vmem:[#allocation3 + $0x440] sm:$0xff] }
 0x5cb   :  { %2415 = vmatpush1.bf16.msra.mxu0 %v1957_v11  ;;  %2579 = vmatpush1.bf16.msra.mxu1 %v1959_v12  ;;  %v2041_v11 = vld [vmem:[#allocation3 + $0x428] sm:$0xff]  ;;  %v2043_v12 = vld [vmem:[#allocation3 + $0x438] sm:$0xff] }
 0x5cc   :  { %2416 = vmatprep.subr.bf16.mxu0 %v1965_v13  ;;  %2580 = vmatprep.subr.bf16.mxu1 %v1967_v5  ;;  %v2049_v13 = vld [vmem:[#allocation3 + $0x468] sm:$0xff]  ;;  %v2051_v5 = vld [vmem:[#allocation3 + $0x478] sm:$0xff] }
 0x5cf   :  { %2417 = vmatpush1.bf16.msra.mxu0 %v1964_v14  ;;  %2581 = vmatpush1.bf16.msra.mxu1 %v1966_v0  ;;  %v2048_v14 = vld [vmem:[#allocation3 + $0x460] sm:$0xff]  ;;  %v2050_v0 = vld [vmem:[#allocation3 + $0x470] sm:$0xff] }
 0x5d0   :  { %2418 = vmatprep.subr.bf16.mxu0 %v1972_v40  ;;  %2582 = vmatprep.subr.bf16.mxu1 %v1974_v15  ;;  %v2056_v40 = vld [vmem:[#allocation3 + $0x4a0] sm:$0xff]  ;;  %v2058_v15 = vld [vmem:[#allocation3 + $0x4b0] sm:$0xff] }
 0x5d3   :  { %2419 = vmatpush1.bf16.msra.mxu0 %v1971_v16  ;;  %2583 = vmatpush1.bf16.msra.mxu1 %v1973_v17  ;;  %v2055_v16 = vld [vmem:[#allocation3 + $0x498] sm:$0xff]  ;;  %v2057_v17 = vld [vmem:[#allocation3 + $0x4a8] sm:$0xff] }
 0x5d4   :  { %2420 = vmatprep.subr.bf16.mxu0 %v1979_v8  ;;  %2584 = vmatprep.subr.bf16.mxu1 %v1981_v10  ;;  %v2063_v8 = vld [vmem:[#allocation3 + $0x4d8] sm:$0xff]  ;;  %v2065_v10 = vld [vmem:[#allocation3 + $0x4e8] sm:$0xff] }
 0x5d7   :  { %2421 = vmatpush1.bf16.msra.mxu0 %v1978_v1  ;;  %2585 = vmatpush1.bf16.msra.mxu1 %v1980_v41  ;;  %v2062_v1 = vld [vmem:[#allocation3 + $0x4d0] sm:$0xff]  ;;  %v2064_v41 = vld [vmem:[#allocation3 + $0x4e0] sm:$0xff] }
 0x5d8   :  { %2422 = vmatprep.subr.bf16.mxu0 %v1986_v28  ;;  %2586 = vmatprep.subr.bf16.mxu1 %v1988_v3  ;;  %v2070_v28 = vld [vmem:[#allocation3 + $0x510] sm:$0xff]  ;;  %v2072_v3 = vld [vmem:[#allocation3 + $0x520] sm:$0xff] }
 0x5db   :  { %2423 = vmatpush1.bf16.msra.mxu0 %v1985_v22  ;;  %2587 = vmatpush1.bf16.msra.mxu1 %v1987_v2  ;;  %v2069_v22 = vld [vmem:[#allocation3 + $0x508] sm:$0xff]  ;;  %v2071_v2 = vld [vmem:[#allocation3 + $0x518] sm:$0xff] }
 0x5dc   :  { %2424 = vmatprep.subr.bf16.mxu0 %v1993_v29  ;;  %2588 = vmatprep.subr.bf16.mxu1 %v1995_v30  ;;  %v2077_v29 = vld [vmem:[#allocation3 + $0x548] sm:$0xff]  ;;  %v2079_v30 = vld [vmem:[#allocation3 + $0x558] sm:$0xff] }
 0x5df   :  { %2425 = vmatpush1.bf16.msra.mxu0 %v1992_v57  ;;  %2589 = vmatpush1.bf16.msra.mxu1 %v1994_v33  ;;  %v2076_v57 = vld [vmem:[#allocation3 + $0x540] sm:$0xff]  ;;  %v2078_v33 = vld [vmem:[#allocation3 + $0x550] sm:$0xff] }
 0x5e0   :  { %2426 = vmatprep.subr.bf16.mxu0 %v2000_v34  ;;  %2590 = vmatprep.subr.bf16.mxu1 %v2002_v35  ;;  %v2084_v34 = vld [vmem:[#allocation3 + $0x580] sm:$0xff]  ;;  %v2086_v35 = vld [vmem:[#allocation3 + $0x590] sm:$0xff] }
 0x5e3   :  { %2427 = vmatpush1.bf16.msra.mxu0 %v1999_v36  ;;  %2591 = vmatpush1.bf16.msra.mxu1 %v2001_v62  ;;  %v2083_v36 = vld [vmem:[#allocation3 + $0x578] sm:$0xff]  ;;  %v2085_v62 = vld [vmem:[#allocation3 + $0x588] sm:$0xff] }
 0x5e4   :  { %2428 = vmatprep.subr.bf16.mxu0 %v2007_v24  ;;  %2592 = vmatprep.subr.bf16.mxu1 %v2009_v37  ;;  %v2091_v24 = vld [vmem:[#allocation3 + $0x5b8] sm:$0xff]  ;;  %v2093_v37 = vld [vmem:[#allocation3 + $0x5c8] sm:$0xff] }
 0x5e7   :  { %2429 = vmatpush1.bf16.msra.mxu0 %v2006_v23  ;;  %2593 = vmatpush1.bf16.msra.mxu1 %v2008_v42  ;;  %v2090_v23 = vld [vmem:[#allocation3 + $0x5b0] sm:$0xff]  ;;  %v2092_v42 = vld [vmem:[#allocation3 + $0x5c0] sm:$0xff] }
 0x5e8   :  { %2430 = vmatprep.subr.bf16.mxu0 %v2014_v43  ;;  %2594 = vmatprep.subr.bf16.mxu1 %v2016_v44  ;;  %v2098_v43 = vld [vmem:[#allocation3 + $0x5f0] sm:$0xff]  ;;  %v2100_v44 = vld [vmem:[#allocation3 + $0x600] sm:$0xff] }
 0x5eb   :  { %2431 = vmatpush1.bf16.msra.mxu0 %v2013_v45  ;;  %2595 = vmatpush1.bf16.msra.mxu1 %v2015_v46  ;;  %v2097_v45 = vld [vmem:[#allocation3 + $0x5e8] sm:$0xff]  ;;  %v2099_v46 = vld [vmem:[#allocation3 + $0x5f8] sm:$0xff] }
 0x5ec   :  { %2441 = vmatprep.subr.bf16.mxu0 %v2021_v47  ;;  %2605 = vmatprep.subr.bf16.mxu1 %v2023_v48  ;;  %v2105_v47 = vld [vmem:[#allocation3 + $0x628] sm:$0xff]  ;;  %v2107_v48 = vld [vmem:[#allocation3 + $0x638] sm:$0xff] }
 0x5ee   :  { %2433 = vmatmul.mubr.bf16.vlgmr.msra.gmra.mrb[12].mxu0 %v3933_v7  ;;  %2597 = vmatmul.mubr.bf16.vlgmr.msra.gmra.mrb[20].mxu1 %v3933_v7 }
 0x5ef   :  { %2442 = vmatpush1.bf16.msra.mxu0 %v2020_v54  ;;  %2606 = vmatpush1.bf16.msra.mxu1 %v2022_v55  ;;  %v2104_v54 = vld [vmem:[#allocation3 + $0x620] sm:$0xff]  ;;  %v2106_v55 = vld [vmem:[#allocation3 + $0x630] sm:$0xff] }
 0x5f0   :  { %2443 = vmatprep.subr.bf16.mxu0 %v2028_v56  ;;  %2607 = vmatprep.subr.bf16.mxu1 %v2030_v58  ;;  %v2112_v56 = vld [vmem:[#allocation3 + $0x660] sm:$0xff]  ;;  %v2114_v58 = vld [vmem:[#allocation3 + $0x670] sm:$0xff] }
 0x5f1   :  { %2473 = vmatprep.mubr.bf16.mxu0 %v3937_v59  ;;  %2637 = vmatprep.mubr.bf16.mxu1 %v3937_v59 }
 0x5f3   :  { %2444 = vmatpush1.bf16.msra.mxu0 %v2027_v18  ;;  %2608 = vmatpush1.bf16.msra.mxu1 %v2029_v60  ;;  %v2111_v18 = vld [vmem:[#allocation3 + $0x658] sm:$0xff]  ;;  %v2113_v60 = vld [vmem:[#allocation3 + $0x668] sm:$0xff] }
 0x5f4   :  { %2445 = vmatprep.subr.bf16.mxu0 %v2035_v61  ;;  %2609 = vmatprep.subr.bf16.mxu1 %v2037_v38  ;;  %v2119_v61 = vld [vmem:[#allocation3 + $0x698] sm:$0xff]  ;;  %v2121_v38 = vld [vmem:[#allocation3 + $0x6a8] sm:$0xff] }
 0x5f7   :  { %2446 = vmatpush1.bf16.msra.mxu0 %v2034_v25  ;;  %2610 = vmatpush1.bf16.msra.mxu1 %v2036_v63  ;;  %v2118_v25 = vld [vmem:[#allocation3 + $0x690] sm:$0xff]  ;;  %v2120_v63 = vld [vmem:[#allocation3 + $0x6a0] sm:$0xff] }
 0x5f8   :  { %2447 = vmatprep.subr.bf16.mxu0 %v2042_v4  ;;  %2611 = vmatprep.subr.bf16.mxu1 %v2044_v49  ;;  %v2126_v4 = vld [vmem:[#allocation3 + $0x6d0] sm:$0xff]  ;;  %v2128_v49 = vld [vmem:[#allocation3 + $0x6e0] sm:$0xff] }
 0x5fb   :  { %2448 = vmatpush1.bf16.msra.mxu0 %v2041_v11  ;;  %2612 = vmatpush1.bf16.msra.mxu1 %v2043_v12  ;;  %v2125_v11 = vld [vmem:[#allocation3 + $0x6c8] sm:$0xff]  ;;  %v2127_v12 = vld [vmem:[#allocation3 + $0x6d8] sm:$0xff] }
 0x5fc   :  { %2449 = vmatprep.subr.bf16.mxu0 %v2049_v13  ;;  %2613 = vmatprep.subr.bf16.mxu1 %v2051_v5  ;;  %v2133_v13 = vld [vmem:[#allocation3 + $0x708] sm:$0xff]  ;;  %v2135_v5 = vld [vmem:[#allocation3 + $0x718] sm:$0xff] }
 0x5ff   :  { %2450 = vmatpush1.bf16.msra.mxu0 %v2048_v14  ;;  %2614 = vmatpush1.bf16.msra.mxu1 %v2050_v0  ;;  %v3945_v14 = vpack.c.bf16 %v3887_v19, %v3887_v19  ;;  %v2132_v0 = vld [vmem:[#allocation3 + $0x700] sm:$0xff]  ;;  %v2139_v19 = vld [vmem:[#allocation3 + $0x738] sm:$0xff] }
 0x600   :  { %2451 = vmatprep.subr.bf16.mxu0 %v2056_v40  ;;  %2615 = vmatprep.subr.bf16.mxu1 %v2058_v15  ;;  %v2134_v40 = vld [vmem:[#allocation3 + $0x710] sm:$0xff]  ;;  %v2140_v15 = vld [vmem:[#allocation3 + $0x740] sm:$0xff] }
 0x603   :  { %2452 = vmatpush1.bf16.msra.mxu0 %v2055_v16  ;;  %2616 = vmatpush1.bf16.msra.mxu1 %v2057_v17  ;;  %v2142_v16 = vld [vmem:[#allocation3 + $0x750] sm:$0xff]  ;;  %v3949_v17 = vpack.c.bf16 %v3921_v26, %v3921_v26 }
 0x604   :  { %2453 = vmatprep.subr.bf16.mxu0 %v2063_v8  ;;  %2617 = vmatprep.subr.bf16.mxu1 %v2065_v10  ;;  %v2141_v8 = vld [vmem:[#allocation3 + $0x748] sm:$0xff]  ;;  %v2147_v10 = vld [vmem:[#allocation3 + $0x778] sm:$0xff]  ;;  %v2146_v26 = vld [vmem:[#allocation3 + $0x770] sm:$0xff] }
 0x607   :  { %2454 = vmatpush1.bf16.msra.mxu0 %v2062_v1  ;;  %2618 = vmatpush1.bf16.msra.mxu1 %v2064_v41  ;;  %v2149_v1 = vld [vmem:[#allocation3 + $0x788] sm:$0xff]  ;;  %v2148_v41 = vld [vmem:[#allocation3 + $0x780] sm:$0xff] }
 0x608   :  { %2455 = vmatprep.subr.bf16.mxu0 %v2070_v28  ;;  %2619 = vmatprep.subr.bf16.mxu1 %v2072_v3  ;;  %v2154_v28 = vld [vmem:[#allocation3 + $0x7b0] sm:$0xff]  ;;  %v2156_v3 = vld [vmem:[#allocation3 + $0x7c0] sm:$0xff] }
 0x60b   :  { %2456 = vmatpush1.bf16.msra.mxu0 %v2069_v22  ;;  %2620 = vmatpush1.bf16.msra.mxu1 %v2071_v2  ;;  %v2153_v22 = vld [vmem:[#allocation3 + $0x7a8] sm:$0xff]  ;;  %v2155_v2 = vld [vmem:[#allocation3 + $0x7b8] sm:$0xff] }
 0x60c   :  { %2457 = vmatprep.subr.bf16.mxu0 %v2077_v29  ;;  %2621 = vmatprep.subr.bf16.mxu1 %v2079_v30  ;;  %v2161_v29 = vld [vmem:[#allocation3 + $0x7e8] sm:$0xff]  ;;  %v2163_v30 = vld [vmem:[#allocation3 + $0x7f8] sm:$0xff] }
 0x60f   :  { %2458 = vmatpush1.bf16.msra.mxu0 %v2076_v57  ;;  %2622 = vmatpush1.bf16.msra.mxu1 %v2078_v33  ;;  %v2160_v57 = vld [vmem:[#allocation3 + $0x7e0] sm:$0xff]  ;;  %v2162_v33 = vld [vmem:[#allocation3 + $0x7f0] sm:$0xff] }
 0x610   :  { %2459 = vmatprep.subr.bf16.mxu0 %v2084_v34  ;;  %2623 = vmatprep.subr.bf16.mxu1 %v2086_v35  ;;  %v2168_v34 = vld [vmem:[#allocation3 + $0x820] sm:$0xff]  ;;  %v2170_v35 = vld [vmem:[#allocation3 + $0x830] sm:$0xff] }
 0x613   :  { %2460 = vmatpush1.bf16.msra.mxu0 %v2083_v36  ;;  %2624 = vmatpush1.bf16.msra.mxu1 %v2085_v62  ;;  %v2167_v36 = vld [vmem:[#allocation3 + $0x818] sm:$0xff]  ;;  %v2169_v62 = vld [vmem:[#allocation3 + $0x828] sm:$0xff] }
 0x614   :  { %2461 = vmatprep.subr.bf16.mxu0 %v2091_v24  ;;  %2625 = vmatprep.subr.bf16.mxu1 %v2093_v37  ;;  %v2175_v24 = vld [vmem:[#allocation3 + $0x858] sm:$0xff]  ;;  %v2177_v37 = vld [vmem:[#allocation3 + $0x868] sm:$0xff] }
 0x617   :  { %2462 = vmatpush1.bf16.msra.mxu0 %v2090_v23  ;;  %2626 = vmatpush1.bf16.msra.mxu1 %v2092_v42  ;;  %v2174_v23 = vld [vmem:[#allocation3 + $0x850] sm:$0xff]  ;;  %v2176_v42 = vld [vmem:[#allocation3 + $0x860] sm:$0xff] }
 0x618   :  { %2463 = vmatprep.subr.bf16.mxu0 %v2098_v43  ;;  %2627 = vmatprep.subr.bf16.mxu1 %v2100_v44  ;;  %v2182_v43 = vld [vmem:[#allocation3 + $0x890] sm:$0xff]  ;;  %v2184_v44 = vld [vmem:[#allocation3 + $0x8a0] sm:$0xff] }
 0x61b   :  { %2464 = vmatpush1.bf16.msra.mxu0 %v2097_v45  ;;  %2628 = vmatpush1.bf16.msra.mxu1 %v2099_v46  ;;  %v2181_v45 = vld [vmem:[#allocation3 + $0x888] sm:$0xff]  ;;  %v2183_v46 = vld [vmem:[#allocation3 + $0x898] sm:$0xff] }
 0x61c   :  { %2465 = vmatprep.subr.bf16.mxu0 %v2105_v47  ;;  %2629 = vmatprep.subr.bf16.mxu1 %v2107_v48  ;;  %v2189_v47 = vld [vmem:[#allocation3 + $0x8c8] sm:$0xff]  ;;  %v2191_v48 = vld [vmem:[#allocation3 + $0x8d8] sm:$0xff] }
 0x61f   :  { %2466 = vmatpush1.bf16.msra.mxu0 %v2104_v54  ;;  %2630 = vmatpush1.bf16.msra.mxu1 %v2106_v55  ;;  %v2188_v54 = vld [vmem:[#allocation3 + $0x8c0] sm:$0xff]  ;;  %v2190_v55 = vld [vmem:[#allocation3 + $0x8d0] sm:$0xff] }
 0x620   :  { %2467 = vmatprep.subr.bf16.mxu0 %v2112_v56  ;;  %2631 = vmatprep.subr.bf16.mxu1 %v2114_v58  ;;  %v2196_v56 = vld [vmem:[#allocation3 + $0x900] sm:$0xff]  ;;  %v2198_v58 = vld [vmem:[#allocation3 + $0x910] sm:$0xff] }
 0x623   :  { %2468 = vmatpush1.bf16.msra.mxu0 %v2111_v18  ;;  %2632 = vmatpush1.bf16.msra.mxu1 %v2113_v60  ;;  %v2195_v18 = vld [vmem:[#allocation3 + $0x8f8] sm:$0xff]  ;;  %v2197_v60 = vld [vmem:[#allocation3 + $0x908] sm:$0xff] }
 0x624   :  { %2469 = vmatprep.subr.bf16.mxu0 %v2119_v61  ;;  %2633 = vmatprep.subr.bf16.mxu1 %v2121_v38  ;;  %v2203_v61 = vld [vmem:[#allocation3 + $0x938] sm:$0xff]  ;;  %v2205_v38 = vld [vmem:[#allocation3 + $0x948] sm:$0xff] }
 0x627   :  { %2470 = vmatpush1.bf16.msra.mxu0 %v2118_v25  ;;  %2634 = vmatpush1.bf16.msra.mxu1 %v2120_v63  ;;  %v2202_v25 = vld [vmem:[#allocation3 + $0x930] sm:$0xff]  ;;  %v2204_v63 = vld [vmem:[#allocation3 + $0x940] sm:$0xff] }
 0x628   :  { %2471 = vmatprep.subr.bf16.mxu0 %v2126_v4  ;;  %2635 = vmatprep.subr.bf16.mxu1 %v2128_v49  ;;  %v2210_v4 = vld [vmem:[#allocation3 + $0x970] sm:$0xff]  ;;  %v2212_v49 = vld [vmem:[#allocation3 + $0x980] sm:$0xff] }
 0x62b   :  { %2472 = vmatpush1.bf16.msra.mxu0 %v2125_v11  ;;  %2636 = vmatpush1.bf16.msra.mxu1 %v2127_v12  ;;  %v2209_v11 = vld [vmem:[#allocation3 + $0x968] sm:$0xff]  ;;  %v2211_v12 = vld [vmem:[#allocation3 + $0x978] sm:$0xff] }
 0x62c   :  { %2482 = vmatprep.subr.bf16.mxu0 %v2133_v13  ;;  %2646 = vmatprep.subr.bf16.mxu1 %v2135_v5  ;;  %v2217_v13 = vld [vmem:[#allocation3 + $0x9a8] sm:$0xff]  ;;  %v2219_v5 = vld [vmem:[#allocation3 + $0x9b8] sm:$0xff] }
 0x62e   :  { %2474 = vmatmul.mubr.bf16.vlgmr.msra.gmra.mrb[12].mxu0 %v3945_v14  ;;  %2638 = vmatmul.mubr.bf16.vlgmr.msra.gmra.mrb[20].mxu1 %v3945_v14 }
 0x62f   :  { %2483 = vmatpush1.bf16.msra.mxu0 %v2132_v0  ;;  %2647 = vmatpush1.bf16.msra.mxu1 %v2134_v40  ;;  %v2216_v0 = vld [vmem:[#allocation3 + $0x9a0] sm:$0xff]  ;;  %v2218_v40 = vld [vmem:[#allocation3 + $0x9b0] sm:$0xff] }
 0x630   :  { %2484 = vmatprep.subr.bf16.mxu0 %v2140_v15  ;;  %2648 = vmatprep.subr.bf16.mxu1 %v2142_v16  ;;  %v2224_v15 = vld [vmem:[#allocation3 + $0x9e0] sm:$0xff]  ;;  %v2226_v16 = vld [vmem:[#allocation3 + $0x9f0] sm:$0xff] }
 0x631   :  { %2514 = vmatprep.mubr.bf16.mxu0 %v3949_v17  ;;  %2678 = vmatprep.mubr.bf16.mxu1 %v3949_v17 }
 0x633   :  { %2485 = vmatpush1.bf16.msra.mxu0 %v2139_v19  ;;  %2649 = vmatpush1.bf16.msra.mxu1 %v2141_v8  ;;  %v2223_v19 = vld [vmem:[#allocation3 + $0x9d8] sm:$0xff]  ;;  %v2225_v8 = vld [vmem:[#allocation3 + $0x9e8] sm:$0xff] }
 0x634   :  { %2486 = vmatprep.subr.bf16.mxu0 %v2147_v10  ;;  %2650 = vmatprep.subr.bf16.mxu1 %v2149_v1  ;;  %v2231_v10 = vld [vmem:[#allocation3 + $0xa18] sm:$0xff]  ;;  %v2233_v1 = vld [vmem:[#allocation3 + $0xa28] sm:$0xff] }
 0x637   :  { %2487 = vmatpush1.bf16.msra.mxu0 %v2146_v26  ;;  %2651 = vmatpush1.bf16.msra.mxu1 %v2148_v41  ;;  %v2230_v26 = vld [vmem:[#allocation3 + $0xa10] sm:$0xff]  ;;  %v2232_v41 = vld [vmem:[#allocation3 + $0xa20] sm:$0xff] }
 0x638   :  { %2488 = vmatprep.subr.bf16.mxu0 %v2154_v28  ;;  %2652 = vmatprep.subr.bf16.mxu1 %v2156_v3  ;;  %v2238_v28 = vld [vmem:[#allocation3 + $0xa50] sm:$0xff]  ;;  %v2240_v3 = vld [vmem:[#allocation3 + $0xa60] sm:$0xff] }
 0x63b   :  { %2489 = vmatpush1.bf16.msra.mxu0 %v2153_v22  ;;  %2653 = vmatpush1.bf16.msra.mxu1 %v2155_v2  ;;  %v2237_v22 = vld [vmem:[#allocation3 + $0xa48] sm:$0xff]  ;;  %v2239_v2 = vld [vmem:[#allocation3 + $0xa58] sm:$0xff] }
 0x63c   :  { %2490 = vmatprep.subr.bf16.mxu0 %v2161_v29  ;;  %2654 = vmatprep.subr.bf16.mxu1 %v2163_v30  ;;  %v2245_v29 = vld [vmem:[#allocation3 + $0xa88] sm:$0xff]  ;;  %v2247_v30 = vld [vmem:[#allocation3 + $0xa98] sm:$0xff] }
 0x63f   :  { %2491 = vmatpush1.bf16.msra.mxu0 %v2160_v57  ;;  %2655 = vmatpush1.bf16.msra.mxu1 %v2162_v33  ;;  %v3957_v57 = vpack.c.bf16 %v3917_v31, %v3917_v31  ;;  %v2244_v33 = vld [vmem:[#allocation3 + $0xa80] sm:$0xff]  ;;  %v2251_v31 = vld [vmem:[#allocation3 + $0xab8] sm:$0xff] }
 0x640   :  { %2492 = vmatprep.subr.bf16.mxu0 %v2168_v34  ;;  %2656 = vmatprep.subr.bf16.mxu1 %v2170_v35  ;;  %v2246_v34 = vld [vmem:[#allocation3 + $0xa90] sm:$0xff]  ;;  %v2252_v35 = vld [vmem:[#allocation3 + $0xac0] sm:$0xff] }
 0x643   :  { %2493 = vmatpush1.bf16.msra.mxu0 %v2167_v36  ;;  %2657 = vmatpush1.bf16.msra.mxu1 %v2169_v62  ;;  %v2254_v36 = vld [vmem:[#allocation3 + $0xad0] sm:$0xff]  ;;  %v3961_v62 = vpack.c.bf16 %v3923_v6, %v3923_v6 }
 0x644   :  { %2494 = vmatprep.subr.bf16.mxu0 %v2175_v24  ;;  %2658 = vmatprep.subr.bf16.mxu1 %v2177_v37  ;;  %v2253_v24 = vld [vmem:[#allocation3 + $0xac8] sm:$0xff]  ;;  %v2259_v37 = vld [vmem:[#allocation3 + $0xaf8] sm:$0xff]  ;;  %v2258_v6 = vld [vmem:[#allocation3 + $0xaf0] sm:$0xff] }
 0x647   :  { %2495 = vmatpush1.bf16.msra.mxu0 %v2174_v23  ;;  %2659 = vmatpush1.bf16.msra.mxu1 %v2176_v42  ;;  %v2261_v23 = vld [vmem:[#allocation3 + $0xb08] sm:$0xff]  ;;  %v2260_v42 = vld [vmem:[#allocation3 + $0xb00] sm:$0xff] }
 0x648   :  { %2496 = vmatprep.subr.bf16.mxu0 %v2182_v43  ;;  %2660 = vmatprep.subr.bf16.mxu1 %v2184_v44  ;;  %v2266_v43 = vld [vmem:[#allocation3 + $0xb30] sm:$0xff]  ;;  %v2268_v44 = vld [vmem:[#allocation3 + $0xb40] sm:$0xff] }
 0x64b   :  { %2497 = vmatpush1.bf16.msra.mxu0 %v2181_v45  ;;  %2661 = vmatpush1.bf16.msra.mxu1 %v2183_v46  ;;  %v2265_v45 = vld [vmem:[#allocation3 + $0xb28] sm:$0xff]  ;;  %v2267_v46 = vld [vmem:[#allocation3 + $0xb38] sm:$0xff] }
 0x64c   :  { %2498 = vmatprep.subr.bf16.mxu0 %v2189_v47  ;;  %2662 = vmatprep.subr.bf16.mxu1 %v2191_v48  ;;  %v2273_v47 = vld [vmem:[#allocation3 + $0xb68] sm:$0xff]  ;;  %v2275_v48 = vld [vmem:[#allocation3 + $0xb78] sm:$0xff] }
 0x64f   :  { %2499 = vmatpush1.bf16.msra.mxu0 %v2188_v54  ;;  %2663 = vmatpush1.bf16.msra.mxu1 %v2190_v55  ;;  %v2272_v54 = vld [vmem:[#allocation3 + $0xb60] sm:$0xff]  ;;  %v2274_v55 = vld [vmem:[#allocation3 + $0xb70] sm:$0xff] }
 0x650   :  { %2500 = vmatprep.subr.bf16.mxu0 %v2196_v56  ;;  %2664 = vmatprep.subr.bf16.mxu1 %v2198_v58  ;;  %v2280_v56 = vld [vmem:[#allocation3 + $0xba0] sm:$0xff]  ;;  %v2282_v58 = vld [vmem:[#allocation3 + $0xbb0] sm:$0xff] }
 0x653   :  { %2501 = vmatpush1.bf16.msra.mxu0 %v2195_v18  ;;  %2665 = vmatpush1.bf16.msra.mxu1 %v2197_v60  ;;  %v2279_v18 = vld [vmem:[#allocation3 + $0xb98] sm:$0xff]  ;;  %v2281_v60 = vld [vmem:[#allocation3 + $0xba8] sm:$0xff] }
 0x654   :  { %2502 = vmatprep.subr.bf16.mxu0 %v2203_v61  ;;  %2666 = vmatprep.subr.bf16.mxu1 %v2205_v38  ;;  %v2287_v61 = vld [vmem:[#allocation3 + $0xbd8] sm:$0xff]  ;;  %v2289_v38 = vld [vmem:[#allocation3 + $0xbe8] sm:$0xff] }
 0x657   :  { %2503 = vmatpush1.bf16.msra.mxu0 %v2202_v25  ;;  %2667 = vmatpush1.bf16.msra.mxu1 %v2204_v63  ;;  %v2286_v25 = vld [vmem:[#allocation3 + $0xbd0] sm:$0xff]  ;;  %v2288_v63 = vld [vmem:[#allocation3 + $0xbe0] sm:$0xff] }
 0x658   :  { %2504 = vmatprep.subr.bf16.mxu0 %v2210_v4  ;;  %2668 = vmatprep.subr.bf16.mxu1 %v2212_v49  ;;  %v2294_v4 = vld [vmem:[#allocation3 + $0xc10] sm:$0xff]  ;;  %v2296_v49 = vld [vmem:[#allocation3 + $0xc20] sm:$0xff] }
 0x65b   :  { %2505 = vmatpush1.bf16.msra.mxu0 %v2209_v11  ;;  %2669 = vmatpush1.bf16.msra.mxu1 %v2211_v12  ;;  %v2293_v11 = vld [vmem:[#allocation3 + $0xc08] sm:$0xff]  ;;  %v2295_v12 = vld [vmem:[#allocation3 + $0xc18] sm:$0xff] }
 0x65c   :  { %2506 = vmatprep.subr.bf16.mxu0 %v2217_v13  ;;  %2670 = vmatprep.subr.bf16.mxu1 %v2219_v5  ;;  %v2301_v13 = vld [vmem:[#allocation3 + $0xc48] sm:$0xff]  ;;  %v2303_v5 = vld [vmem:[#allocation3 + $0xc58] sm:$0xff] }
 0x65f   :  { %2507 = vmatpush1.bf16.msra.mxu0 %v2216_v0  ;;  %2671 = vmatpush1.bf16.msra.mxu1 %v2218_v40  ;;  %v2300_v0 = vld [vmem:[#allocation3 + $0xc40] sm:$0xff]  ;;  %v2302_v40 = vld [vmem:[#allocation3 + $0xc50] sm:$0xff] }
 0x660   :  { %2508 = vmatprep.subr.bf16.mxu0 %v2224_v15  ;;  %2672 = vmatprep.subr.bf16.mxu1 %v2226_v16  ;;  %v2308_v15 = vld [vmem:[#allocation3 + $0xc80] sm:$0xff]  ;;  %v2310_v16 = vld [vmem:[#allocation3 + $0xc90] sm:$0xff] }
 0x663   :  { %2509 = vmatpush1.bf16.msra.mxu0 %v2223_v19  ;;  %2673 = vmatpush1.bf16.msra.mxu1 %v2225_v8  ;;  %v2307_v19 = vld [vmem:[#allocation3 + $0xc78] sm:$0xff]  ;;  %v2309_v8 = vld [vmem:[#allocation3 + $0xc88] sm:$0xff] }
 0x664   :  { %2510 = vmatprep.subr.bf16.mxu0 %v2231_v10  ;;  %2674 = vmatprep.subr.bf16.mxu1 %v2233_v1  ;;  %v2315_v10 = vld [vmem:[#allocation3 + $0xcb8] sm:$0xff]  ;;  %v2317_v1 = vld [vmem:[#allocation3 + $0xcc8] sm:$0xff] }
 0x667   :  { %2511 = vmatpush1.bf16.msra.mxu0 %v2230_v26  ;;  %2675 = vmatpush1.bf16.msra.mxu1 %v2232_v41  ;;  %v2314_v26 = vld [vmem:[#allocation3 + $0xcb0] sm:$0xff]  ;;  %v2316_v41 = vld [vmem:[#allocation3 + $0xcc0] sm:$0xff] }
 0x668   :  { %2512 = vmatprep.subr.bf16.mxu0 %v2238_v28  ;;  %2676 = vmatprep.subr.bf16.mxu1 %v2240_v3  ;;  %v2322_v28 = vld [vmem:[#allocation3 + $0xcf0] sm:$0xff]  ;;  %v2324_v3 = vld [vmem:[#allocation3 + $0xd00] sm:$0xff] }
 0x66b   :  { %2513 = vmatpush1.bf16.msra.mxu0 %v2237_v22  ;;  %2677 = vmatpush1.bf16.msra.mxu1 %v2239_v2  ;;  %v2321_v22 = vld [vmem:[#allocation3 + $0xce8] sm:$0xff]  ;;  %v2323_v2 = vld [vmem:[#allocation3 + $0xcf8] sm:$0xff] }
 0x66c   :  { %2523 = vmatprep.subr.bf16.mxu0 %v2245_v29  ;;  %2687 = vmatprep.subr.bf16.mxu1 %v2247_v30  ;;  %v2329_v29 = vld [vmem:[#allocation3 + $0xd28] sm:$0xff]  ;;  %v2331_v30 = vld [vmem:[#allocation3 + $0xd38] sm:$0xff] }
 0x66e   :  { %2515 = vmatmul.mubr.bf16.vlgmr.msra.gmra.mrb[12].mxu0 %v3957_v57  ;;  %2679 = vmatmul.mubr.bf16.vlgmr.msra.gmra.mrb[20].mxu1 %v3957_v57 }
 0x66f   :  { %2524 = vmatpush1.bf16.msra.mxu0 %v2244_v33  ;;  %2688 = vmatpush1.bf16.msra.mxu1 %v2246_v34  ;;  %v2328_v33 = vld [vmem:[#allocation3 + $0xd20] sm:$0xff]  ;;  %v2330_v34 = vld [vmem:[#allocation3 + $0xd30] sm:$0xff] }
 0x670   :  { %2525 = vmatprep.subr.bf16.mxu0 %v2252_v35  ;;  %2689 = vmatprep.subr.bf16.mxu1 %v2254_v36  ;;  %v2336_v35 = vld [vmem:[#allocation3 + $0xd60] sm:$0xff]  ;;  %v2338_v36 = vld [vmem:[#allocation3 + $0xd70] sm:$0xff] }
 0x671   :  { %2555 = vmatprep.mubr.bf16.mxu0 %v3961_v62  ;;  %2719 = vmatprep.mubr.bf16.mxu1 %v3961_v62 }
 0x673   :  { %2526 = vmatpush1.bf16.msra.mxu0 %v2251_v31  ;;  %2690 = vmatpush1.bf16.msra.mxu1 %v2253_v24  ;;  %v2335_v31 = vld [vmem:[#allocation3 + $0xd58] sm:$0xff]  ;;  %v2337_v24 = vld [vmem:[#allocation3 + $0xd68] sm:$0xff] }
 0x674   :  { %2527 = vmatprep.subr.bf16.mxu0 %v2259_v37  ;;  %2691 = vmatprep.subr.bf16.mxu1 %v2261_v23  ;;  %v2343_v37 = vld [vmem:[#allocation3 + $0xd98] sm:$0xff]  ;;  %v2345_v23 = vld [vmem:[#allocation3 + $0xda8] sm:$0xff] }
 0x677   :  { %2528 = vmatpush1.bf16.msra.mxu0 %v2258_v6  ;;  %2692 = vmatpush1.bf16.msra.mxu1 %v2260_v42  ;;  %v2342_v6 = vld [vmem:[#allocation3 + $0xd90] sm:$0xff]  ;;  %v2344_v42 = vld [vmem:[#allocation3 + $0xda0] sm:$0xff] }
 0x678   :  { %2529 = vmatprep.subr.bf16.mxu0 %v2266_v43  ;;  %2693 = vmatprep.subr.bf16.mxu1 %v2268_v44  ;;  %v2350_v43 = vld [vmem:[#allocation3 + $0xdd0] sm:$0xff]  ;;  %v2352_v44 = vld [vmem:[#allocation3 + $0xde0] sm:$0xff] }
 0x67b   :  { %2530 = vmatpush1.bf16.msra.mxu0 %v2265_v45  ;;  %2694 = vmatpush1.bf16.msra.mxu1 %v2267_v46  ;;  %v2349_v45 = vld [vmem:[#allocation3 + $0xdc8] sm:$0xff]  ;;  %v2351_v46 = vld [vmem:[#allocation3 + $0xdd8] sm:$0xff] }
 0x67c   :  { %2531 = vmatprep.subr.bf16.mxu0 %v2273_v47  ;;  %2695 = vmatprep.subr.bf16.mxu1 %v2275_v48  ;;  %v1913_v47 = vld [vmem:[#allocation3 + $0x28] sm:$0xff]  ;;  %v1970_v48 = vld [vmem:[#allocation3 + $0x1f0] sm:$0xff] }
 0x67f   :  { %2532 = vmatpush1.bf16.msra.mxu0 %v2272_v54  ;;  %2696 = vmatpush1.bf16.msra.mxu1 %v2274_v55  ;;  %v3969_v54 = vpack.c.bf16 %v3919_v32, %v3919_v32  ;;  %v1912_v55 = vld [vmem:[#allocation3 + $0x20] sm:$0xff]  ;;  %v1927_v32 = vld [vmem:[#allocation3 + $0x98] sm:$0xff] }
 0x680   :  { %2533 = vmatprep.subr.bf16.mxu0 %v2280_v56  ;;  %2697 = vmatprep.subr.bf16.mxu1 %v2282_v58  ;;  %v1914_v56 = vld [vmem:[#allocation3 + $0x30] sm:$0xff]  ;;  %v1920_v58 = vld [vmem:[#allocation3 + $0x60] sm:$0xff] }
 0x683   :  { %2534 = vmatpush1.bf16.msra.mxu0 %v2279_v18  ;;  %2698 = vmatpush1.bf16.msra.mxu1 %v2281_v60  ;;  %v1977_v18 = vld [vmem:[#allocation3 + $0x228] sm:$0xff]  ;;  %v1919_v60 = vld [vmem:[#allocation3 + $0x58] sm:$0xff] }
 0x684   :  { %2535 = vmatprep.subr.bf16.mxu0 %v2287_v61  ;;  %2699 = vmatprep.subr.bf16.mxu1 %v2289_v38  ;;  %v1921_v61 = vld [vmem:[#allocation3 + $0x68] sm:$0xff]  ;;  %v1984_v38 = vld [vmem:[#allocation3 + $0x260] sm:$0xff] }
 0x687   :  { %2536 = vmatpush1.bf16.msra.mxu0 %v2286_v25  ;;  %2700 = vmatpush1.bf16.msra.mxu1 %v2288_v63  ;;  %v1926_v25 = vld [vmem:[#allocation3 + $0x90] sm:$0xff]  ;;  %v1928_v63 = vld [vmem:[#allocation3 + $0xa0] sm:$0xff] }
 0x688   :  { %2537 = vmatprep.subr.bf16.mxu0 %v2294_v4  ;;  %2701 = vmatprep.subr.bf16.mxu1 %v2296_v49  ;;  %v1934_v4 = vld [vmem:[#allocation3 + $0xd0] sm:$0xff]  ;;  %v1991_v49 = vld [vmem:[#allocation3 + $0x298] sm:$0xff] }
 0x68b   :  { %2538 = vmatpush1.bf16.msra.mxu0 %v2293_v11  ;;  %2702 = vmatpush1.bf16.msra.mxu1 %v2295_v12  ;;  %v1933_v11 = vld [vmem:[#allocation3 + $0xc8] sm:$0xff]  ;;  %v1935_v12 = vld [vmem:[#allocation3 + $0xd8] sm:$0xff] }
 0x68c   :  { %2539 = vmatprep.subr.bf16.mxu0 %v2301_v13  ;;  %2703 = vmatprep.subr.bf16.mxu1 %v2303_v5  ;;  %v1941_v13 = vld [vmem:[#allocation3 + $0x108] sm:$0xff]  ;;  %v1998_v5 = vld [vmem:[#allocation3 + $0x2d0] sm:$0xff] }
 0x68f   :  { %2540 = vmatpush1.bf16.msra.mxu0 %v2300_v0  ;;  %2704 = vmatpush1.bf16.msra.mxu1 %v2302_v40  ;;  %v1942_v0 = vld [vmem:[#allocation3 + $0x110] sm:$0xff]  ;;  %v1948_v40 = vld [vmem:[#allocation3 + $0x140] sm:$0xff] }
 0x690   :  { %2541 = vmatprep.subr.bf16.mxu0 %v2308_v15  ;;  %2705 = vmatprep.subr.bf16.mxu1 %v2310_v16  ;;  %v2005_v15 = vld [vmem:[#allocation3 + $0x308] sm:$0xff]  ;;  %v1947_v16 = vld [vmem:[#allocation3 + $0x138] sm:$0xff] }
 0x693   :  { %2542 = vmatpush1.bf16.msra.mxu0 %v2307_v19  ;;  %2706 = vmatpush1.bf16.msra.mxu1 %v2309_v8  ;;  %v1949_v19 = vld [vmem:[#allocation3 + $0x148] sm:$0xff]  ;;  %v1955_v8 = vld [vmem:[#allocation3 + $0x178] sm:$0xff] }
 0x694   :  { %2543 = vmatprep.subr.bf16.mxu0 %v2315_v10  ;;  %2707 = vmatprep.subr.bf16.mxu1 %v2317_v1  ;;  %v2012_v10 = vld [vmem:[#allocation3 + $0x340] sm:$0xff]  ;;  %v1954_v1 = vld [vmem:[#allocation3 + $0x170] sm:$0xff] }
 0x697   :  { %2544 = vmatpush1.bf16.msra.mxu0 %v2314_v26  ;;  %2708 = vmatpush1.bf16.msra.mxu1 %v2316_v41  ;;  %v1956_v26 = vld [vmem:[#allocation3 + $0x180] sm:$0xff]  ;;  %v1962_v41 = vld [vmem:[#allocation3 + $0x1b0] sm:$0xff] }
 0x698   :  { %2545 = vmatprep.subr.bf16.mxu0 %v2322_v28  ;;  %2709 = vmatprep.subr.bf16.mxu1 %v2324_v3  ;;  %v2019_v28 = vld [vmem:[#allocation3 + $0x378] sm:$0xff]  ;;  %v1961_v3 = vld [vmem:[#allocation3 + $0x1a8] sm:$0xff] }
 0x69b   :  { %2546 = vmatpush1.bf16.msra.mxu0 %v2321_v22  ;;  %2710 = vmatpush1.bf16.msra.mxu1 %v2323_v2  ;;  %v1963_v22 = vld [vmem:[#allocation3 + $0x1b8] sm:$0xff]  ;;  %v1969_v2 = vld [vmem:[#allocation3 + $0x1e8] sm:$0xff] }
 0x69c   :  { %2547 = vmatprep.subr.bf16.mxu0 %v2329_v29  ;;  %2711 = vmatprep.subr.bf16.mxu1 %v2331_v30  ;;  %v2082_v29 = vld [vmem:[#allocation3 + $0x570] sm:$0xff]  ;;  %v1968_v30 = vld [vmem:[#allocation3 + $0x1e0] sm:$0xff] }
 0x69f   :  { %2548 = vmatpush1.bf16.msra.mxu0 %v2328_v33  ;;  %2712 = vmatpush1.bf16.msra.mxu1 %v2330_v34  ;;  %v2026_v33 = vld [vmem:[#allocation3 + $0x3b0] sm:$0xff]  ;;  %v1976_v34 = vld [vmem:[#allocation3 + $0x220] sm:$0xff] }
 0x6a0   :  { %2549 = vmatprep.subr.bf16.mxu0 %v2336_v35  ;;  %2713 = vmatprep.subr.bf16.mxu1 %v2338_v36  ;;  %v2089_v35 = vld [vmem:[#allocation3 + $0x5a8] sm:$0xff]  ;;  %v1975_v36 = vld [vmem:[#allocation3 + $0x218] sm:$0xff] }
 0x6a3   :  { %2550 = vmatpush1.bf16.msra.mxu0 %v2335_v31  ;;  %2714 = vmatpush1.bf16.msra.mxu1 %v2337_v24  ;;  %v2033_v31 = vld [vmem:[#allocation3 + $0x3e8] sm:$0xff]  ;;  %v1983_v24 = vld [vmem:[#allocation3 + $0x258] sm:$0xff] }
 0x6a4   :  { %2551 = vmatprep.subr.bf16.mxu0 %v2343_v37  ;;  %2715 = vmatprep.subr.bf16.mxu1 %v2345_v23  ;;  %v2096_v37 = vld [vmem:[#allocation3 + $0x5e0] sm:$0xff]  ;;  %v1982_v23 = vld [vmem:[#allocation3 + $0x250] sm:$0xff] }
 0x6a7   :  { %2552 = vmatpush1.bf16.msra.mxu0 %v2342_v6  ;;  %2716 = vmatpush1.bf16.msra.mxu1 %v2344_v42  ;;  %v2040_v6 = vld [vmem:[#allocation3 + $0x420] sm:$0xff]  ;;  %v1990_v42 = vld [vmem:[#allocation3 + $0x290] sm:$0xff] }
 0x6a8   :  { %2553 = vmatprep.subr.bf16.mxu0 %v2350_v43  ;;  %2717 = vmatprep.subr.bf16.mxu1 %v2352_v44  ;;  %v2103_v43 = vld [vmem:[#allocation3 + $0x618] sm:$0xff]  ;;  %v1989_v44 = vld [vmem:[#allocation3 + $0x288] sm:$0xff] }
 0x6ab   :  { %2554 = vmatpush1.bf16.msra.mxu0 %v2349_v45  ;;  %2718 = vmatpush1.bf16.msra.mxu1 %v2351_v46  ;;  %v2047_v45 = vld [vmem:[#allocation3 + $0x458] sm:$0xff]  ;;  %v1997_v46 = vld [vmem:[#allocation3 + $0x2c8] sm:$0xff] }
 0x6ac   :  { %2728 = vmatprep.subr.bf16.mxu0 %v1913_v47  ;;  %3210 = vmatprep.subr.bf16.mxu1 %v1970_v48  ;;  %v2110_v47 = vld [vmem:[#allocation3 + $0x650] sm:$0xff]  ;;  %v1996_v48 = vld [vmem:[#allocation3 + $0x2c0] sm:$0xff] }
 0x6ae   :  { %2556 = vmatmul.mubr.bf16.vlgmr.msra.gmra.mrb[12].mxu0 %v3969_v54  ;;  %2720 = vmatmul.mubr.bf16.vlgmr.msra.gmra.mrb[20].mxu1 %v3969_v54 }
 0x6af   :  { %2729 = vmatpush1.bf16.msra.mxu0 %v1912_v55  ;;  %3211 = vmatpush3.bf16.msra.mxu1 %v1914_v56  ;;  %v2054_v55 = vld [vmem:[#allocation3 + $0x490] sm:$0xff]  ;;  %v2004_v56 = vld [vmem:[#allocation3 + $0x300] sm:$0xff] }
 0x6b0   :  { %2730 = vmatprep.subr.bf16.mxu0 %v1920_v58  ;;  %3212 = vmatprep.subr.bf16.mxu1 %v1977_v18  ;;  %v2117_v58 = vld [vmem:[#allocation3 + $0x688] sm:$0xff]  ;;  %v2003_v18 = vld [vmem:[#allocation3 + $0x2f8] sm:$0xff] }
 0x6b1   :  { %2760 = vmatprep.mubr.bf16.mxu0 %v3927_v27  ;;  %2924 = vmatprep.mubr.bf16.mxu1 %v3927_v27  ;;  %v1940_v27 = vld [vmem:[#allocation3 + $0x100] sm:$0xff] }
 0x6b3   :  { %2731 = vmatpush1.bf16.msra.mxu0 %v1919_v60  ;;  %3213 = vmatpush3.bf16.msra.mxu1 %v1921_v61  ;;  %v2061_v60 = vld [vmem:[#allocation3 + $0x4c8] sm:$0xff]  ;;  %v2011_v61 = vld [vmem:[#allocation3 + $0x338] sm:$0xff] }
 0x6b4   :  { %2732 = vmatprep.subr.bf16.mxu0 %v1927_v32  ;;  %3214 = vmatprep.subr.bf16.mxu1 %v1984_v38  ;;  %v2124_v32 = vld [vmem:[#allocation3 + $0x6c0] sm:$0xff]  ;;  %v2010_v38 = vld [vmem:[#allocation3 + $0x330] sm:$0xff] }
 0x6b7   :  { %2733 = vmatpush1.bf16.msra.mxu0 %v1926_v25  ;;  %3215 = vmatpush3.bf16.msra.mxu1 %v1928_v63  ;;  %v2068_v25 = vld [vmem:[#allocation3 + $0x500] sm:$0xff]  ;;  %v2018_v63 = vld [vmem:[#allocation3 + $0x370] sm:$0xff] }
 0x6b8   :  { %2734 = vmatprep.subr.bf16.mxu0 %v1934_v4  ;;  %3216 = vmatprep.subr.bf16.mxu1 %v1991_v49  ;;  %v2131_v4 = vld [vmem:[#allocation3 + $0x6f8] sm:$0xff]  ;;  %v2017_v49 = vld [vmem:[#allocation3 + $0x368] sm:$0xff] }
 0x6bb   :  { %2735 = vmatpush1.bf16.msra.mxu0 %v1933_v11  ;;  %3217 = vmatpush3.bf16.msra.mxu1 %v1935_v12  ;;  %v2075_v11 = vld [vmem:[#allocation3 + $0x538] sm:$0xff]  ;;  %v2025_v12 = vld [vmem:[#allocation3 + $0x3a8] sm:$0xff] }
 0x6bc   :  { %2736 = vmatprep.subr.bf16.mxu0 %v1941_v13  ;;  %3218 = vmatprep.subr.bf16.mxu1 %v1998_v5  ;;  %v2194_v13 = vld [vmem:[#allocation3 + $0x8f0] sm:$0xff]  ;;  %v2024_v5 = vld [vmem:[#allocation3 + $0x3a0] sm:$0xff] }
 0x6bf   :  { %2737 = vmatpush1.bf16.msra.mxu0 %v1940_v27  ;;  %3219 = vmatpush3.bf16.msra.mxu1 %v1942_v0  ;;  %v2138_v27 = vld [vmem:[#allocation3 + $0x730] sm:$0xff]  ;;  %v2032_v0 = vld [vmem:[#allocation3 + $0x3e0] sm:$0xff] }
 0x6c0   :  { %2738 = vmatprep.subr.bf16.mxu0 %v1948_v40  ;;  %3220 = vmatprep.subr.bf16.mxu1 %v2005_v15  ;;  %v2201_v40 = vld [vmem:[#allocation3 + $0x928] sm:$0xff]  ;;  %v2031_v15 = vld [vmem:[#allocation3 + $0x3d8] sm:$0xff] }
 0x6c3   :  { %2739 = vmatpush1.bf16.msra.mxu0 %v1947_v16  ;;  %3221 = vmatpush3.bf16.msra.mxu1 %v1949_v19  ;;  %v2145_v16 = vld [vmem:[#allocation3 + $0x768] sm:$0xff]  ;;  %v2039_v19 = vld [vmem:[#allocation3 + $0x418] sm:$0xff] }
 0x6c4   :  { %2740 = vmatprep.subr.bf16.mxu0 %v1955_v8  ;;  %3222 = vmatprep.subr.bf16.mxu1 %v2012_v10  ;;  %v2208_v8 = vld [vmem:[#allocation3 + $0x960] sm:$0xff]  ;;  %v2038_v10 = vld [vmem:[#allocation3 + $0x410] sm:$0xff] }
 0x6c7   :  { %2741 = vmatpush1.bf16.msra.mxu0 %v1954_v1  ;;  %3223 = vmatpush3.bf16.msra.mxu1 %v1956_v26  ;;  %v2046_v1 = vld [vmem:[#allocation3 + $0x450] sm:$0xff]  ;;  %v2215_v26 = vld [vmem:[#allocation3 + $0x998] sm:$0xff] }
 0x6c8   :  { %2742 = vmatprep.subr.bf16.mxu0 %v1962_v41  ;;  %3224 = vmatprep.subr.bf16.mxu1 %v2019_v28  ;;  %v2045_v41 = vld [vmem:[#allocation3 + $0x448] sm:$0xff]  ;;  %v2159_v28 = vld [vmem:[#allocation3 + $0x7d8] sm:$0xff] }
 0x6cb   :  { %2743 = vmatpush1.bf16.msra.mxu0 %v1961_v3  ;;  %3225 = vmatpush3.bf16.msra.mxu1 %v1963_v22  ;;  %v2053_v3 = vld [vmem:[#allocation3 + $0x488] sm:$0xff]  ;;  %v2222_v22 = vld [vmem:[#allocation3 + $0x9d0] sm:$0xff] }
 0x6cc   :  { %2744 = vmatprep.subr.bf16.mxu0 %v1969_v2  ;;  %3232 = vmatprep.subr.bf16.mxu1 %v2082_v29  ;;  %v2166_v2 = vld [vmem:[#allocation3 + $0x810] sm:$0xff]  ;;  %v2060_v29 = vld [vmem:[#allocation3 + $0x4c0] sm:$0xff] }
 0x6ce   :  { %2925 = vmatmul.mubr.bf16.vlgmr.msra.gmra.mrb[24].mxu1 %v3933_v7 }
 0x6cf   :  { %2745 = vmatpush1.bf16.msra.mxu0 %v1968_v30  ;;  %3233 = vmatpush3.bf16.msra.mxu1 %v2026_v33  ;;  %v2229_v30 = vld [vmem:[#allocation3 + $0xa08] sm:$0xff]  ;;  %v2059_v33 = vld [vmem:[#allocation3 + $0x4b8] sm:$0xff] }
 0x6d0   :  { %2746 = vmatprep.subr.bf16.mxu0 %v1976_v34  ;;  %3234 = vmatprep.subr.bf16.mxu1 %v2089_v35  ;;  %v2173_v34 = vld [vmem:[#allocation3 + $0x848] sm:$0xff]  ;;  %v2067_v35 = vld [vmem:[#allocation3 + $0x4f8] sm:$0xff] }
 0x6d1   :  { %2964 = vmatprep.mubr.bf16.mxu1 %v3937_v59 }
 0x6d3   :  { %2747 = vmatpush1.bf16.msra.mxu0 %v1975_v36  ;;  %3235 = vmatpush3.bf16.msra.mxu1 %v2033_v31  ;;  %v2236_v36 = vld [vmem:[#allocation3 + $0xa40] sm:$0xff]  ;;  %v2066_v31 = vld [vmem:[#allocation3 + $0x4f0] sm:$0xff] }
 0x6d4   :  { %2748 = vmatprep.subr.bf16.mxu0 %v1983_v24  ;;  %3236 = vmatprep.subr.bf16.mxu1 %v2096_v37  ;;  %v2180_v24 = vld [vmem:[#allocation3 + $0x880] sm:$0xff]  ;;  %v2074_v37 = vld [vmem:[#allocation3 + $0x530] sm:$0xff] }
 0x6d7   :  { %2749 = vmatpush1.bf16.msra.mxu0 %v1982_v23  ;;  %3237 = vmatpush3.bf16.msra.mxu1 %v2040_v6  ;;  %v2243_v23 = vld [vmem:[#allocation3 + $0xa78] sm:$0xff]  ;;  %v2073_v6 = vld [vmem:[#allocation3 + $0x528] sm:$0xff] }
 0x6d8   :  { %2750 = vmatprep.subr.bf16.mxu0 %v1990_v42  ;;  %3238 = vmatprep.subr.bf16.mxu1 %v2103_v43  ;;  %v2187_v42 = vld [vmem:[#allocation3 + $0x8b8] sm:$0xff]  ;;  %v2081_v43 = vld [vmem:[#allocation3 + $0x568] sm:$0xff] }
 0x6db   :  { %2751 = vmatpush1.bf16.msra.mxu0 %v1989_v44  ;;  %3239 = vmatpush3.bf16.msra.mxu1 %v2047_v45  ;;  %v2306_v44 = vld [vmem:[#allocation3 + $0xc70] sm:$0xff]  ;;  %v2080_v45 = vld [vmem:[#allocation3 + $0x560] sm:$0xff] }
 0x6dc   :  { %2752 = vmatprep.subr.bf16.mxu0 %v1997_v46  ;;  %3240 = vmatprep.subr.bf16.mxu1 %v2110_v47  ;;  %v2250_v46 = vld [vmem:[#allocation3 + $0xab0] sm:$0xff]  ;;  %v2088_v47 = vld [vmem:[#allocation3 + $0x5a0] sm:$0xff] }
 0x6df   :  { %2753 = vmatpush1.bf16.msra.mxu0 %v1996_v48  ;;  %3241 = vmatpush3.bf16.msra.mxu1 %v2054_v55  ;;  %v2313_v48 = vld [vmem:[#allocation3 + $0xca8] sm:$0xff]  ;;  %v2087_v55 = vld [vmem:[#allocation3 + $0x598] sm:$0xff] }
 0x6e0   :  { %2754 = vmatprep.subr.bf16.mxu0 %v2004_v56  ;;  %3242 = vmatprep.subr.bf16.mxu1 %v2117_v58  ;;  %v2257_v56 = vld [vmem:[#allocation3 + $0xae8] sm:$0xff]  ;;  %v2095_v58 = vld [vmem:[#allocation3 + $0x5d8] sm:$0xff] }
 0x6e3   :  { %2755 = vmatpush1.bf16.msra.mxu0 %v2003_v18  ;;  %3243 = vmatpush3.bf16.msra.mxu1 %v2061_v60  ;;  %v2320_v18 = vld [vmem:[#allocation3 + $0xce0] sm:$0xff]  ;;  %v2094_v60 = vld [vmem:[#allocation3 + $0x5d0] sm:$0xff] }
 0x6e4   :  { %2756 = vmatprep.subr.bf16.mxu0 %v2011_v61  ;;  %3244 = vmatprep.subr.bf16.mxu1 %v2124_v32  ;;  %v2264_v61 = vld [vmem:[#allocation3 + $0xb20] sm:$0xff]  ;;  %v2102_v32 = vld [vmem:[#allocation3 + $0x610] sm:$0xff] }
 0x6e7   :  { %2757 = vmatpush1.bf16.msra.mxu0 %v2010_v38  ;;  %3245 = vmatpush3.bf16.msra.mxu1 %v2068_v25  ;;  %v2327_v38 = vld [vmem:[#allocation3 + $0xd18] sm:$0xff]  ;;  %v2101_v25 = vld [vmem:[#allocation3 + $0x608] sm:$0xff] }
 0x6e8   :  { %2758 = vmatprep.subr.bf16.mxu0 %v2018_v63  ;;  %3246 = vmatprep.subr.bf16.mxu1 %v2131_v4  ;;  %v2271_v63 = vld [vmem:[#allocation3 + $0xb58] sm:$0xff]  ;;  %v2109_v4 = vld [vmem:[#allocation3 + $0x648] sm:$0xff] }
 0x6eb   :  { %2759 = vmatpush1.bf16.msra.mxu0 %v2017_v49  ;;  %3247 = vmatpush3.bf16.msra.mxu1 %v2075_v11  ;;  %v2334_v49 = vld [vmem:[#allocation3 + $0xd50] sm:$0xff]  ;;  %v2108_v11 = vld [vmem:[#allocation3 + $0x640] sm:$0xff] }
 0x6ec   :  { %2769 = vmatprep.subr.bf16.mxu0 %v2025_v12  ;;  %3254 = vmatprep.subr.bf16.mxu1 %v2194_v13  ;;  %v2278_v12 = vld [vmem:[#allocation3 + $0xb90] sm:$0xff]  ;;  %v2116_v13 = vld [vmem:[#allocation3 + $0x680] sm:$0xff] }
 0x6ee   :  { %2761 = vmatmul.mubr.bf16.vlgmr.msra.gmra.mrb[16].mxu0 %v3933_v7  ;;  %2965 = vmatmul.mubr.bf16.vlgmr.msra.gmra.mrb[28].mxu1 %v3945_v14  ;;  %v2152_v7 = vld [vmem:[#allocation3 + $0x7a0] sm:$0xff] }
 0x6ef   :  { %2770 = vmatpush1.bf16.msra.mxu0 %v2024_v5  ;;  %3255 = vmatpush3.bf16.msra.mxu1 %v2138_v27  ;;  %v2341_v5 = vld [vmem:[#allocation3 + $0xd88] sm:$0xff]  ;;  %v2115_v27 = vld [vmem:[#allocation3 + $0x678] sm:$0xff] }
 0x6f0   :  { %2771 = vmatprep.subr.bf16.mxu0 %v2032_v0  ;;  %3256 = vmatprep.subr.bf16.mxu1 %v2201_v40  ;;  %v2285_v0 = vld [vmem:[#allocation3 + $0xbc8] sm:$0xff]  ;;  %v2123_v40 = vld [vmem:[#allocation3 + $0x6b8] sm:$0xff] }
 0x6f1   :  { %2801 = vmatprep.mubr.bf16.mxu0 %v3937_v59  ;;  %3004 = vmatprep.mubr.bf16.mxu1 %v3949_v17  ;;  %v2052_v59 = vld [vmem:[#allocation3 + $0x480] sm:$0xff] }
 0x6f3   :  { %2772 = vmatpush1.bf16.msra.mxu0 %v2031_v15  ;;  %3257 = vmatpush3.bf16.msra.mxu1 %v2145_v16  ;;  %v2348_v15 = vld [vmem:[#allocation3 + $0xdc0] sm:$0xff]  ;;  %v2122_v16 = vld [vmem:[#allocation3 + $0x6b0] sm:$0xff] }
 0x6f4   :  { %2773 = vmatprep.subr.bf16.mxu0 %v2039_v19  ;;  %3258 = vmatprep.subr.bf16.mxu1 %v2208_v8  ;;  %v2292_v19 = vld [vmem:[#allocation3 + $0xc00] sm:$0xff]  ;;  %v2130_v8 = vld [vmem:[#allocation3 + $0x6f0] sm:$0xff] }
 0x6f7   :  { %2774 = vmatpush1.bf16.msra.mxu0 %v2038_v10  ;;  %3259 = vmatpush3.bf16.msra.mxu1 %v2152_v7  ;;  %v2355_v10 = vld [vmem:[#allocation3 + $0xdf8] sm:$0xff]  ;;  %v2129_v7 = vld [vmem:[#allocation3 + $0x6e8] sm:$0xff] }
 0x6f8   :  { %2775 = vmatprep.subr.bf16.mxu0 %v2046_v1  ;;  %3260 = vmatprep.subr.bf16.mxu1 %v2215_v26  ;;  %v2299_v1 = vld [vmem:[#allocation3 + $0xc38] sm:$0xff]  ;;  %v2137_v26 = vld [vmem:[#allocation3 + $0x728] sm:$0xff] }
 0x6fb   :  { %2776 = vmatpush1.bf16.msra.mxu0 %v2045_v41  ;;  %3261 = vmatpush3.bf16.msra.mxu1 %v2159_v28  ;;  %v2136_v41 = vld [vmem:[#allocation3 + $0x720] sm:$0xff] }
 0x6fc   :  { %2777 = vmatprep.subr.bf16.mxu0 %v2053_v3  ;;  %3262 = vmatprep.subr.bf16.mxu1 %v2222_v22  ;;  %v2144_v28 = vld [vmem:[#allocation3 + $0x760] sm:$0xff]  ;;  %v2143_v3 = vld [vmem:[#allocation3 + $0x758] sm:$0xff] }
 0x6fd   :  { %v2151_v22 = vld [vmem:[#allocation3 + $0x798] sm:$0xff] }
 0x6ff   :  { %2778 = vmatpush1.bf16.msra.mxu0 %v2052_v59  ;;  %3263 = vmatpush3.bf16.msra.mxu1 %v2166_v2  ;;  %v2150_v59 = vld [vmem:[#allocation3 + $0x790] sm:$0xff] }
 0x700   :  { %2779 = vmatprep.subr.bf16.mxu0 %v2060_v29  ;;  %3264 = vmatprep.subr.bf16.mxu1 %v2229_v30  ;;  %v2158_v2 = vld [vmem:[#allocation3 + $0x7d0] sm:$0xff]  ;;  %v2157_v29 = vld [vmem:[#allocation3 + $0x7c8] sm:$0xff] }
 0x701   :  { %v2165_v30 = vld [vmem:[#allocation3 + $0x808] sm:$0xff] }
 0x703   :  { %2780 = vmatpush1.bf16.msra.mxu0 %v2059_v33  ;;  %3265 = vmatpush3.bf16.msra.mxu1 %v2173_v34  ;;  %v2164_v33 = vld [vmem:[#allocation3 + $0x800] sm:$0xff]  ;;  %v2171_v34 = vld [vmem:[#allocation3 + $0x838] sm:$0xff] }
 0x704   :  { %2781 = vmatprep.subr.bf16.mxu0 %v2067_v35  ;;  %3266 = vmatprep.subr.bf16.mxu1 %v2236_v36  ;;  %v2179_v35 = vld [vmem:[#allocation3 + $0x878] sm:$0xff]  ;;  %v2186_v36 = vld [vmem:[#allocation3 + $0x8b0] sm:$0xff] }
 0x707   :  { %2782 = vmatpush1.bf16.msra.mxu0 %v2066_v31  ;;  %3267 = vmatpush3.bf16.msra.mxu1 %v2180_v24  ;;  %v2185_v31 = vld [vmem:[#allocation3 + $0x8a8] sm:$0xff] }
 0x708   :  { %2783 = vmatprep.subr.bf16.mxu0 %v2074_v37  ;;  %3268 = vmatprep.subr.bf16.mxu1 %v2243_v23  ;;  %v2193_v24 = vld [vmem:[#allocation3 + $0x8e8] sm:$0xff]  ;;  %v2192_v37 = vld [vmem:[#allocation3 + $0x8e0] sm:$0xff] }
 0x709   :  { %v2200_v23 = vld [vmem:[#allocation3 + $0x920] sm:$0xff] }
 0x70b   :  { %2784 = vmatpush1.bf16.msra.mxu0 %v2073_v6  ;;  %3269 = vmatpush3.bf16.msra.mxu1 %v2187_v42  ;;  %v2199_v6 = vld [vmem:[#allocation3 + $0x918] sm:$0xff] }
 0x70c   :  { %2785 = vmatprep.subr.bf16.mxu0 %v2081_v43  ;;  %3276 = vmatprep.subr.bf16.mxu1 %v2306_v44  ;;  %v2207_v42 = vld [vmem:[#allocation3 + $0x958] sm:$0xff]  ;;  %v2206_v43 = vld [vmem:[#allocation3 + $0x950] sm:$0xff] }
 0x70d   :  { %v2214_v44 = vld [vmem:[#allocation3 + $0x990] sm:$0xff] }
 0x70e   :  { %3005 = vmatmul.mubr.bf16.vlgmr.msra.gmra.mrb[32].mxu1 %v3957_v57 }
 0x70f   :  { %2786 = vmatpush1.bf16.msra.mxu0 %v2080_v45  ;;  %3277 = vmatpush3.bf16.msra.mxu1 %v2250_v46  ;;  %v2213_v45 = vld [vmem:[#allocation3 + $0x988] sm:$0xff] }
 0x710   :  { %2787 = vmatprep.subr.bf16.mxu0 %v2088_v47  ;;  %3278 = vmatprep.subr.bf16.mxu1 %v2313_v48  ;;  %v2221_v46 = vld [vmem:[#allocation3 + $0x9c8] sm:$0xff]  ;;  %v2220_v47 = vld [vmem:[#allocation3 + $0x9c0] sm:$0xff] }
 0x711   :  { %3044 = vmatprep.mubr.bf16.mxu1 %v3961_v62  ;;  %v2228_v48 = vld [vmem:[#allocation3 + $0xa00] sm:$0xff] }
 0x713   :  { %2788 = vmatpush1.bf16.msra.mxu0 %v2087_v55  ;;  %3279 = vmatpush3.bf16.msra.mxu1 %v2257_v56  ;;  %v2227_v55 = vld [vmem:[#allocation3 + $0x9f8] sm:$0xff] }
 0x714   :  { %2789 = vmatprep.subr.bf16.mxu0 %v2095_v58  ;;  %3280 = vmatprep.subr.bf16.mxu1 %v2320_v18  ;;  %v2235_v56 = vld [vmem:[#allocation3 + $0xa38] sm:$0xff]  ;;  %v2234_v58 = vld [vmem:[#allocation3 + $0xa30] sm:$0xff] }
 0x715   :  { %v2242_v18 = vld [vmem:[#allocation3 + $0xa70] sm:$0xff] }
 0x717   :  { %2790 = vmatpush1.bf16.msra.mxu0 %v2094_v60  ;;  %3281 = vmatpush3.bf16.msra.mxu1 %v2264_v61  ;;  %v2241_v60 = vld [vmem:[#allocation3 + $0xa68] sm:$0xff] }
 0x718   :  { %2791 = vmatprep.subr.bf16.mxu0 %v2102_v32  ;;  %3282 = vmatprep.subr.bf16.mxu1 %v2327_v38  ;;  %v2249_v61 = vld [vmem:[#allocation3 + $0xaa8] sm:$0xff]  ;;  %v2248_v32 = vld [vmem:[#allocation3 + $0xaa0] sm:$0xff] }
 0x719   :  { %v2256_v38 = vld [vmem:[#allocation3 + $0xae0] sm:$0xff] }
 0x71b   :  { %2792 = vmatpush1.bf16.msra.mxu0 %v2101_v25  ;;  %3283 = vmatpush3.bf16.msra.mxu1 %v2271_v63  ;;  %v2255_v25 = vld [vmem:[#allocation3 + $0xad8] sm:$0xff] }
 0x71c   :  { %2793 = vmatprep.subr.bf16.mxu0 %v2109_v4  ;;  %3284 = vmatprep.subr.bf16.mxu1 %v2334_v49  ;;  %v2263_v63 = vld [vmem:[#allocation3 + $0xb18] sm:$0xff]  ;;  %v2262_v4 = vld [vmem:[#allocation3 + $0xb10] sm:$0xff] }
 0x71d   :  { %v2270_v49 = vld [vmem:[#allocation3 + $0xb50] sm:$0xff] }
 0x71f   :  { %2794 = vmatpush1.bf16.msra.mxu0 %v2108_v11  ;;  %3285 = vmatpush3.bf16.msra.mxu1 %v2278_v12  ;;  %v2269_v11 = vld [vmem:[#allocation3 + $0xb48] sm:$0xff] }
 0x720   :  { %2795 = vmatprep.subr.bf16.mxu0 %v2116_v13  ;;  %3286 = vmatprep.subr.bf16.mxu1 %v2341_v5  ;;  %v2277_v12 = vld [vmem:[#allocation3 + $0xb88] sm:$0xff]  ;;  %v2276_v13 = vld [vmem:[#allocation3 + $0xb80] sm:$0xff] }
 0x721   :  { %v2284_v5 = vld [vmem:[#allocation3 + $0xbc0] sm:$0xff] }
 0x723   :  { %2796 = vmatpush1.bf16.msra.mxu0 %v2115_v27  ;;  %3287 = vmatpush3.bf16.msra.mxu1 %v2285_v0  ;;  %v2372_v27 = vrot.slane %v3786_v9, %v3797_v52  ;;  %v2380_v0 = vrot.slane %v3786_v9, %v3825_v21  ;;  %v2298_v21 = vld [vmem:[#allocation3 + $0xc30] sm:$0xff] }
 0x724   :  { %2797 = vmatprep.subr.bf16.mxu0 %v2123_v40  ;;  %3288 = vmatprep.subr.bf16.mxu1 %v2348_v15  ;;  %v2283_v40 = vld [vmem:[#allocation3 + $0xbb8] sm:$0xff] }
 0x727   :  { %2798 = vmatpush1.bf16.msra.mxu0 %v2122_v16  ;;  %3289 = vmatpush3.bf16.msra.mxu1 %v2292_v19  ;;  %v2291_v19 = vld [vmem:[#allocation3 + $0xbf8] sm:$0xff] }
 0x728   :  { %2799 = vmatprep.subr.bf16.mxu0 %v2130_v8  ;;  %3290 = vmatprep.subr.bf16.mxu1 %v2355_v10 }
 0x72b   :  { %2800 = vmatpush1.bf16.msra.mxu0 %v2129_v7  ;;  %3291 = vmatpush3.bf16.msra.mxu1 %v2299_v1 }
 0x72c   :  { %2810 = vmatprep.subr.bf16.mxu0 %v2137_v26 }
 0x72e   :  { %2802 = vmatmul.mubr.bf16.vlgmr.msra.gmra.mrb[16].mxu0 %v3945_v14  ;;  %3045 = vmatmul.mubr.bf16.vlgmr.msra.gmra.mrb[36].mxu1 %v3969_v54  ;;  %v2172_v14 = vld [vmem:[#allocation3 + $0x840] sm:$0xff] }
 0x72f   :  { %2811 = vmatpush1.bf16.msra.mxu0 %v2136_v41  ;;  %2842 = vmatprep.mubr.bf16.mxu0 %v3949_v17  ;;  %v2178_v17 = vld [vmem:[#allocation3 + $0x870] sm:$0xff] }
 0x730   :  { %2812 = vmatprep.subr.bf16.mxu0 %v2144_v28 }
 0x733   :  { %2813 = vmatpush1.bf16.msra.mxu0 %v2143_v3  ;;  %v2290_v3 = vld [vmem:[#allocation3 + $0xbf0] sm:$0xff] }
 0x734   :  { %2814 = vmatprep.subr.bf16.mxu0 %v2151_v22  ;;  %v2297_v22 = vld [vmem:[#allocation3 + $0xc28] sm:$0xff] }
 0x737   :  { %2815 = vmatpush1.bf16.msra.mxu0 %v2150_v59  ;;  %v2305_v59 = vld [vmem:[#allocation3 + $0xc68] sm:$0xff] }
 0x738   :  { %2816 = vmatprep.subr.bf16.mxu0 %v2158_v2  ;;  %v2304_v2 = vld [vmem:[#allocation3 + $0xc60] sm:$0xff] }
 0x73b   :  { %2817 = vmatpush1.bf16.msra.mxu0 %v2157_v29  ;;  %v2312_v29 = vld [vmem:[#allocation3 + $0xca0] sm:$0xff] }
 0x73c   :  { %2818 = vmatprep.subr.bf16.mxu0 %v2165_v30 }
 0x73f   :  { %2819 = vmatpush1.bf16.msra.mxu0 %v2164_v33 }
 0x740   :  { %2820 = vmatprep.subr.bf16.mxu0 %v2172_v14 }
 0x743   :  { %2821 = vmatpush1.bf16.msra.mxu0 %v2171_v34  ;;  %v2311_v34 = vld [vmem:[#allocation3 + $0xc98] sm:$0xff] }
 0x744   :  { %2822 = vmatprep.subr.bf16.mxu0 %v2179_v35 }
 0x747   :  { %2823 = vmatpush1.bf16.msra.mxu0 %v2178_v17 }
 0x748   :  { %2824 = vmatprep.subr.bf16.mxu0 %v2186_v36  ;;  %v2319_v36 = vld [vmem:[#allocation3 + $0xcd8] sm:$0xff] }
 0x74b   :  { %2825 = vmatpush1.bf16.msra.mxu0 %v2185_v31 }
 0x74c   :  { %2826 = vmatprep.subr.bf16.mxu0 %v2193_v24  ;;  %v2318_v24 = vld [vmem:[#allocation3 + $0xcd0] sm:$0xff] }
 0x74f   :  { %2827 = vmatpush1.bf16.msra.mxu0 %v2192_v37  ;;  %v2326_v37 = vld [vmem:[#allocation3 + $0xd10] sm:$0xff] }
 0x750   :  { %2828 = vmatprep.subr.bf16.mxu0 %v2200_v23  ;;  %v2325_v23 = vld [vmem:[#allocation3 + $0xd08] sm:$0xff] }
 0x753   :  { %2829 = vmatpush1.bf16.msra.mxu0 %v2199_v6  ;;  %v2333_v6 = vld [vmem:[#allocation3 + $0xd48] sm:$0xff] }
 0x754   :  { %2830 = vmatprep.subr.bf16.mxu0 %v2207_v42  ;;  %v2332_v42 = vld [vmem:[#allocation3 + $0xd40] sm:$0xff] }
 0x757   :  { %2831 = vmatpush1.bf16.msra.mxu0 %v2206_v43  ;;  %v2340_v43 = vld [vmem:[#allocation3 + $0xd80] sm:$0xff] }
 0x758   :  { %2832 = vmatprep.subr.bf16.mxu0 %v2214_v44  ;;  %v2339_v44 = vld [vmem:[#allocation3 + $0xd78] sm:$0xff] }
 0x75b   :  { %2833 = vmatpush1.bf16.msra.mxu0 %v2213_v45  ;;  %v2347_v45 = vld [vmem:[#allocation3 + $0xdb8] sm:$0xff] }
 0x75c   :  { %2834 = vmatprep.subr.bf16.mxu0 %v2221_v46 }
 0x75f   :  { %2835 = vmatpush1.bf16.msra.mxu0 %v2220_v47 }
 0x760   :  { %2836 = vmatprep.subr.bf16.mxu0 %v2228_v48 }
 0x763   :  { %2837 = vmatpush1.bf16.msra.mxu0 %v2227_v55 }
 0x764   :  { %2838 = vmatprep.subr.bf16.mxu0 %v2235_v56  ;;  %v2346_v56 = vld [vmem:[#allocation3 + $0xdb0] sm:$0xff] }
 0x767   :  { %2839 = vmatpush1.bf16.msra.mxu0 %v2234_v58 }
 0x768   :  { %2840 = vmatprep.subr.bf16.mxu0 %v2242_v18  ;;  %v2354_v18 = vld [vmem:[#allocation3 + $0xdf0] sm:$0xff] }
 0x76b   :  { %2841 = vmatpush1.bf16.msra.mxu0 %v2241_v60  ;;  %v2353_v60 = vld [vmem:[#allocation3 + $0xde8] sm:$0xff] }
 0x76c   :  { %2851 = vmatprep.subr.bf16.mxu0 %v2249_v61  ;;  %v2392_v61 = vrot.slane %v3786_v9, %v3897_v51 }
 0x76e   :  { %2843 = vmatmul.mubr.bf16.vlgmr.msra.gmra.mrb[16].mxu0 %v3957_v57  ;;  %v2368_v57 = vrot.slane %v3786_v9, %v3794_v50 }
 0x76f   :  { %2852 = vmatpush1.bf16.msra.mxu0 %v2248_v32  ;;  %2883 = vmatprep.mubr.bf16.mxu0 %v3961_v62  ;;  %v2376_v62 = vrot.slane %v3786_v9, %v3822_v20 }
 0x770   :  { %2853 = vmatprep.subr.bf16.mxu0 %v2256_v38 }
 0x773   :  { %2854 = vmatpush1.bf16.msra.mxu0 %v2255_v25 }
 0x774   :  { %2855 = vmatprep.subr.bf16.mxu0 %v2263_v63 }
 0x777   :  { %2856 = vmatpush1.bf16.msra.mxu0 %v2262_v4 }
 0x778   :  { %2857 = vmatprep.subr.bf16.mxu0 %v2270_v49 }
 0x77b   :  { %2858 = vmatpush1.bf16.msra.mxu0 %v2269_v11 }
 0x77c   :  { %2859 = vmatprep.subr.bf16.mxu0 %v2277_v12 }
 0x77f   :  { %2860 = vmatpush1.bf16.msra.mxu0 %v2276_v13 }
 0x780   :  { %2861 = vmatprep.subr.bf16.mxu0 %v2284_v5 }
 0x781   :  { %v2557_v15 = vpop.f32.mrb[12].mxu0  ;;  %v2721_v16 = vpop.f32.mrb[20].mxu1 }
 0x782   :  { %v3304_v8 = vadd.f32 %v2557_v15, %v2368_v57  ;;  %v3306_v10 = vadd.f32 %v2721_v16, %v2376_v62  ;;  %v2559_v7 = vpop.f32.mrb[13].mxu0  ;;  %v2723_v1 = vpop.f32.mrb[21].mxu1 }
 0x783   :  { %v3305_v50 = vadd.f32 %v2559_v7, %v2372_v27  ;;  %v3307_v26 = vadd.f32 %v2723_v1, %v2380_v0  ;;  %v2561_v41 = vpop.f32.mrb[14].mxu0  ;;  %v2725_v20 = vpop.f32.mrb[22].mxu1  ;;  %2862 = vmatpush1.bf16.msra.mxu0 %v2283_v40  ;;  %v2388_v7 = vrot.slane %v3786_v9, %v3900_v53 }
 0x784   :  { %3536 = vtanh.f32 %v3304_v8  ;;  %v2562_v28 = vpop.f32.mrb[15].mxu0  ;;  %v2726_v52 = vpop.f32.mrb[23].mxu1  ;;  %2863 = vmatprep.subr.bf16.mxu0 %v2291_v19 }
 0x785   :  { %3538 = vtanh.f32 %v3306_v10  ;;  %v2384_v10 = vrot.slane %v3786_v9, %v3894_v39 }
 0x786   :  { %3540 = vtanh.f32 %v3305_v50 }
 0x787   :  { %3542 = vtanh.f32 %v3307_v26  ;;  %2864 = vmatpush1.bf16.msra.mxu0 %v2290_v3 }
 0x788   :  { %2865 = vmatprep.subr.bf16.mxu0 %v2298_v21 }
 0x78b   :  { %2866 = vmatpush1.bf16.msra.mxu0 %v2297_v22 }
 0x78c   :  { %2867 = vmatprep.subr.bf16.mxu0 %v2305_v59 }
 0x78e   :  { %v3537_v30 = vpop.eup %3536 }
 0x78f   :  { %v3539_v33 = vpop.eup %3538  ;;  %2868 = vmatpush1.bf16.msra.mxu0 %v2304_v2 }
 0x790   :  { %v3541_v14 = vpop.eup %3540  ;;  %2869 = vmatprep.subr.bf16.mxu0 %v2312_v29 }
 0x791   :  { %v3543_v35 = vpop.eup %3542  ;;  %v3204_v17 = vpack.c.bf16 %v3541_v14, %v3537_v30 }
 0x792   :  { %v3205_v31 = vpack.c.bf16 %v3543_v35, %v3539_v33 }
 0x793   :  { %3088 = vst [vmem:[%s4022_s7] sm:$0xff] %v3204_v17  ;;  %2870 = vmatpush1.bf16.msra.mxu0 %v2311_v34 }
 0x794   :  { %3089 = vst [vmem:[%s4022_s7 + $0x8] sm:$0xff] %v3205_v31  ;;  %2871 = vmatprep.subr.bf16.mxu0 %v2319_v36 }
 0x797   :  { %2872 = vmatpush1.bf16.msra.mxu0 %v2318_v24 }
 0x798   :  { %2873 = vmatprep.subr.bf16.mxu0 %v2326_v37 }
 0x79b   :  { %2874 = vmatpush1.bf16.msra.mxu0 %v2325_v23 }
 0x79c   :  { %2875 = vmatprep.subr.bf16.mxu0 %v2333_v6 }
 0x79f   :  { %2876 = vmatpush1.bf16.msra.mxu0 %v2332_v42 }
 0x7a0   :  { %2877 = vmatprep.subr.bf16.mxu0 %v2340_v43 }
 0x7a1   :  { %v3226_v46 = vpop.f32.mrb[24].mxu1 }
 0x7a2   :  { %v3227_v47 = vpop.f32.mrb[25].mxu1 }
 0x7a3   :  { %2878 = vmatpush1.bf16.msra.mxu0 %v2339_v44  ;;  %v3228_v48 = vadd.f32 %v3227_v47, %v3226_v46  ;;  %v3229_v55 = vpop.f32.mrb[26].mxu1 }
 0x7a4   :  { %2879 = vmatprep.subr.bf16.mxu0 %v2347_v45  ;;  %v3230_v58 = vpop.f32.mrb[27].mxu1 }
 0x7a5   :  { %v2927_v32 = vadd.f32 %v3228_v48, %v2392_v61 }
 0x7a7   :  { %2880 = vmatpush1.bf16.msra.mxu0 %v2346_v56 }
 0x7a8   :  { %2881 = vmatprep.subr.bf16.mxu0 %v2354_v18 }
 0x7ab   :  { %2882 = vmatpush1.bf16.msra.mxu0 %v2353_v60 }
 0x7ae   :  { %2884 = vmatmul.mubr.bf16.vlgmr.msra.gmra.mrb[16].mxu0 %v3969_v54 }
 0x7c1   :  { %v3248_v38 = vpop.f32.mrb[28].mxu1 }
 0x7c2   :  { %v3249_v25 = vpop.f32.mrb[29].mxu1 }
 0x7c3   :  { %v3250_v63 = vadd.f32 %v3249_v25, %v3248_v38  ;;  %v3251_v4 = vpop.f32.mrb[30].mxu1 }
 0x7c4   :  { %v3252_v49 = vpop.f32.mrb[31].mxu1 }
 0x7c5   :  { %v2967_v11 = vadd.f32 %v3250_v63, %v2927_v32 }
 0x7e1   :  { %v3270_v12 = vpop.f32.mrb[32].mxu1 }
 0x7e2   :  { %v3271_v13 = vpop.f32.mrb[33].mxu1 }
 0x7e3   :  { %v3272_v5 = vadd.f32 %v3271_v13, %v3270_v12  ;;  %v3273_v57 = vpop.f32.mrb[34].mxu1 }
 0x7e4   :  { %v3274_v62 = vpop.f32.mrb[35].mxu1 }
 0x7e5   :  { %v3007_v27 = vadd.f32 %v3272_v5, %v2967_v11 }
 0x801   :  { %v3292_v0 = vpop.f32.mrb[36].mxu1 }
 0x802   :  { %v3293_v40 = vpop.f32.mrb[37].mxu1 }
 0x803   :  { %v3294_v15 = vadd.f32 %v3293_v40, %v3292_v0  ;;  %v3295_v54 = vpop.f32.mrb[38].mxu1 }
 0x804   :  { %v3296_v16 = vpop.f32.mrb[39].mxu1 }
 0x805   :  { %v3047_v19 = vadd.f32 %v3294_v15, %v3007_v27 }
 0x807   :  { %3544 = vtanh.f32 %v3047_v19 }
 0x811   :  { %v3545_v51 = vpop.eup %3544 }
 0x812   :  { %v3207_v8 = vpack.c.bf16 %v3545_v51, %v3545_v51 }
 0x814   :  { %3091 = vst [vmem:[%s4022_s7 + $0x18] sm:$0xf] %v3207_v8 }
 0x881   :  { %v2885_v1 = vpop.f32.mrb[16].mxu0 }
 0x882   :  { %v3308_v50 = vadd.f32 %v2885_v1, %v2384_v10  ;;  %v2887_v26 = vpop.f32.mrb[17].mxu0 }
 0x883   :  { %v3309_v41 = vadd.f32 %v2887_v26, %v2388_v7  ;;  %v2889_v20 = vpop.f32.mrb[18].mxu0 }
 0x884   :  { %3546 = vtanh.f32 %v3308_v50  ;;  %v2890_v28 = vpop.f32.mrb[19].mxu0 }
 0x885   :  { %3548 = vtanh.f32 %v3309_v41 }
 0x88e   :  { %v3547_v52 = vpop.eup %3546 }
 0x88f   :  { %v3549_v3 = vpop.eup %3548 }
 0x890   :  { %v3206_v21 = vpack.c.bf16 %v3549_v3, %v3547_v52 }
 0x892   :  { %3090 = vst [vmem:[%s4022_s7 + $0x10] sm:$0xff] %v3206_v21 }
 0x893   :  { %3096 = vsyncpa [#allocation6], 1 }
 0x894   :  { %3097 = vsyncpa [#allocation8], 1 }
 0x895   :  { %3098 = vsyncpa [#allocation11], 1 }
 0x896   :  { %3099 = vsyncmov [#allocation4] }
 0x899   :  { %s3100_s10 = vpop.sfrf %3099 }
 0x89a   :  { %p3202_p4 = scmp.ne.s32.totalorder %s3100_s10, 0 }
 0x89c   :  { %3104 = shalt.err (%p3202_p4)  }
 0x89d   :  { %3106 = vsyncmov [#allocation4 + $0x1] }
 0x8a0   :  { %s3107_s13 = vpop.sfrf %3106 }
 0x8a1   :  { %p3203_p5 = scmp.ne.s32.totalorder %s3107_s13, 0 }
 0x8a3   :  { %3111 = shalt.err (%p3203_p5)  }

</bundles_post_ra>
